<compile_context>
chip_gen: v7x
topology: tpu7x:2x2x1
jax: 0.10.0
libtpu: 0.0.40
codegen_flags: <defaults>
</compile_context>

<pallas_src>
import math
import functools

import jax
import jax.numpy as jnp
from jax import lax
from jax.experimental import pallas as pl
from jax.experimental.pallas import tpu as pltpu


# ----------------------------------------------------------------------------
# Kernel
# ----------------------------------------------------------------------------
def _layer_norm(x, g, b, eps=1e-5):
    mu = jnp.mean(x, axis=-1, keepdims=True)
    var = jnp.mean(jnp.square(x - mu), axis=-1, keepdims=True)
    return (x - mu) * lax.rsqrt(var + eps) * g + b


def fused_lm_kernel(x_ref,
                    wqkv_ref, bqkv_ref, wo_ref, bo_ref,
                    g1_ref, b1_ref,
                    wf1_ref, bf1_ref, wf2_ref, bf2_ref,
                    g2_ref, b2_ref,
                    wdec_ref, bdec_ref,
                    o_ref, *, nhead, num_layers):
    """One batch-tile: num_layers post-norm encoder layers + decoder projection."""
    bt, L, D = x_ref.shape                      # bt sequences of length L per grid step
    H = nhead
    hd = D // H
    G = bt * H
    V = wdec_ref.shape[1]
    scale = 1.0 / math.sqrt(hd)
    N = bt * L                                  # folded rows -> MXU M dimension

    # sqrt(D) already folded into the embedding table; dropout == identity (eval).
    x = x_ref[...].reshape(N, D)                # (N, D) f32

    # Causal additive mask, built ONCE at full broadcast shape (no per-layer
    # broadcast_in_dim emission), reused across every layer and head.
    row = lax.broadcasted_iota(jnp.int32, (G, L, L), 1)
    col = lax.broadcasted_iota(jnp.int32, (G, L, L), 2)
    neg_mask = jnp.where(col > row, jnp.float32(-1e30), jnp.float32(0.0))

    def split_heads(t):
        # (N, D) -> (bt*H, L, hd): heads become a batch axis for the score einsum.
        return t.reshape(bt, L, H, hd).transpose(0, 2, 1, 3).reshape(G, L, hd)

    # Static unroll: weights stay VMEM-resident across the whole stack.
    # TODO(synk): switch to lax.fori_loop (dynamic wqkv_ref[l] indexing) for >4 layers.
    for l in range(num_layers):
        # --- fused QKV projection over all bt*L rows (bf16 MXU, f32 accumulate) ---
        qkv = jnp.dot(x.astype(jnp.bfloat16), wqkv_ref[l],
                      preferred_element_type=jnp.float32) + bqkv_ref[l]      # (N, 3D)
        q = split_heads(qkv[:, :D].astype(jnp.bfloat16))        # 128-aligned lane slices
        k = split_heads(qkv[:, D:2 * D].astype(jnp.bfloat16))
        v = split_heads(qkv[:, 2 * D:].astype(jnp.bfloat16))

        # --- head-batched attention (dense scores; see TODO for flash tiling) ---
        s = jnp.einsum("gqd,gkd->gqk", q, k,
                       preferred_element_type=jnp.float32) * scale          # (G, L, L)
        s = s + neg_mask
        s = s - jnp.max(s, axis=-1, keepdims=True)
        p = jnp.exp(s)
        p = p / jnp.sum(p, axis=-1, keepdims=True)               # exact softmax division
        ctx = jnp.einsum("gqk,gkd->gqd", p.astype(jnp.bfloat16), v,
                         preferred_element_type=jnp.float32)                # (G, L, hd)
        attn = ctx.reshape(bt, H, L, hd).transpose(0, 2, 1, 3).reshape(N, D)
        attn = jnp.dot(attn.astype(jnp.bfloat16), wo_ref[l],
                       preferred_element_type=jnp.float32) + bo_ref[l]

        # --- residual + LayerNorm 1 (post-norm), f32 ---
        x = _layer_norm(x + attn, g1_ref[l], b1_ref[l])

        # --- feed-forward (ReLU), bt*L rows folded into the MXU M dim ---
        h1 = jnp.dot(x.astype(jnp.bfloat16), wf1_ref[l],
                     preferred_element_type=jnp.float32) + bf1_ref[l]
        h1 = jnp.maximum(h1, 0.0)
        h2 = jnp.dot(h1.astype(jnp.bfloat16), wf2_ref[l],
                     preferred_element_type=jnp.float32) + bf2_ref[l]

        # --- residual + LayerNorm 2 ---
        x = _layer_norm(x + h2, g2_ref[l], b2_ref[l])

    # --- decoder: (N, D) @ (D, V) + b, lane-dense V (multiple of 128) ---
    logits = jnp.dot(x.astype(jnp.bfloat16), wdec_ref[...],
                     preferred_element_type=jnp.float32) + bdec_ref[...]    # (N, V)
    # Seq-major store: transpose happens on the small VMEM block, so no post-kernel
    # HBM relayout of the (L, B, V) logits is needed.
    o_ref[...] = logits.reshape(bt, L, V).transpose(1, 0, 2).astype(o_ref.dtype)


# ----------------------------------------------------------------------------
# Wrapper
# ----------------------------------------------------------------------------
def _pick_batch_tile(B, L):
    """Sequences per grid step: grow M rows toward ~256 while keeping the
    seq-major output block legal (tile == B or a multiple of 8) and divisible."""
    bt = min(B, max(1, 256 // L))
    for cand in range(bt, 0, -1):
        if B % cand == 0 and (cand == B or cand % 8 == 0):
            return cand
    return B


def _full_spec(arr):
    """Full-array (untiled) VMEM block: same block for every grid step."""
    nd = arr.ndim
    return pl.BlockSpec(arr.shape, lambda i, nd=nd: (0,) * nd)


def lm_forward(tokens, params, *, nhead):
    """tokens: (L, B) int32 (seq-major, like the PyTorch module). Returns (L, B, nvoc)."""
    L, B = tokens.shape
    emb_table = params["embedding"]             # sqrt(D) already folded in
    D = emb_table.shape[1]
    V = params["w_dec"].shape[1]
    num_layers = params["w_qkv"].shape[0]

    # Embedding gather (XLA glue), batch-major (B, L, D) so each grid step gets
    # whole sequences; transposing the int32 token matrix is negligible.
    x3 = jnp.take(emb_table, tokens.T, axis=0)                              # (B, L, D) f32

    bt = _pick_batch_tile(B, L)
    grid = (B // bt,)

    kernel = functools.partial(fused_lm_kernel, nhead=nhead, num_layers=num_layers)
    weight_args = (
        params["w_qkv"], params["b_qkv"], params["w_o"], params["b_o"],
        params["g1"], params["b1"],
        params["w_ff1"], params["b_ff1"], params["w_ff2"], params["b_ff2"],
        params["g2"], params["b2"],
        params["w_dec"], params["b_dec"])

    logits = pl.pallas_call(
        kernel,
        out_shape=jax.ShapeDtypeStruct((L, B, V), jnp.float32),
        grid=grid,
        in_specs=[pl.BlockSpec((bt, L, D), lambda i: (i, 0, 0))]
                 + [_full_spec(w) for w in weight_args],
        # Seq-major output block: each grid step writes a disjoint batch slab.
        out_specs=pl.BlockSpec((L, bt, V), lambda i: (0, i, 0)),
        compiler_params=pltpu.CompilerParams(
            dimension_semantics=("parallel",),
            vmem_limit_bytes=32 * 1024 * 1024,
            # TODO(synk): at production sizes, re-derive vmem_limit_bytes from
            # weights + double-buffered tiles and shrink tiles for v7x (64 MiB).
        ),
    )(x3, *weight_args)
    return logits                                                            # (L, B, V)


# ----------------------------------------------------------------------------
# Deterministic parameter construction (shapes mirror the PyTorch __init__)
# ----------------------------------------------------------------------------
def make_params(key, nvoc, dim, d_ff, num_layers):
    keys = iter(jax.random.split(key, 2 + 8 * num_layers + 4))

    def u(shape, dtype=jnp.float32, s=0.1):
        return jax.random.uniform(next(keys), shape, jnp.float32, -s, s).astype(dtype)

    wdtype = jnp.bfloat16   # matmul weights stored bf16 (f32 accumulation in-kernel)
    params = {
        # encoder.weight ~ U(-0.1, 0.1); the model's `emb * sqrt(dim)` scale is
        # folded into the stored table (forward semantics unchanged).
        "embedding": u((nvoc, dim)) * jnp.float32(math.sqrt(dim)),
        "w_dec": u((nvoc, dim)).T.astype(wdtype),         # decoder.weight, stored (D, V)
        "b_dec": jnp.zeros((1, nvoc), jnp.float32),       # decoder.bias = 0
    }
    wqkv, bqkv, wo, bo, wf1_l, bf1_l, wf2_l, bf2_l = ([] for _ in range(8))
    for _ in range(num_layers):
        wqkv.append(u((dim, 3 * dim), wdtype))            # in_proj  (stored transposed)
        bqkv.append(u((1, 3 * dim)))                      # 2-D per-layer biases
        wo.append(u((dim, dim), wdtype))                  # out_proj (transposed)
        bo.append(u((1, dim)))
        wf1_l.append(u((dim, d_ff), wdtype))              # linear1  (transposed)
        bf1_l.append(u((1, d_ff)))
        wf2_l.append(u((d_ff, dim), wdtype))              # linear2  (transposed)
        bf2_l.append(u((1, dim)))
    params.update(
        w_qkv=jnp.stack(wqkv), b_qkv=jnp.stack(bqkv),
        w_o=jnp.stack(wo), b_o=jnp.stack(bo),
        w_ff1=jnp.stack(wf1_l), b_ff1=jnp.stack(bf1_l),
        w_ff2=jnp.stack(wf2_l), b_ff2=jnp.stack(bf2_l),
        g1=jnp.ones((num_layers, 1, dim), jnp.float32),
        b1=jnp.zeros((num_layers, 1, dim), jnp.float32),
        g2=jnp.ones((num_layers, 1, dim), jnp.float32),
        b2=jnp.zeros((num_layers, 1, dim), jnp.float32),
    )
    return params


if __name__ == "__main__":
    # Small, lane-aligned shapes consistent with the module (dim / d_ff / nvoc are
    # multiples of 128 so every matmul lane dim and the output are lane-dense).
    NVOC, DIM, NHEAD, NLAYERS, DFF = 256, 128, 4, 2, 256
    L, B = 16, 2

    key = jax.random.PRNGKey(0)
    pkey, tkey = jax.random.split(key)
    params = make_params(pkey, NVOC, DIM, DFF, NLAYERS)
    tokens = jax.random.randint(tkey, (L, B), 0, NVOC, dtype=jnp.int32)   # (seq, batch)

    fwd = jax.jit(functools.partial(lm_forward, nhead=NHEAD))
    out = jax.block_until_ready(fwd(tokens, params))

    assert out.shape == (L, B, NVOC), out.shape
    assert bool(jnp.all(jnp.isfinite(out)))
    print("KERNEL_OK")
</pallas_src>

<mosaic_0001>
module attributes {stable_mosaic.version = 11 : i64} {
  func.func @fused_lm_kernel(%arg0: i32, %arg1: memref<2x16x128xf32, #tpu.memory_space<vmem>>, %arg2: memref<2x128x384xbf16, #tpu.memory_space<vmem>>, %arg3: memref<2x1x384xf32, #tpu.memory_space<vmem>>, %arg4: memref<2x128x128xbf16, #tpu.memory_space<vmem>>, %arg5: memref<2x1x128xf32, #tpu.memory_space<vmem>>, %arg6: memref<2x1x128xf32, #tpu.memory_space<vmem>>, %arg7: memref<2x1x128xf32, #tpu.memory_space<vmem>>, %arg8: memref<2x128x256xbf16, #tpu.memory_space<vmem>>, %arg9: memref<2x1x256xf32, #tpu.memory_space<vmem>>, %arg10: memref<2x256x128xbf16, #tpu.memory_space<vmem>>, %arg11: memref<2x1x128xf32, #tpu.memory_space<vmem>>, %arg12: memref<2x1x128xf32, #tpu.memory_space<vmem>>, %arg13: memref<2x1x128xf32, #tpu.memory_space<vmem>>, %arg14: memref<128x256xbf16, #tpu.memory_space<vmem>>, %arg15: memref<1x256xf32, #tpu.memory_space<vmem>>, %arg16: memref<16x2x256xf32, #tpu.memory_space<vmem>>) attributes {dimension_semantics = [#tpu.dimension_semantics<parallel>], iteration_bounds = array<i64: 1>, scalar_prefetch = 0 : i64, scratch_operands = 0 : i64, tpu.core_type = #tpu.core_type<tc>, window_params = [{transform_indices = @transform_0, window_bounds = array<i64: 2, 16, 128>}, {pipeline_mode = #tpu.pipeline_mode<synchronous>, transform_indices = @transform_1, window_bounds = array<i64: 2, 128, 384>}, {pipeline_mode = #tpu.pipeline_mode<synchronous>, transform_indices = @transform_2, window_bounds = array<i64: 2, 1, 384>}, {pipeline_mode = #tpu.pipeline_mode<synchronous>, transform_indices = @transform_3, window_bounds = array<i64: 2, 128, 128>}, {pipeline_mode = #tpu.pipeline_mode<synchronous>, transform_indices = @transform_4, window_bounds = array<i64: 2, 1, 128>}, {pipeline_mode = #tpu.pipeline_mode<synchronous>, transform_indices = @transform_5, window_bounds = array<i64: 2, 1, 128>}, {pipeline_mode = #tpu.pipeline_mode<synchronous>, transform_indices = @transform_6, window_bounds = array<i64: 2, 1, 128>}, {pipeline_mode = #tpu.pipeline_mode<synchronous>, transform_indices = @transform_7, window_bounds = array<i64: 2, 128, 256>}, {pipeline_mode = #tpu.pipeline_mode<synchronous>, transform_indices = @transform_8, window_bounds = array<i64: 2, 1, 256>}, {pipeline_mode = #tpu.pipeline_mode<synchronous>, transform_indices = @transform_9, window_bounds = array<i64: 2, 256, 128>}, {pipeline_mode = #tpu.pipeline_mode<synchronous>, transform_indices = @transform_10, window_bounds = array<i64: 2, 1, 128>}, {pipeline_mode = #tpu.pipeline_mode<synchronous>, transform_indices = @transform_11, window_bounds = array<i64: 2, 1, 128>}, {pipeline_mode = #tpu.pipeline_mode<synchronous>, transform_indices = @transform_12, window_bounds = array<i64: 2, 1, 128>}, {pipeline_mode = #tpu.pipeline_mode<synchronous>, transform_indices = @transform_13, window_bounds = array<i64: 128, 256>}, {pipeline_mode = #tpu.pipeline_mode<synchronous>, transform_indices = @transform_14, window_bounds = array<i64: 1, 256>}, {transform_indices = @transform_15, window_bounds = array<i64: 16, 2, 256>}]} {
    %c0 = arith.constant 0 : index
    %c0_0 = arith.constant 0 : index
    %c0_1 = arith.constant 0 : index
    %0 = vector.load %arg1[%c0, %c0_0, %c0_1] : memref<2x16x128xf32, #tpu.memory_space<vmem>>, vector<2x16x128xf32>
    %1 = vector.shape_cast %0 : vector<2x16x128xf32> to vector<32x128xf32>
    %2 = tpu.iota {dimensions = array<i32: 1>} : vector<8x16x16xi32>
    %3 = tpu.iota {dimensions = array<i32: 2>} : vector<8x16x16xi32>
    %4 = arith.cmpi sgt, %3, %2 : vector<8x16x16xi32>
    %cst = arith.constant -1.000000e+30 : f32
    %cst_2 = arith.constant 0.000000e+00 : f32
    %5 = vector.broadcast %cst : f32 to vector<8x16x16xf32>
    %6 = vector.broadcast %cst_2 : f32 to vector<8x16x16xf32>
    %7 = arith.select %4, %5, %6 : vector<8x16x16xi1>, vector<8x16x16xf32>
    %8 = arith.truncf %1 : vector<32x128xf32> to vector<32x128xbf16>
    %c0_3 = arith.constant 0 : index
    %c0_4 = arith.constant 0 : index
    %c0_5 = arith.constant 0 : index
    %9 = vector.load %arg2[%c0_3, %c0_4, %c0_5] : memref<2x128x384xbf16, #tpu.memory_space<vmem>>, vector<1x128x384xbf16>
    %10 = vector.shape_cast %9 : vector<1x128x384xbf16> to vector<128x384xbf16>
    %cst_6 = arith.constant dense<0.000000e+00> : vector<32x384xf32>
    %11 = tpu.matmul %8, %10, %cst_6 {dimension_numbers = #tpu.dot_dimension_numbers<[1], [0], [0], [1], [0, 0, 1, 1], [], []>} : vector<32x128xbf16>, vector<128x384xbf16>, vector<32x384xf32> -> vector<32x384xf32>
    %c0_7 = arith.constant 0 : index
    %c0_8 = arith.constant 0 : index
    %c0_9 = arith.constant 0 : index
    %12 = vector.load %arg3[%c0_7, %c0_8, %c0_9] : memref<2x1x384xf32, #tpu.memory_space<vmem>>, vector<1x1x384xf32>
    %13 = vector.shape_cast %12 : vector<1x1x384xf32> to vector<1x384xf32>
    %14 = vector.broadcast %13 : vector<1x384xf32> to vector<32x384xf32>
    %15 = arith.addf %11, %14 : vector<32x384xf32>
    %16 = vector.extract_strided_slice %15 {offsets = [0, 0], sizes = [32, 128], strides = [1, 1]} : vector<32x384xf32> to vector<32x128xf32>
    %17 = arith.truncf %16 : vector<32x128xf32> to vector<32x128xbf16>
    %18 = vector.shape_cast %17 : vector<32x128xbf16> to vector<2x16x4x32xbf16>
    %19 = tpu.transpose %18, [0, 2, 1, 3] : vector<2x16x4x32xbf16> -> vector<2x4x16x32xbf16>
    %20 = vector.shape_cast %19 : vector<2x4x16x32xbf16> to vector<8x16x32xbf16>
    %21 = vector.extract_strided_slice %15 {offsets = [0, 128], sizes = [32, 128], strides = [1, 1]} : vector<32x384xf32> to vector<32x128xf32>
    %22 = arith.truncf %21 : vector<32x128xf32> to vector<32x128xbf16>
    %23 = vector.shape_cast %22 : vector<32x128xbf16> to vector<2x16x4x32xbf16>
    %24 = tpu.transpose %23, [0, 2, 1, 3] : vector<2x16x4x32xbf16> -> vector<2x4x16x32xbf16>
    %25 = vector.shape_cast %24 : vector<2x4x16x32xbf16> to vector<8x16x32xbf16>
    %26 = vector.extract_strided_slice %15 {offsets = [0, 256], sizes = [32, 128], strides = [1, 1]} : vector<32x384xf32> to vector<32x128xf32>
    %27 = arith.truncf %26 : vector<32x128xf32> to vector<32x128xbf16>
    %28 = vector.shape_cast %27 : vector<32x128xbf16> to vector<2x16x4x32xbf16>
    %29 = tpu.transpose %28, [0, 2, 1, 3] : vector<2x16x4x32xbf16> -> vector<2x4x16x32xbf16>
    %30 = vector.shape_cast %29 : vector<2x4x16x32xbf16> to vector<8x16x32xbf16>
    "tpu.trace_start"() <{level = 10 : i32, message = "gqd,gkd->gqk"}> : () -> ()
    %cst_10 = arith.constant dense<0.000000e+00> : vector<8x16x16xf32>
    %31 = tpu.matmul %20, %25, %cst_10 {dimension_numbers = #tpu.dot_dimension_numbers<[2], [2], [1], [1], [0, 0, 0, 1, 1, 1], [0], [0]>} : vector<8x16x32xbf16>, vector<8x16x32xbf16>, vector<8x16x16xf32> -> vector<8x16x16xf32>
    "tpu.trace_stop"() : () -> ()
    %cst_11 = arith.constant 0.176776692 : f32
    %32 = vector.broadcast %cst_11 : f32 to vector<8x16x16xf32>
    %33 = arith.mulf %31, %32 : vector<8x16x16xf32>
    %34 = arith.addf %33, %7 : vector<8x16x16xf32>
    %cst_12 = arith.constant dense<0xFF800000> : vector<8x16xf32>
    %35 = vector.multi_reduction <maximumf>, %34, %cst_12 [2] : vector<8x16x16xf32> to vector<8x16xf32>
    %36 = vector.shape_cast %35 : vector<8x16xf32> to vector<8x16x1xf32>
    %37 = vector.broadcast %36 : vector<8x16x1xf32> to vector<8x16x16xf32>
    %38 = arith.subf %34, %37 : vector<8x16x16xf32>
    %39 = math.exp %38 : vector<8x16x16xf32>
    %cst_13 = arith.constant dense<0.000000e+00> : vector<8x16xf32>
    %40 = vector.multi_reduction <add>, %39, %cst_13 [2] : vector<8x16x16xf32> to vector<8x16xf32>
    %41 = vector.shape_cast %40 : vector<8x16xf32> to vector<8x16x1xf32>
    %42 = vector.broadcast %41 : vector<8x16x1xf32> to vector<8x16x16xf32>
    %43 = arith.divf %39, %42 : vector<8x16x16xf32>
    %44 = arith.truncf %43 : vector<8x16x16xf32> to vector<8x16x16xbf16>
    "tpu.trace_start"() <{level = 10 : i32, message = "gqk,gkd->gqd"}> : () -> ()
    %cst_14 = arith.constant dense<0.000000e+00> : vector<8x16x32xf32>
    %45 = tpu.matmul %44, %30, %cst_14 {dimension_numbers = #tpu.dot_dimension_numbers<[2], [1], [1], [2], [0, 0, 0, 1, 1, 2], [0], [0]>} : vector<8x16x16xbf16>, vector<8x16x32xbf16>, vector<8x16x32xf32> -> vector<8x16x32xf32>
    "tpu.trace_stop"() : () -> ()
    %46 = vector.shape_cast %45 : vector<8x16x32xf32> to vector<2x4x16x32xf32>
    %47 = tpu.transpose %46, [0, 2, 1, 3] : vector<2x4x16x32xf32> -> vector<2x16x4x32xf32>
    %48 = vector.shape_cast %47 : vector<2x16x4x32xf32> to vector<32x128xf32>
    %49 = arith.truncf %48 : vector<32x128xf32> to vector<32x128xbf16>
    %c0_15 = arith.constant 0 : index
    %c0_16 = arith.constant 0 : index
    %c0_17 = arith.constant 0 : index
    %50 = vector.load %arg4[%c0_15, %c0_16, %c0_17] : memref<2x128x128xbf16, #tpu.memory_space<vmem>>, vector<1x128x128xbf16>
    %51 = vector.shape_cast %50 : vector<1x128x128xbf16> to vector<128x128xbf16>
    %cst_18 = arith.constant dense<0.000000e+00> : vector<32x128xf32>
    %52 = tpu.matmul %49, %51, %cst_18 {dimension_numbers = #tpu.dot_dimension_numbers<[1], [0], [0], [1], [0, 0, 1, 1], [], []>} : vector<32x128xbf16>, vector<128x128xbf16>, vector<32x128xf32> -> vector<32x128xf32>
    %c0_19 = arith.constant 0 : index
    %c0_20 = arith.constant 0 : index
    %c0_21 = arith.constant 0 : index
    %53 = vector.load %arg5[%c0_19, %c0_20, %c0_21] : memref<2x1x128xf32, #tpu.memory_space<vmem>>, vector<1x1x128xf32>
    %54 = vector.shape_cast %53 : vector<1x1x128xf32> to vector<1x128xf32>
    %55 = vector.broadcast %54 : vector<1x128xf32> to vector<32x128xf32>
    %56 = arith.addf %52, %55 : vector<32x128xf32>
    %57 = arith.addf %1, %56 : vector<32x128xf32>
    %c0_22 = arith.constant 0 : index
    %c0_23 = arith.constant 0 : index
    %c0_24 = arith.constant 0 : index
    %58 = vector.load %arg6[%c0_22, %c0_23, %c0_24] : memref<2x1x128xf32, #tpu.memory_space<vmem>>, vector<1x1x128xf32>
    %59 = vector.shape_cast %58 : vector<1x1x128xf32> to vector<1x128xf32>
    %c0_25 = arith.constant 0 : index
    %c0_26 = arith.constant 0 : index
    %c0_27 = arith.constant 0 : index
    %60 = vector.load %arg7[%c0_25, %c0_26, %c0_27] : memref<2x1x128xf32, #tpu.memory_space<vmem>>, vector<1x1x128xf32>
    %61 = vector.shape_cast %60 : vector<1x1x128xf32> to vector<1x128xf32>
    %cst_28 = arith.constant dense<0.000000e+00> : vector<32xf32>
    %62 = vector.multi_reduction <add>, %57, %cst_28 [1] : vector<32x128xf32> to vector<32xf32>
    %63 = vector.shape_cast %62 : vector<32xf32> to vector<32x1xf32>
    %cst_29 = arith.constant 1.280000e+02 : f32
    %64 = vector.broadcast %cst_29 : f32 to vector<32x1xf32>
    %65 = arith.divf %63, %64 : vector<32x1xf32>
    %66 = vector.broadcast %65 : vector<32x1xf32> to vector<32x128xf32>
    %67 = arith.subf %57, %66 : vector<32x128xf32>
    %68 = arith.mulf %67, %67 : vector<32x128xf32>
    %cst_30 = arith.constant dense<0.000000e+00> : vector<32xf32>
    %69 = vector.multi_reduction <add>, %68, %cst_30 [1] : vector<32x128xf32> to vector<32xf32>
    %70 = vector.shape_cast %69 : vector<32xf32> to vector<32x1xf32>
    %cst_31 = arith.constant 1.280000e+02 : f32
    %71 = vector.broadcast %cst_31 : f32 to vector<32x1xf32>
    %72 = arith.divf %70, %71 : vector<32x1xf32>
    %73 = vector.broadcast %65 : vector<32x1xf32> to vector<32x128xf32>
    %74 = arith.subf %57, %73 : vector<32x128xf32>
    %cst_32 = arith.constant 9.99999974E-6 : f32
    %75 = vector.broadcast %cst_32 : f32 to vector<32x1xf32>
    %76 = arith.addf %72, %75 : vector<32x1xf32>
    %77 = math.rsqrt %76 : vector<32x1xf32>
    %78 = vector.broadcast %77 : vector<32x1xf32> to vector<32x128xf32>
    %79 = arith.mulf %74, %78 : vector<32x128xf32>
    %80 = vector.broadcast %59 : vector<1x128xf32> to vector<32x128xf32>
    %81 = arith.mulf %79, %80 : vector<32x128xf32>
    %82 = vector.broadcast %61 : vector<1x128xf32> to vector<32x128xf32>
    %83 = arith.addf %81, %82 : vector<32x128xf32>
    %84 = arith.truncf %83 : vector<32x128xf32> to vector<32x128xbf16>
    %c0_33 = arith.constant 0 : index
    %c0_34 = arith.constant 0 : index
    %c0_35 = arith.constant 0 : index
    %85 = vector.load %arg8[%c0_33, %c0_34, %c0_35] : memref<2x128x256xbf16, #tpu.memory_space<vmem>>, vector<1x128x256xbf16>
    %86 = vector.shape_cast %85 : vector<1x128x256xbf16> to vector<128x256xbf16>
    %cst_36 = arith.constant dense<0.000000e+00> : vector<32x256xf32>
    %87 = tpu.matmul %84, %86, %cst_36 {dimension_numbers = #tpu.dot_dimension_numbers<[1], [0], [0], [1], [0, 0, 1, 1], [], []>} : vector<32x128xbf16>, vector<128x256xbf16>, vector<32x256xf32> -> vector<32x256xf32>
    %c0_37 = arith.constant 0 : index
    %c0_38 = arith.constant 0 : index
    %c0_39 = arith.constant 0 : index
    %88 = vector.load %arg9[%c0_37, %c0_38, %c0_39] : memref<2x1x256xf32, #tpu.memory_space<vmem>>, vector<1x1x256xf32>
    %89 = vector.shape_cast %88 : vector<1x1x256xf32> to vector<1x256xf32>
    %90 = vector.broadcast %89 : vector<1x256xf32> to vector<32x256xf32>
    %91 = arith.addf %87, %90 : vector<32x256xf32>
    %cst_40 = arith.constant 0.000000e+00 : f32
    %92 = vector.broadcast %cst_40 : f32 to vector<32x256xf32>
    %93 = arith.maximumf %91, %92 : vector<32x256xf32>
    %94 = arith.truncf %93 : vector<32x256xf32> to vector<32x256xbf16>
    %c0_41 = arith.constant 0 : index
    %c0_42 = arith.constant 0 : index
    %c0_43 = arith.constant 0 : index
    %95 = vector.load %arg10[%c0_41, %c0_42, %c0_43] : memref<2x256x128xbf16, #tpu.memory_space<vmem>>, vector<1x256x128xbf16>
    %96 = vector.shape_cast %95 : vector<1x256x128xbf16> to vector<256x128xbf16>
    %cst_44 = arith.constant dense<0.000000e+00> : vector<32x128xf32>
    %97 = tpu.matmul %94, %96, %cst_44 {dimension_numbers = #tpu.dot_dimension_numbers<[1], [0], [0], [1], [0, 0, 1, 1], [], []>} : vector<32x256xbf16>, vector<256x128xbf16>, vector<32x128xf32> -> vector<32x128xf32>
    %c0_45 = arith.constant 0 : index
    %c0_46 = arith.constant 0 : index
    %c0_47 = arith.constant 0 : index
    %98 = vector.load %arg11[%c0_45, %c0_46, %c0_47] : memref<2x1x128xf32, #tpu.memory_space<vmem>>, vector<1x1x128xf32>
    %99 = vector.shape_cast %98 : vector<1x1x128xf32> to vector<1x128xf32>
    %100 = vector.broadcast %99 : vector<1x128xf32> to vector<32x128xf32>
    %101 = arith.addf %97, %100 : vector<32x128xf32>
    %102 = arith.addf %83, %101 : vector<32x128xf32>
    %c0_48 = arith.constant 0 : index
    %c0_49 = arith.constant 0 : index
    %c0_50 = arith.constant 0 : index
    %103 = vector.load %arg12[%c0_48, %c0_49, %c0_50] : memref<2x1x128xf32, #tpu.memory_space<vmem>>, vector<1x1x128xf32>
    %104 = vector.shape_cast %103 : vector<1x1x128xf32> to vector<1x128xf32>
    %c0_51 = arith.constant 0 : index
    %c0_52 = arith.constant 0 : index
    %c0_53 = arith.constant 0 : index
    %105 = vector.load %arg13[%c0_51, %c0_52, %c0_53] : memref<2x1x128xf32, #tpu.memory_space<vmem>>, vector<1x1x128xf32>
    %106 = vector.shape_cast %105 : vector<1x1x128xf32> to vector<1x128xf32>
    %cst_54 = arith.constant dense<0.000000e+00> : vector<32xf32>
    %107 = vector.multi_reduction <add>, %102, %cst_54 [1] : vector<32x128xf32> to vector<32xf32>
    %108 = vector.shape_cast %107 : vector<32xf32> to vector<32x1xf32>
    %cst_55 = arith.constant 1.280000e+02 : f32
    %109 = vector.broadcast %cst_55 : f32 to vector<32x1xf32>
    %110 = arith.divf %108, %109 : vector<32x1xf32>
    %111 = vector.broadcast %110 : vector<32x1xf32> to vector<32x128xf32>
    %112 = arith.subf %102, %111 : vector<32x128xf32>
    %113 = arith.mulf %112, %112 : vector<32x128xf32>
    %cst_56 = arith.constant dense<0.000000e+00> : vector<32xf32>
    %114 = vector.multi_reduction <add>, %113, %cst_56 [1] : vector<32x128xf32> to vector<32xf32>
    %115 = vector.shape_cast %114 : vector<32xf32> to vector<32x1xf32>
    %cst_57 = arith.constant 1.280000e+02 : f32
    %116 = vector.broadcast %cst_57 : f32 to vector<32x1xf32>
    %117 = arith.divf %115, %116 : vector<32x1xf32>
    %118 = vector.broadcast %110 : vector<32x1xf32> to vector<32x128xf32>
    %119 = arith.subf %102, %118 : vector<32x128xf32>
    %cst_58 = arith.constant 9.99999974E-6 : f32
    %120 = vector.broadcast %cst_58 : f32 to vector<32x1xf32>
    %121 = arith.addf %117, %120 : vector<32x1xf32>
    %122 = math.rsqrt %121 : vector<32x1xf32>
    %123 = vector.broadcast %122 : vector<32x1xf32> to vector<32x128xf32>
    %124 = arith.mulf %119, %123 : vector<32x128xf32>
    %125 = vector.broadcast %104 : vector<1x128xf32> to vector<32x128xf32>
    %126 = arith.mulf %124, %125 : vector<32x128xf32>
    %127 = vector.broadcast %106 : vector<1x128xf32> to vector<32x128xf32>
    %128 = arith.addf %126, %127 : vector<32x128xf32>
    %129 = arith.truncf %128 : vector<32x128xf32> to vector<32x128xbf16>
    %c1 = arith.constant 1 : index
    %c0_59 = arith.constant 0 : index
    %c0_60 = arith.constant 0 : index
    %130 = vector.load %arg2[%c1, %c0_59, %c0_60] : memref<2x128x384xbf16, #tpu.memory_space<vmem>>, vector<1x128x384xbf16>
    %131 = vector.shape_cast %130 : vector<1x128x384xbf16> to vector<128x384xbf16>
    %cst_61 = arith.constant dense<0.000000e+00> : vector<32x384xf32>
    %132 = tpu.matmul %129, %131, %cst_61 {dimension_numbers = #tpu.dot_dimension_numbers<[1], [0], [0], [1], [0, 0, 1, 1], [], []>} : vector<32x128xbf16>, vector<128x384xbf16>, vector<32x384xf32> -> vector<32x384xf32>
    %c1_62 = arith.constant 1 : index
    %c0_63 = arith.constant 0 : index
    %c0_64 = arith.constant 0 : index
    %133 = vector.load %arg3[%c1_62, %c0_63, %c0_64] : memref<2x1x384xf32, #tpu.memory_space<vmem>>, vector<1x1x384xf32>
    %134 = vector.shape_cast %133 : vector<1x1x384xf32> to vector<1x384xf32>
    %135 = vector.broadcast %134 : vector<1x384xf32> to vector<32x384xf32>
    %136 = arith.addf %132, %135 : vector<32x384xf32>
    %137 = vector.extract_strided_slice %136 {offsets = [0, 0], sizes = [32, 128], strides = [1, 1]} : vector<32x384xf32> to vector<32x128xf32>
    %138 = arith.truncf %137 : vector<32x128xf32> to vector<32x128xbf16>
    %139 = vector.shape_cast %138 : vector<32x128xbf16> to vector<2x16x4x32xbf16>
    %140 = tpu.transpose %139, [0, 2, 1, 3] : vector<2x16x4x32xbf16> -> vector<2x4x16x32xbf16>
    %141 = vector.shape_cast %140 : vector<2x4x16x32xbf16> to vector<8x16x32xbf16>
    %142 = vector.extract_strided_slice %136 {offsets = [0, 128], sizes = [32, 128], strides = [1, 1]} : vector<32x384xf32> to vector<32x128xf32>
    %143 = arith.truncf %142 : vector<32x128xf32> to vector<32x128xbf16>
    %144 = vector.shape_cast %143 : vector<32x128xbf16> to vector<2x16x4x32xbf16>
    %145 = tpu.transpose %144, [0, 2, 1, 3] : vector<2x16x4x32xbf16> -> vector<2x4x16x32xbf16>
    %146 = vector.shape_cast %145 : vector<2x4x16x32xbf16> to vector<8x16x32xbf16>
    %147 = vector.extract_strided_slice %136 {offsets = [0, 256], sizes = [32, 128], strides = [1, 1]} : vector<32x384xf32> to vector<32x128xf32>
    %148 = arith.truncf %147 : vector<32x128xf32> to vector<32x128xbf16>
    %149 = vector.shape_cast %148 : vector<32x128xbf16> to vector<2x16x4x32xbf16>
    %150 = tpu.transpose %149, [0, 2, 1, 3] : vector<2x16x4x32xbf16> -> vector<2x4x16x32xbf16>
    %151 = vector.shape_cast %150 : vector<2x4x16x32xbf16> to vector<8x16x32xbf16>
    "tpu.trace_start"() <{level = 10 : i32, message = "gqd,gkd->gqk"}> : () -> ()
    %cst_65 = arith.constant dense<0.000000e+00> : vector<8x16x16xf32>
    %152 = tpu.matmul %141, %146, %cst_65 {dimension_numbers = #tpu.dot_dimension_numbers<[2], [2], [1], [1], [0, 0, 0, 1, 1, 1], [0], [0]>} : vector<8x16x32xbf16>, vector<8x16x32xbf16>, vector<8x16x16xf32> -> vector<8x16x16xf32>
    "tpu.trace_stop"() : () -> ()
    %cst_66 = arith.constant 0.176776692 : f32
    %153 = vector.broadcast %cst_66 : f32 to vector<8x16x16xf32>
    %154 = arith.mulf %152, %153 : vector<8x16x16xf32>
    %155 = arith.addf %154, %7 : vector<8x16x16xf32>
    %cst_67 = arith.constant dense<0xFF800000> : vector<8x16xf32>
    %156 = vector.multi_reduction <maximumf>, %155, %cst_67 [2] : vector<8x16x16xf32> to vector<8x16xf32>
    %157 = vector.shape_cast %156 : vector<8x16xf32> to vector<8x16x1xf32>
    %158 = vector.broadcast %157 : vector<8x16x1xf32> to vector<8x16x16xf32>
    %159 = arith.subf %155, %158 : vector<8x16x16xf32>
    %160 = math.exp %159 : vector<8x16x16xf32>
    %cst_68 = arith.constant dense<0.000000e+00> : vector<8x16xf32>
    %161 = vector.multi_reduction <add>, %160, %cst_68 [2] : vector<8x16x16xf32> to vector<8x16xf32>
    %162 = vector.shape_cast %161 : vector<8x16xf32> to vector<8x16x1xf32>
    %163 = vector.broadcast %162 : vector<8x16x1xf32> to vector<8x16x16xf32>
    %164 = arith.divf %160, %163 : vector<8x16x16xf32>
    %165 = arith.truncf %164 : vector<8x16x16xf32> to vector<8x16x16xbf16>
    "tpu.trace_start"() <{level = 10 : i32, message = "gqk,gkd->gqd"}> : () -> ()
    %cst_69 = arith.constant dense<0.000000e+00> : vector<8x16x32xf32>
    %166 = tpu.matmul %165, %151, %cst_69 {dimension_numbers = #tpu.dot_dimension_numbers<[2], [1], [1], [2], [0, 0, 0, 1, 1, 2], [0], [0]>} : vector<8x16x16xbf16>, vector<8x16x32xbf16>, vector<8x16x32xf32> -> vector<8x16x32xf32>
    "tpu.trace_stop"() : () -> ()
    %167 = vector.shape_cast %166 : vector<8x16x32xf32> to vector<2x4x16x32xf32>
    %168 = tpu.transpose %167, [0, 2, 1, 3] : vector<2x4x16x32xf32> -> vector<2x16x4x32xf32>
    %169 = vector.shape_cast %168 : vector<2x16x4x32xf32> to vector<32x128xf32>
    %170 = arith.truncf %169 : vector<32x128xf32> to vector<32x128xbf16>
    %c1_70 = arith.constant 1 : index
    %c0_71 = arith.constant 0 : index
    %c0_72 = arith.constant 0 : index
    %171 = vector.load %arg4[%c1_70, %c0_71, %c0_72] : memref<2x128x128xbf16, #tpu.memory_space<vmem>>, vector<1x128x128xbf16>
    %172 = vector.shape_cast %171 : vector<1x128x128xbf16> to vector<128x128xbf16>
    %cst_73 = arith.constant dense<0.000000e+00> : vector<32x128xf32>
    %173 = tpu.matmul %170, %172, %cst_73 {dimension_numbers = #tpu.dot_dimension_numbers<[1], [0], [0], [1], [0, 0, 1, 1], [], []>} : vector<32x128xbf16>, vector<128x128xbf16>, vector<32x128xf32> -> vector<32x128xf32>
    %c1_74 = arith.constant 1 : index
    %c0_75 = arith.constant 0 : index
    %c0_76 = arith.constant 0 : index
    %174 = vector.load %arg5[%c1_74, %c0_75, %c0_76] : memref<2x1x128xf32, #tpu.memory_space<vmem>>, vector<1x1x128xf32>
    %175 = vector.shape_cast %174 : vector<1x1x128xf32> to vector<1x128xf32>
    %176 = vector.broadcast %175 : vector<1x128xf32> to vector<32x128xf32>
    %177 = arith.addf %173, %176 : vector<32x128xf32>
    %178 = arith.addf %128, %177 : vector<32x128xf32>
    %c1_77 = arith.constant 1 : index
    %c0_78 = arith.constant 0 : index
    %c0_79 = arith.constant 0 : index
    %179 = vector.load %arg6[%c1_77, %c0_78, %c0_79] : memref<2x1x128xf32, #tpu.memory_space<vmem>>, vector<1x1x128xf32>
    %180 = vector.shape_cast %179 : vector<1x1x128xf32> to vector<1x128xf32>
    %c1_80 = arith.constant 1 : index
    %c0_81 = arith.constant 0 : index
    %c0_82 = arith.constant 0 : index
    %181 = vector.load %arg7[%c1_80, %c0_81, %c0_82] : memref<2x1x128xf32, #tpu.memory_space<vmem>>, vector<1x1x128xf32>
    %182 = vector.shape_cast %181 : vector<1x1x128xf32> to vector<1x128xf32>
    %cst_83 = arith.constant dense<0.000000e+00> : vector<32xf32>
    %183 = vector.multi_reduction <add>, %178, %cst_83 [1] : vector<32x128xf32> to vector<32xf32>
    %184 = vector.shape_cast %183 : vector<32xf32> to vector<32x1xf32>
    %cst_84 = arith.constant 1.280000e+02 : f32
    %185 = vector.broadcast %cst_84 : f32 to vector<32x1xf32>
    %186 = arith.divf %184, %185 : vector<32x1xf32>
    %187 = vector.broadcast %186 : vector<32x1xf32> to vector<32x128xf32>
    %188 = arith.subf %178, %187 : vector<32x128xf32>
    %189 = arith.mulf %188, %188 : vector<32x128xf32>
    %cst_85 = arith.constant dense<0.000000e+00> : vector<32xf32>
    %190 = vector.multi_reduction <add>, %189, %cst_85 [1] : vector<32x128xf32> to vector<32xf32>
    %191 = vector.shape_cast %190 : vector<32xf32> to vector<32x1xf32>
    %cst_86 = arith.constant 1.280000e+02 : f32
    %192 = vector.broadcast %cst_86 : f32 to vector<32x1xf32>
    %193 = arith.divf %191, %192 : vector<32x1xf32>
    %194 = vector.broadcast %186 : vector<32x1xf32> to vector<32x128xf32>
    %195 = arith.subf %178, %194 : vector<32x128xf32>
    %cst_87 = arith.constant 9.99999974E-6 : f32
    %196 = vector.broadcast %cst_87 : f32 to vector<32x1xf32>
    %197 = arith.addf %193, %196 : vector<32x1xf32>
    %198 = math.rsqrt %197 : vector<32x1xf32>
    %199 = vector.broadcast %198 : vector<32x1xf32> to vector<32x128xf32>
    %200 = arith.mulf %195, %199 : vector<32x128xf32>
    %201 = vector.broadcast %180 : vector<1x128xf32> to vector<32x128xf32>
    %202 = arith.mulf %200, %201 : vector<32x128xf32>
    %203 = vector.broadcast %182 : vector<1x128xf32> to vector<32x128xf32>
    %204 = arith.addf %202, %203 : vector<32x128xf32>
    %205 = arith.truncf %204 : vector<32x128xf32> to vector<32x128xbf16>
    %c1_88 = arith.constant 1 : index
    %c0_89 = arith.constant 0 : index
    %c0_90 = arith.constant 0 : index
    %206 = vector.load %arg8[%c1_88, %c0_89, %c0_90] : memref<2x128x256xbf16, #tpu.memory_space<vmem>>, vector<1x128x256xbf16>
    %207 = vector.shape_cast %206 : vector<1x128x256xbf16> to vector<128x256xbf16>
    %cst_91 = arith.constant dense<0.000000e+00> : vector<32x256xf32>
    %208 = tpu.matmul %205, %207, %cst_91 {dimension_numbers = #tpu.dot_dimension_numbers<[1], [0], [0], [1], [0, 0, 1, 1], [], []>} : vector<32x128xbf16>, vector<128x256xbf16>, vector<32x256xf32> -> vector<32x256xf32>
    %c1_92 = arith.constant 1 : index
    %c0_93 = arith.constant 0 : index
    %c0_94 = arith.constant 0 : index
    %209 = vector.load %arg9[%c1_92, %c0_93, %c0_94] : memref<2x1x256xf32, #tpu.memory_space<vmem>>, vector<1x1x256xf32>
    %210 = vector.shape_cast %209 : vector<1x1x256xf32> to vector<1x256xf32>
    %211 = vector.broadcast %210 : vector<1x256xf32> to vector<32x256xf32>
    %212 = arith.addf %208, %211 : vector<32x256xf32>
    %cst_95 = arith.constant 0.000000e+00 : f32
    %213 = vector.broadcast %cst_95 : f32 to vector<32x256xf32>
    %214 = arith.maximumf %212, %213 : vector<32x256xf32>
    %215 = arith.truncf %214 : vector<32x256xf32> to vector<32x256xbf16>
    %c1_96 = arith.constant 1 : index
    %c0_97 = arith.constant 0 : index
    %c0_98 = arith.constant 0 : index
    %216 = vector.load %arg10[%c1_96, %c0_97, %c0_98] : memref<2x256x128xbf16, #tpu.memory_space<vmem>>, vector<1x256x128xbf16>
    %217 = vector.shape_cast %216 : vector<1x256x128xbf16> to vector<256x128xbf16>
    %cst_99 = arith.constant dense<0.000000e+00> : vector<32x128xf32>
    %218 = tpu.matmul %215, %217, %cst_99 {dimension_numbers = #tpu.dot_dimension_numbers<[1], [0], [0], [1], [0, 0, 1, 1], [], []>} : vector<32x256xbf16>, vector<256x128xbf16>, vector<32x128xf32> -> vector<32x128xf32>
    %c1_100 = arith.constant 1 : index
    %c0_101 = arith.constant 0 : index
    %c0_102 = arith.constant 0 : index
    %219 = vector.load %arg11[%c1_100, %c0_101, %c0_102] : memref<2x1x128xf32, #tpu.memory_space<vmem>>, vector<1x1x128xf32>
    %220 = vector.shape_cast %219 : vector<1x1x128xf32> to vector<1x128xf32>
    %221 = vector.broadcast %220 : vector<1x128xf32> to vector<32x128xf32>
    %222 = arith.addf %218, %221 : vector<32x128xf32>
    %223 = arith.addf %204, %222 : vector<32x128xf32>
    %c1_103 = arith.constant 1 : index
    %c0_104 = arith.constant 0 : index
    %c0_105 = arith.constant 0 : index
    %224 = vector.load %arg12[%c1_103, %c0_104, %c0_105] : memref<2x1x128xf32, #tpu.memory_space<vmem>>, vector<1x1x128xf32>
    %225 = vector.shape_cast %224 : vector<1x1x128xf32> to vector<1x128xf32>
    %c1_106 = arith.constant 1 : index
    %c0_107 = arith.constant 0 : index
    %c0_108 = arith.constant 0 : index
    %226 = vector.load %arg13[%c1_106, %c0_107, %c0_108] : memref<2x1x128xf32, #tpu.memory_space<vmem>>, vector<1x1x128xf32>
    %227 = vector.shape_cast %226 : vector<1x1x128xf32> to vector<1x128xf32>
    %cst_109 = arith.constant dense<0.000000e+00> : vector<32xf32>
    %228 = vector.multi_reduction <add>, %223, %cst_109 [1] : vector<32x128xf32> to vector<32xf32>
    %229 = vector.shape_cast %228 : vector<32xf32> to vector<32x1xf32>
    %cst_110 = arith.constant 1.280000e+02 : f32
    %230 = vector.broadcast %cst_110 : f32 to vector<32x1xf32>
    %231 = arith.divf %229, %230 : vector<32x1xf32>
    %232 = vector.broadcast %231 : vector<32x1xf32> to vector<32x128xf32>
    %233 = arith.subf %223, %232 : vector<32x128xf32>
    %234 = arith.mulf %233, %233 : vector<32x128xf32>
    %cst_111 = arith.constant dense<0.000000e+00> : vector<32xf32>
    %235 = vector.multi_reduction <add>, %234, %cst_111 [1] : vector<32x128xf32> to vector<32xf32>
    %236 = vector.shape_cast %235 : vector<32xf32> to vector<32x1xf32>
    %cst_112 = arith.constant 1.280000e+02 : f32
    %237 = vector.broadcast %cst_112 : f32 to vector<32x1xf32>
    %238 = arith.divf %236, %237 : vector<32x1xf32>
    %239 = vector.broadcast %231 : vector<32x1xf32> to vector<32x128xf32>
    %240 = arith.subf %223, %239 : vector<32x128xf32>
    %cst_113 = arith.constant 9.99999974E-6 : f32
    %241 = vector.broadcast %cst_113 : f32 to vector<32x1xf32>
    %242 = arith.addf %238, %241 : vector<32x1xf32>
    %243 = math.rsqrt %242 : vector<32x1xf32>
    %244 = vector.broadcast %243 : vector<32x1xf32> to vector<32x128xf32>
    %245 = arith.mulf %240, %244 : vector<32x128xf32>
    %246 = vector.broadcast %225 : vector<1x128xf32> to vector<32x128xf32>
    %247 = arith.mulf %245, %246 : vector<32x128xf32>
    %248 = vector.broadcast %227 : vector<1x128xf32> to vector<32x128xf32>
    %249 = arith.addf %247, %248 : vector<32x128xf32>
    %250 = arith.truncf %249 : vector<32x128xf32> to vector<32x128xbf16>
    %c0_114 = arith.constant 0 : index
    %c0_115 = arith.constant 0 : index
    %251 = vector.load %arg14[%c0_114, %c0_115] : memref<128x256xbf16, #tpu.memory_space<vmem>>, vector<128x256xbf16>
    %cst_116 = arith.constant dense<0.000000e+00> : vector<32x256xf32>
    %252 = tpu.matmul %250, %251, %cst_116 {dimension_numbers = #tpu.dot_dimension_numbers<[1], [0], [0], [1], [0, 0, 1, 1], [], []>} : vector<32x128xbf16>, vector<128x256xbf16>, vector<32x256xf32> -> vector<32x256xf32>
    %c0_117 = arith.constant 0 : index
    %c0_118 = arith.constant 0 : index
    %253 = vector.load %arg15[%c0_117, %c0_118] : memref<1x256xf32, #tpu.memory_space<vmem>>, vector<1x256xf32>
    %254 = vector.broadcast %253 : vector<1x256xf32> to vector<32x256xf32>
    %255 = arith.addf %252, %254 : vector<32x256xf32>
    %256 = vector.shape_cast %255 : vector<32x256xf32> to vector<2x16x256xf32>
    %257 = tpu.transpose %256, [1, 0, 2] : vector<2x16x256xf32> -> vector<16x2x256xf32>
    %c0_119 = arith.constant 0 : index
    %c0_120 = arith.constant 0 : index
    %c0_121 = arith.constant 0 : index
    %258 = vector.load %arg16[%c0_119, %c0_120, %c0_121] : memref<16x2x256xf32, #tpu.memory_space<vmem>>, vector<16x2x256xf32>
    tpu.vector_store %arg16[%c0_119, %c0_120, %c0_121], %257 {strides = array<i32>} : memref<16x2x256xf32, #tpu.memory_space<vmem>>, vector<16x2x256xf32>,
    return
  }
  func.func @transform_0(%arg0: i32) -> (i32, i32, i32) {
    %c0_i32 = arith.constant 0 : i32
    %c0_i32_0 = arith.constant 0 : i32
    %c0_i32_1 = arith.constant 0 : i32
    return %arg0, %c0_i32, %c0_i32_0 : i32, i32, i32
  }
  func.func @transform_1(%arg0: i32) -> (i32, i32, i32) {
    %c0_i32 = arith.constant 0 : i32
    %c0_i32_0 = arith.constant 0 : i32
    %c0_i32_1 = arith.constant 0 : i32
    %c0_i32_2 = arith.constant 0 : i32
    return %c0_i32, %c0_i32_0, %c0_i32_1 : i32, i32, i32
  }
  func.func @transform_2(%arg0: i32) -> (i32, i32, i32) {
    %c0_i32 = arith.constant 0 : i32
    %c0_i32_0 = arith.constant 0 : i32
    %c0_i32_1 = arith.constant 0 : i32
    %c0_i32_2 = arith.constant 0 : i32
    return %c0_i32, %c0_i32_0, %c0_i32_1 : i32, i32, i32
  }
  func.func @transform_3(%arg0: i32) -> (i32, i32, i32) {
    %c0_i32 = arith.constant 0 : i32
    %c0_i32_0 = arith.constant 0 : i32
    %c0_i32_1 = arith.constant 0 : i32
    %c0_i32_2 = arith.constant 0 : i32
    return %c0_i32, %c0_i32_0, %c0_i32_1 : i32, i32, i32
  }
  func.func @transform_4(%arg0: i32) -> (i32, i32, i32) {
    %c0_i32 = arith.constant 0 : i32
    %c0_i32_0 = arith.constant 0 : i32
    %c0_i32_1 = arith.constant 0 : i32
    %c0_i32_2 = arith.constant 0 : i32
    return %c0_i32, %c0_i32_0, %c0_i32_1 : i32, i32, i32
  }
  func.func @transform_5(%arg0: i32) -> (i32, i32, i32) {
    %c0_i32 = arith.constant 0 : i32
    %c0_i32_0 = arith.constant 0 : i32
    %c0_i32_1 = arith.constant 0 : i32
    %c0_i32_2 = arith.constant 0 : i32
    return %c0_i32, %c0_i32_0, %c0_i32_1 : i32, i32, i32
  }
  func.func @transform_6(%arg0: i32) -> (i32, i32, i32) {
    %c0_i32 = arith.constant 0 : i32
    %c0_i32_0 = arith.constant 0 : i32
    %c0_i32_1 = arith.constant 0 : i32
    %c0_i32_2 = arith.constant 0 : i32
    return %c0_i32, %c0_i32_0, %c0_i32_1 : i32, i32, i32
  }
  func.func @transform_7(%arg0: i32) -> (i32, i32, i32) {
    %c0_i32 = arith.constant 0 : i32
    %c0_i32_0 = arith.constant 0 : i32
    %c0_i32_1 = arith.constant 0 : i32
    %c0_i32_2 = arith.constant 0 : i32
    return %c0_i32, %c0_i32_0, %c0_i32_1 : i32, i32, i32
  }
  func.func @transform_8(%arg0: i32) -> (i32, i32, i32) {
    %c0_i32 = arith.constant 0 : i32
    %c0_i32_0 = arith.constant 0 : i32
    %c0_i32_1 = arith.constant 0 : i32
    %c0_i32_2 = arith.constant 0 : i32
    return %c0_i32, %c0_i32_0, %c0_i32_1 : i32, i32, i32
  }
  func.func @transform_9(%arg0: i32) -> (i32, i32, i32) {
    %c0_i32 = arith.constant 0 : i32
    %c0_i32_0 = arith.constant 0 : i32
    %c0_i32_1 = arith.constant 0 : i32
    %c0_i32_2 = arith.constant 0 : i32
    return %c0_i32, %c0_i32_0, %c0_i32_1 : i32, i32, i32
  }
  func.func @transform_10(%arg0: i32) -> (i32, i32, i32) {
    %c0_i32 = arith.constant 0 : i32
    %c0_i32_0 = arith.constant 0 : i32
    %c0_i32_1 = arith.constant 0 : i32
    %c0_i32_2 = arith.constant 0 : i32
    return %c0_i32, %c0_i32_0, %c0_i32_1 : i32, i32, i32
  }
  func.func @transform_11(%arg0: i32) -> (i32, i32, i32) {
    %c0_i32 = arith.constant 0 : i32
    %c0_i32_0 = arith.constant 0 : i32
    %c0_i32_1 = arith.constant 0 : i32
    %c0_i32_2 = arith.constant 0 : i32
    return %c0_i32, %c0_i32_0, %c0_i32_1 : i32, i32, i32
  }
  func.func @transform_12(%arg0: i32) -> (i32, i32, i32) {
    %c0_i32 = arith.constant 0 : i32
    %c0_i32_0 = arith.constant 0 : i32
    %c0_i32_1 = arith.constant 0 : i32
    %c0_i32_2 = arith.constant 0 : i32
    return %c0_i32, %c0_i32_0, %c0_i32_1 : i32, i32, i32
  }
  func.func @transform_13(%arg0: i32) -> (i32, i32) {
    %c0_i32 = arith.constant 0 : i32
    %c0_i32_0 = arith.constant 0 : i32
    %c0_i32_1 = arith.constant 0 : i32
    return %c0_i32, %c0_i32_0 : i32, i32
  }
  func.func @transform_14(%arg0: i32) -> (i32, i32) {
    %c0_i32 = arith.constant 0 : i32
    %c0_i32_0 = arith.constant 0 : i32
    %c0_i32_1 = arith.constant 0 : i32
    return %c0_i32, %c0_i32_0 : i32, i32
  }
  func.func @transform_15(%arg0: i32) -> (i32, i32, i32) {
    %c0_i32 = arith.constant 0 : i32
    %c0_i32_0 = arith.constant 0 : i32
    %c0_i32_1 = arith.constant 0 : i32
    return %c0_i32, %arg0, %c0_i32_0 : i32, i32, i32
  }
}

</mosaic_0001>

<bundles_post_ra>
// kernel: lm_forward.1
= control target key start
LH: loop header
LB: loop body
LE: loop exit
PB: predicated region body
PF: predicated region fallthrough
CT: control target
= control target key end

     0   :  { %20 = vsyncpa [#allocation3], 0  ;;  %s12309_s0 = inlined_call_operand.vmem [shape: f32[2,16,128], index: 0, kind: input, shape index: {}]   ;;  %s12310_s1 = inlined_call_operand.vmem [shape: bf16[2,128,384], index: 1, kind: input, shape index: {}]   ;;  %s12311_s2 = inlined_call_operand.vmem [shape: f32[2,1,384], index: 2, kind: input, shape index: {}]   ;;  %s12312_s3 = inlined_call_operand.hbm [shape: bf16[2,128,128], index: 3, kind: input, shape index: {}]   ;;  %s12313_s4 = inlined_call_operand.vmem [shape: f32[2,1,128], index: 4, kind: input, shape index: {}]   ;;  %s12314_s5 = inlined_call_operand.vmem [shape: f32[2,1,128], index: 5, kind: input, shape index: {}]   ;;  %s12315_s6 = inlined_call_operand.vmem [shape: f32[2,1,128], index: 6, kind: input, shape index: {}]   ;;  %s12316_s7 = inlined_call_operand.hbm [shape: bf16[2,128,256], index: 7, kind: input, shape index: {}]   ;;  %s12317_s8 = inlined_call_operand.vmem [shape: f32[2,1,256], index: 8, kind: input, shape index: {}]   ;;  %s12318_s9 = inlined_call_operand.hbm [shape: bf16[2,256,128], index: 9, kind: input, shape index: {}]   ;;  %s12319_s10 = inlined_call_operand.vmem [shape: f32[2,1,128], index: 10, kind: input, shape index: {}]   ;;  %s12320_s11 = inlined_call_operand.vmem [shape: f32[2,1,128], index: 11, kind: input, shape index: {}]   ;;  %s12321_s12 = inlined_call_operand.vmem [shape: f32[2,1,128], index: 12, kind: input, shape index: {}]   ;;  %s12322_s13 = inlined_call_operand.hbm [shape: bf16[128,256], index: 13, kind: input, shape index: {}]   ;;  %s12323_s14 = inlined_call_operand.vmem [shape: f32[1,256], index: 14, kind: input, shape index: {}]   ;;  %s12324_s15 = inlined_call_operand.hbm [shape: f32[16,2,256], index: 15, kind: output, shape index: {}]  }
   0x1   :  { %21 = vsyncpa [#allocation6], 0 }
   0x2   :  { %22 = vsyncpa [#allocation9], 0 }
   0x3   :  { %23 = vsyncpa [#allocation4], 0  ;;  %s10203_s18 = smov [#allocation5]   ;;  %s10085_s22 = scalar_lea.hbm %s12316_s7, 4096 }
   0x4   :  { %s53_s19 = sshll.u32 %s10203_s18, 4  ;;  %p10086_p0 = scmp.ne.s32.totalorder %s12316_s7, %s10085_s22  ;;  %s54_s19 = int_to_ptr.vmem [resolvable:$true] %s53_s19 }
   0x5   :  { %p10089_p1 = scmp.lt.u32.totalorder %s10085_s22, %s12316_s7 }
   0x7   :  { %p10091_p2 = pnand %p10089_p1, %p10086_p0 }
   0x9   :  { %10094 = shalt.err (!%p10091_p2)
}
   0xa   :  { %s10095_s27 = scalar_lea.vmem %s54_s19, 4096  ;;  %p10100_p4 = scmp.lt.s32.totalorder %s54_s19, %s54_s19 }
   0xb   :  { %p10096_p3 = scmp.ne.s32.totalorder %s54_s19, %s10095_s27  ;;  %p10101_p5 = scmp.lt.s32.totalorder %s10095_s27, %s10095_s27 }
   0xd   :  { %p10102_p6 = por %p10101_p5, %p10100_p4 }
   0xf   :  { %p10103_p7 = pnand %p10102_p6, %p10096_p3 }
  0x11   :  { %10106 = shalt.err (!%p10103_p7)
}
  0x12   :  { %s12325_s28 = smov 128   ;;  %s12326_s29 = smov 8  }
  0x13   :  { %59 = dma.hbm_to_vmem [thread:$0]  %s12316_s7, 4096, %s54_s19, [#allocation6], %s12325_s28, %s12325_s28, %s12326_s29  }
  0x14   :  { %s10206_s17 = smov [#allocation2]   ;;  %s10107_s22 = scalar_lea.hbm %s12312_s3, 2048 }
  0x15   :  { %s35_s18 = sshll.u32 %s10206_s17, 4  ;;  %p10108_p8 = scmp.ne.s32.totalorder %s12312_s3, %s10107_s22  ;;  %s36_s18 = int_to_ptr.vmem [resolvable:$true] %s35_s18 }
  0x16   :  { %p10111_p9 = scmp.lt.u32.totalorder %s10107_s22, %s12312_s3 }
  0x18   :  { %p10113_p10 = pnand %p10111_p9, %p10108_p8 }
  0x1a   :  { %10116 = shalt.err (!%p10113_p10)
}
  0x1b   :  { %s10117_s27 = scalar_lea.vmem %s36_s18, 2048  ;;  %p10122_p12 = scmp.lt.s32.totalorder %s36_s18, %s36_s18 }
  0x1c   :  { %p10118_p11 = scmp.ne.s32.totalorder %s36_s18, %s10117_s27  ;;  %p10123_p13 = scmp.lt.s32.totalorder %s10117_s27, %s10117_s27 }
  0x1e   :  { %p10124_p0 = por %p10123_p13, %p10122_p12 }
  0x20   :  { %p10125_p1 = pnand %p10124_p0, %p10118_p11 }
  0x22   :  { %10128 = shalt.err (!%p10125_p1)
}
  0x23   :  { %s10207_s7 = smov 64   ;;  %s10208_s19 = smov 4  }
  0x24   :  { %41 = dma.hbm_to_vmem [thread:$0]  %s12312_s3, 2048, %s36_s18, [#allocation3], %s10207_s7, %s10207_s7, %s10208_s19  }
  0x25   :  { %s10209_s17 = smov [#allocation7]   ;;  %s10210_s21 = smov [#allocation8]  }
  0x26   :  { %s67_s20 = sshll.u32 %s10209_s17, 4  ;;  %s85_s22 = sshll.u32 %s10210_s21, 4  ;;  %s68_s20 = int_to_ptr.vmem [resolvable:$true] %s67_s20  ;;  %s10329_s22 = int_to_ptr.vmem [resolvable:$true] %s85_s22 }
  0x27   :  { %s10129_s25 = scalar_lea.hbm %s12318_s9, 4096 }
  0x28   :  { %p10130_p2 = scmp.ne.s32.totalorder %s12318_s9, %s10129_s25  ;;  %p10133_p3 = scmp.lt.u32.totalorder %s10129_s25, %s12318_s9 }
  0x2a   :  { %p10135_p4 = pnand %p10133_p3, %p10130_p2 }
  0x2c   :  { %10138 = shalt.err (!%p10135_p4)
}
  0x2d   :  { %s10139_s3 = scalar_lea.vmem %s68_s20, 4096  ;;  %p10144_p6 = scmp.lt.s32.totalorder %s68_s20, %s68_s20 }
  0x2e   :  { %p10140_p5 = scmp.ne.s32.totalorder %s68_s20, %s10139_s3  ;;  %p10145_p7 = scmp.lt.s32.totalorder %s10139_s3, %s10139_s3 }
  0x30   :  { %p10146_p8 = por %p10145_p7, %p10144_p6 }
  0x32   :  { %p10147_p9 = pnand %p10146_p8, %p10140_p5 }
  0x34   :  { %10150 = shalt.err (!%p10147_p9)
}
  0x35   :  { %73 = dma.hbm_to_vmem [thread:$0]  %s12318_s9, 4096, %s68_s20, [#allocation6], %s10207_s7, %s10207_s7, %s10208_s19  }
  0x36   :  { %s10151_s28 = scalar_lea.hbm %s12322_s13, 2048 }
  0x37   :  { %p10152_p10 = scmp.ne.s32.totalorder %s12322_s13, %s10151_s28  ;;  %p10155_p11 = scmp.lt.u32.totalorder %s10151_s28, %s12322_s13 }
  0x39   :  { %p10157_p12 = pnand %p10155_p11, %p10152_p10 }
  0x3b   :  { %10160 = shalt.err (!%p10157_p12)
}
  0x3c   :  { %s10161_s25 = scalar_lea.vmem %s10329_s22, 2048  ;;  %p10166_p0 = scmp.lt.s32.totalorder %s10329_s22, %s10329_s22 }
  0x3d   :  { %p10162_p13 = scmp.ne.s32.totalorder %s10329_s22, %s10161_s25  ;;  %p10167_p1 = scmp.lt.s32.totalorder %s10161_s25, %s10161_s25 }
  0x3f   :  { %p10168_p2 = por %p10167_p1, %p10166_p0 }
  0x41   :  { %p10169_p3 = pnand %p10168_p2, %p10162_p13 }
  0x43   :  { %10172 = shalt.err (!%p10169_p3)
}
  0x44   :  { %s12328_s9 = smov 8   ;;  %s12329_s20 = smov 128  }
  0x45   :  { %91 = dma.hbm_to_vmem [thread:$0]  %s12322_s13, 2048, %s10329_s22, [#allocation9], %s12329_s20, %s12329_s20, %s12328_s9  }
  0x46   :  { %10195 = dma.done.wait [#allocation3], 2048  }
  0x47   :  { %10196 = vsyncadd [#allocation3], 4294965248 }
  0x48   :  { %10197 = dma.done.wait [#allocation6], 8192  }
  0x49   :  { %10198 = vsyncadd [#allocation6], 4294959104 }
  0x4a   :  { %10199 = dma.done.wait [#allocation9], 2048  }
  0x4b   :  { %10200 = vsyncadd [#allocation9], 4294965248  ;;  %v10211_v0 = vmov 0   ;;  %v9737_v1 = vld [vmem:[%s12310_s1 + $0x4] ss:$12 sps:$4 sm:$0xff]   ;;  %v108_v10 = vld [vmem:[%s12309_s0 + $0x8] sm:$0xff]  ;;  %v111_v32 = vlaneseq }
  0x4c   :  { %331 = vmatprep.mubr.bf16.mxu0 %v10211_v0  ;;  %v9739_v2 = vld [vmem:[%s12310_s1] ss:$12 sps:$4 sm:$0xff]   ;;  %299 = vmatprep.subr.bf16.mxu0 %v9737_v1  ;;  %v9740_v3 = vld [vmem:[%s12310_s1 + $0x1c] ss:$12 sps:$4 sm:$0xff]   ;;  %v9742_v4 = vld [vmem:[%s12310_s1 + $0x18] ss:$12 sps:$4 sm:$0xff]  }
  0x4d   :  { %300 = vmatpush1.bf16.msra.mxu0 %v9739_v2  ;;  %v9743_v5 = vld [vmem:[%s12310_s1 + $0x34] ss:$12 sps:$4 sm:$0xff]   ;;  %v9745_v6 = vld [vmem:[%s12310_s1 + $0x30] ss:$12 sps:$4 sm:$0xff]   ;;  %v9746_v7 = vld [vmem:[%s12310_s1 + $0x4c] ss:$12 sps:$4 sm:$0xff]  }
  0x4e   :  { %301 = vmatprep.subr.bf16.mxu0 %v9740_v3  ;;  %v107_v8 = vld [vmem:[%s12309_s0] sm:$0xff]  ;;  %v9748_v9 = vld [vmem:[%s12310_s1 + $0x48] ss:$12 sps:$4 sm:$0xff]   ;;  %v9757_v17 = vld [vmem:[%s12310_s1 + $0x90] ss:$12 sps:$4 sm:$0xff]   ;;  %v10212_v20 = vmov 0.0  }
  0x4f   :  { %v9749_v11 = vld [vmem:[%s12310_s1 + $0x64] ss:$12 sps:$4 sm:$0xff]   ;;  %v120_v12 = vpack.c.bf16 %v108_v10, %v107_v8  ;;  %v9751_v13 = vld [vmem:[%s12310_s1 + $0x60] ss:$12 sps:$4 sm:$0xff]   ;;  %v9752_v14 = vld [vmem:[%s12310_s1 + $0x7c] ss:$12 sps:$4 sm:$0xff]  }
  0x50   :  { %v9754_v15 = vld [vmem:[%s12310_s1 + $0x78] ss:$12 sps:$4 sm:$0xff]   ;;  %v9755_v16 = vld [vmem:[%s12310_s1 + $0x94] ss:$12 sps:$4 sm:$0xff]   ;;  %v9764_v27 = vld [vmem:[%s12310_s1 + $0x50] ss:$12 sps:$4 sm:$0xff]  }
  0x51   :  { %302 = vmatpush1.bf16.msra.mxu0 %v9742_v4  ;;  %9405 = vmatprep.mubr.bf16.mxu1 %v120_v12  ;;  %v9758_v18 = vld [vmem:[%s12310_s1 + $0xac] ss:$12 sps:$4 sm:$0xff]   ;;  %v9760_v19 = vld [vmem:[%s12310_s1 + $0xa8] ss:$12 sps:$4 sm:$0xff]   ;;  %v9768_v31 = vld [vmem:[%s12310_s1 + $0xb0] ss:$12 sps:$4 sm:$0xff]  }
  0x52   :  { %303 = vmatprep.subr.bf16.mxu0 %v9743_v5  ;;  %v109_v21 = vld [vmem:[%s12309_s0 + $0x10] sm:$0xff]  ;;  %v110_v22 = vld [vmem:[%s12309_s0 + $0x18] sm:$0xff]  ;;  %v9762_v25 = vld [vmem:[%s12310_s1 + $0x20] ss:$12 sps:$4 sm:$0xff]   ;;  %v10455_v33 = vshrl.u32 %v111_v32, 7  ;;  %s10213_s28 = smov 32  }
  0x53   :  { %v121_v23 = vpack.c.bf16 %v110_v22, %v109_v21  ;;  %v9761_v24 = vld [vmem:[%s12310_s1 + $0x8] ss:$12 sps:$4 sm:$0xff]   ;;  %v9763_v26 = vld [vmem:[%s12310_s1 + $0x38] ss:$12 sps:$4 sm:$0xff]   ;;  %v9766_v29 = vld [vmem:[%s12310_s1 + $0x80] ss:$12 sps:$4 sm:$0xff]  }
  0x54   :  { %9389 = vmatprep.subr.bf16.mxu1 %v9761_v24  ;;  %v9765_v28 = vld [vmem:[%s12310_s1 + $0x68] ss:$12 sps:$4 sm:$0xff]   ;;  %v9767_v30 = vld [vmem:[%s12310_s1 + $0x98] ss:$12 sps:$4 sm:$0xff]   ;;  %v10458_v34 = vsub.s32 0, %v10455_v33  ;;  %v10464_v36 = vsub.s32 1, %v10455_v33 }
  0x55   :  { %304 = vmatpush1.bf16.msra.mxu0 %v9745_v6  ;;  %9390 = vmatpush3.bf16.msra.mxu1 %v9761_v24  ;;  %v154_v35 = vld [vmem:[%s12311_s2] sm:$0x7]  ;;  %s10214_s29 = smov 96   ;;  %vm10215_vm0 = vmmov 0   ;;  %v12327_v59 = vsub.s32 2, %v10455_v33  ;;  %vm2023_vm1 = vcmask 261120  }
  0x56   :  { %305 = vmatprep.subr.bf16.mxu0 %v9746_v7  ;;  %9391 = vmatprep.subr.bf16.mxu1 %v9762_v25  ;;  %v159_v37 = vrot.slane %v154_v35, %v10458_v34  ;;  %v163_v39 = vrot.slane %v154_v35, %v10464_v36  ;;  %v10216_v7 = vmov 1983009808   ;;  %vm2432_vm4 = vcmask 130048  }
  0x57   :  { %v167_v60 = vrot.slane %v154_v35, %v12327_v59  ;;  %v457_v8 = vunpack.c.l.s4 %v10216_v7  ;;  %vm3565_vm5 = vcmask 523264   ;;  %vm3570_vm6 = vcmask 785408  }
  0x59   :  { %306 = vmatpush1.bf16.msra.mxu0 %v9748_v9  ;;  %9392 = vmatpush3.bf16.msra.mxu1 %v9762_v25 }
  0x5a   :  { %307 = vmatprep.subr.bf16.mxu0 %v9749_v11  ;;  %9393 = vmatprep.subr.bf16.mxu1 %v9763_v26 }
  0x5d   :  { %308 = vmatpush1.bf16.msra.mxu0 %v9751_v13  ;;  %9394 = vmatpush3.bf16.msra.mxu1 %v9763_v26 }
  0x5e   :  { %309 = vmatprep.subr.bf16.mxu0 %v9752_v14  ;;  %9395 = vmatprep.subr.bf16.mxu1 %v9764_v27  ;;  %v10217_v14 = vmov 1934713408  }
  0x61   :  { %310 = vmatpush1.bf16.msra.mxu0 %v9754_v15  ;;  %9396 = vmatpush3.bf16.msra.mxu1 %v9764_v27  ;;  %v488_v15 = vunpack.c.l.s4 %v10217_v14 }
  0x62   :  { %311 = vmatprep.subr.bf16.mxu0 %v9755_v16  ;;  %9397 = vmatprep.subr.bf16.mxu1 %v9765_v28 }
  0x65   :  { %312 = vmatpush1.bf16.msra.mxu0 %v9757_v17  ;;  %9398 = vmatpush3.bf16.msra.mxu1 %v9765_v28 }
  0x66   :  { %313 = vmatprep.subr.bf16.mxu0 %v9758_v18  ;;  %9399 = vmatprep.subr.bf16.mxu1 %v9766_v29  ;;  %v10515_v18 = vpack.i.b16 %v10211_v0, %v10211_v0 }
  0x69   :  { %314 = vmatpush1.bf16.msra.mxu0 %v9760_v19  ;;  %9400 = vmatpush3.bf16.msra.mxu1 %v9766_v29 }
  0x6a   :  { %9415 = vmatprep.subr.bf16.mxu0 %v10212_v20  ;;  %9401 = vmatprep.subr.bf16.mxu1 %v9767_v30 }
  0x6c   :  { %332 = vmatmul.mubr.bf16.vlgmr.msra.gmra.mrb[0].mxu0 %v120_v12  ;;  %v458_v12 = vunpack.c.0.s8 %v457_v8 }
  0x6d   :  { %341 = vmatprep.mubr.bf16.mxu0 %v10211_v0  ;;  %9402 = vmatpush3.bf16.msra.mxu1 %v9767_v30 }
  0x6e   :  { %9403 = vmatprep.subr.bf16.mxu1 %v9768_v31  ;;  %v10519_v21 = vsub.s32 %v458_v12, %v10455_v33 }
  0x71   :  { %9404 = vmatpush3.bf16.msra.mxu1 %v9768_v31 }
  0x72   :  { %9409 = vmatprep.subr.bf16.mxu1 %v10212_v20 }
  0x74   :  { %342 = vmatmul.mubr.bf16.gmra.mrb[4].mxu0 %v121_v23  ;;  %9406 = vmatmul.mubr.bf16.vlgmr.msra.gmra.mrb[0].mxu1 %v121_v23  ;;  %v489_v23 = vunpack.c.0.s8 %v488_v15 }
  0x75   :  { %9411 = vmatprep.mubr.msk.bf16.mxu1 %vm10215_vm0, %v10212_v20  ;;  %9417 = vmatprep.mubr.msk.bf16.mxu0 %vm10215_vm0, %v10212_v20 }
 0x13f   :  { %v333_v38 = vpop.f32.mrb[0].mxu0 }
 0x140   :  { %v335_v40 = vpop.f32.mrb[1].mxu0  ;;  %v334_v42 = vadd.f32 %v333_v38, %v159_v37 }
 0x141   :  { %v337_v41 = vpop.f32.mrb[2].mxu0  ;;  %v336_v45 = vadd.f32 %v335_v40, %v163_v39  ;;  %v10528_v40 = vsub.s32 %v489_v23, %v10455_v33 }
 0x142   :  { %v338_v43 = vadd.f32 %v337_v41, %v159_v37  ;;  %v339_v44 = vpop.f32.mrb[3].mxu0 }
 0x143   :  { %v340_v46 = vadd.f32 %v339_v44, %v163_v39 }
 0x144   :  { %v10468_v47 = vpack.c.bf16 %v338_v43, %v334_v42 }
 0x145   :  { %v10470_v48 = vpack.c.bf16 %v340_v46, %v336_v45 }
 0x146   :  { %v421_v44 = vshrl.u32 %v10468_v47, 16 }
 0x147   :  { %955 = vrot.lane.b32.xlu1 %v10470_v48, %s10213_s28  ;;  %947 = vrot.lane.b32.xlu0 %v10470_v48, %s10214_s29  ;;  %v343_v49 = vpop.f32.mrb[4].mxu0  ;;  %v9407_v61 = vpop.f32.mrb[0].mxu1  ;;  %v963_v25 = vshrl.u32 %v10470_v48, 16 }
 0x148   :  { %v344_v50 = vadd.f32 %v343_v49, %v159_v37  ;;  %v345_v51 = vpop.f32.mrb[5].mxu0  ;;  %v395_v62 = vadd.f32 %v9407_v61, %v167_v60  ;;  %v386_v63 = vpop.f32.mrb[1].mxu1 }
 0x149   :  { %v346_v52 = vadd.f32 %v345_v51, %v163_v39  ;;  %v347_v53 = vpop.f32.mrb[6].mxu0  ;;  %v387_v1 = vadd.f32 %v386_v63, %v167_v60  ;;  %v9408_v2 = vpop.f32.mrb[2].mxu1 }
 0x14a   :  { %v348_v54 = vadd.f32 %v347_v53, %v159_v37  ;;  %v349_v55 = vpop.f32.mrb[7].mxu0  ;;  %v398_v3 = vadd.f32 %v9408_v2, %v167_v60  ;;  %v389_v4 = vpop.f32.mrb[3].mxu1 }
 0x14b   :  { %951 = vrot.lane.b32.xlu0 %v10470_v48, %s10207_s7  ;;  %405 = vrot.lane.b32.xlu1 %v10468_v47, %s10214_s29  ;;  %v350_v56 = vadd.f32 %v349_v55, %v163_v39  ;;  %v390_v5 = vadd.f32 %v389_v4, %v167_v60 }
 0x14c   :  { %v10480_v57 = vpack.c.bf16 %v348_v54, %v344_v50  ;;  %v10507_v6 = vpack.c.bf16 %v398_v3, %v395_v62 }
 0x14d   :  { %v10482_v58 = vpack.c.bf16 %v350_v56, %v346_v52  ;;  %v10509_v11 = vpack.c.bf16 %v390_v5, %v387_v1 }
 0x14e   :  { %v443_v45 = vshrl.u32 %v10480_v57, 16 }
 0x14f   :  { %409 = vrot.lane.b32.xlu0 %v10468_v47, %s10207_s7  ;;  %413 = vrot.lane.b32.xlu1 %v10468_v47, %s10213_s28  ;;  %v979_v12 = vshrl.u32 %v10482_v58, 16 }
 0x153   :  { %949 = vrot.lane.b32.xlu0 %v10482_v58, %s10214_s29  ;;  %953 = vrot.lane.b32.xlu1 %v10482_v58, %s10207_s7 }
 0x157   :  { %957 = vrot.lane.b32.xlu0 %v10482_v58, %s10213_s28  ;;  %407 = vrot.lane.b32.xlu1 %v10480_v57, %s10214_s29 }
 0x15b   :  { %411 = vrot.lane.b32.xlu0 %v10480_v57, %s10207_s7  ;;  %415 = vrot.lane.b32.xlu1 %v10480_v57, %s10213_s28 }
 0x15f   :  { %1483 = vrot.lane.b32.xlu1 %v10509_v11, %s10214_s29 }
 0x1b9   :  { %v956_v9 = vpop.permute.xlu1 %955  ;;  %v948_v10 = vpop.permute.xlu0 %947 }
 0x1ba   :  { %v961_v19 = vpack.i.b16 %v948_v10, %v10470_v48  ;;  %v964_v22 = vshrl.u32 %v948_v10, 16  ;;  %v972_v28 = vshrl.u32 %v956_v9, 16 }
 0x1bc   :  { %v991_v29 = vcombine.high %v961_v19, %v10515_v18  ;;  %v965_v30 = vpack.i.b16 %v964_v22, %v963_v25  ;;  %v998_v31 = vrot.slane %v961_v19, %v10519_v21 }
 0x1bd   :  { %v952_v13 = vpop.permute.xlu0 %951  ;;  %v406_v17 = vpop.permute.xlu1 %405 }
 0x1be   :  { %v969_v16 = vpack.i.b16 %v956_v9, %v952_v13  ;;  %v971_v24 = vshrl.u32 %v952_v13, 16  ;;  %v419_v35 = vpack.i.b16 %v406_v17, %v10468_v47  ;;  %v422_v37 = vshrl.u32 %v406_v17, 16 }
 0x1bf   :  { %v1005_v46 = vrot.slane %v991_v29, %v10519_v21  ;;  %v1057_v51 = vcombine.high %v965_v30, %v10515_v18  ;;  %v1064_v52 = vrot.slane %v965_v30, %v10519_v21 }
 0x1c0   :  { %v1006_v26 = vcombine.high %v969_v16, %v10515_v18  ;;  %v1013_v27 = vrot.slane %v969_v16, %v10519_v21  ;;  %v973_v41 = vpack.i.b16 %v972_v28, %v971_v24  ;;  %v423_v53 = vpack.i.b16 %v422_v37, %v421_v44 }
 0x1c1   :  { %v410_v38 = vpop.permute.xlu0 %409  ;;  %v414_v39 = vpop.permute.xlu1 %413  ;;  %v455_v54 = vcombine.high %v419_v35, %v10515_v18  ;;  %v462_v1 = vrot.slane %v419_v35, %v10519_v21  ;;  %v1071_v8 = vrot.slane %v1057_v51, %v10519_v21 }
 0x1c2   :  { %v1020_v42 = vrot.slane %v1006_v26, %v10519_v21  ;;  %v1021_v43 = vcombine.low %v998_v31, %v1013_v27  ;;  %v1022_v48 = vcombine.high %v998_v31, %v1013_v27  ;;  %v429_v49 = vshrl.u32 %v410_v38, 16 }
 0x1c3   :  { %v427_v50 = vpack.i.b16 %v414_v39, %v410_v38  ;;  %v1079_v55 = vrot.slane %v973_v41, %v10519_v21  ;;  %v430_v56 = vshrl.u32 %v414_v39, 16  ;;  %v1072_v63 = vcombine.high %v973_v41, %v10515_v18 }
 0x1c4   :  { %v10541_v61 = vrot.slane %v1021_v43, %v10528_v40  ;;  %v1037_v62 = vcombine.low %v1005_v46, %v1020_v42  ;;  %v10546_v3 = vrot.slane %v1022_v48, %v10528_v40  ;;  %v1038_v4 = vcombine.high %v1005_v46, %v1020_v42 }
 0x1c5   :  { %v470_v60 = vcombine.high %v427_v50, %v10515_v18  ;;  %v477_v47 = vrot.slane %v427_v50, %v10519_v21  ;;  %v950_v2 = vpop.permute.xlu0 %949  ;;  %v431_v5 = vpack.i.b16 %v430_v56, %v429_v49  ;;  %v1087_v13 = vcombine.low %v1064_v52, %v1079_v55  ;;  %v954_v28 = vpop.permute.xlu1 %953 }
 0x1c6   :  { %v1088_v14 = vcombine.high %v1064_v52, %v1079_v55  ;;  %v469_v15 = vrot.slane %v455_v54, %v10519_v21  ;;  %v521_v16 = vcombine.high %v423_v53, %v10515_v18  ;;  %v10554_v17 = vrot.slane %v1037_v62, %v10528_v40 }
 0x1c7   :  { %v484_v7 = vrot.slane %v470_v60, %v10519_v21  ;;  %v485_v9 = vcombine.low %v462_v1, %v477_v47  ;;  %v486_v10 = vcombine.high %v462_v1, %v477_v47  ;;  %v1086_v19 = vrot.slane %v1072_v63, %v10519_v21 }
 0x1c8   :  { %v528_v22 = vrot.slane %v423_v53, %v10519_v21  ;;  %v536_v23 = vcombine.high %v431_v5, %v10515_v18  ;;  %v10560_v24 = vrot.slane %v1038_v4, %v10528_v40  ;;  %v1255_v25 = vcombine.low %v10541_v61, %v10546_v3 }
 0x1c9   :  { %v501_v26 = vcombine.low %v469_v15, %v484_v7  ;;  %v502_v27 = vcombine.high %v469_v15, %v484_v7  ;;  %v8945_v29 = vcombine.high %v10541_v61, %v10546_v3  ;;  %v493_v30 = vrot.slane %v485_v9, %v10528_v40  ;;  %v958_v37 = vpop.permute.xlu0 %957  ;;  %v408_v1 = vpop.permute.xlu1 %407 }
 0x1ca   :  { %v500_v31 = vrot.slane %v486_v10, %v10528_v40  ;;  %v543_v35 = vrot.slane %v431_v5, %v10519_v21  ;;  %v10570_v38 = vrot.slane %v1087_v13, %v10528_v40  ;;  %v10573_v39 = vrot.slane %v1088_v14, %v10528_v40 }
 0x1cb   :  { %v550_v41 = vrot.slane %v536_v23, %v10519_v21  ;;  %v980_v42 = vshrl.u32 %v950_v2, 16  ;;  %v1103_v43 = vcombine.low %v1071_v8, %v1086_v19  ;;  %v1104_v44 = vcombine.high %v1071_v8, %v1086_v19 }
 0x1cc   :  { %v535_v46 = vrot.slane %v521_v16, %v10519_v21  ;;  %v977_v48 = vpack.i.b16 %v950_v2, %v10482_v58  ;;  %v509_v49 = vrot.slane %v501_v26, %v10528_v40  ;;  %v516_v50 = vrot.slane %v502_v27, %v10528_v40 }
 0x1cd   :  { %v987_v51 = vshrl.u32 %v954_v28, 16  ;;  %v988_v52 = vshrl.u32 %v958_v37, 16  ;;  %v551_v53 = vcombine.low %v528_v22, %v543_v35  ;;  %v552_v54 = vcombine.high %v528_v22, %v543_v35 }
 0x1ce   :  { %v719_v55 = vcombine.low %v493_v30, %v500_v31  ;;  %v8937_v56 = vcombine.high %v493_v30, %v500_v31  ;;  %v567_v60 = vcombine.low %v535_v46, %v550_v41  ;;  %v568_v47 = vcombine.high %v535_v46, %v550_v41 }
 0x1cf   :  { %v981_v62 = vpack.i.b16 %v980_v42, %v979_v12  ;;  %v985_v63 = vpack.i.b16 %v958_v37, %v954_v28  ;;  %v10581_v4 = vrot.slane %v1103_v43, %v10528_v40  ;;  %v10584_v58 = vrot.slane %v1104_v44, %v10528_v40  ;;  %v412_v42 = vpop.permute.xlu0 %411  ;;  %v416_v43 = vpop.permute.xlu1 %415 }
 0x1d0   :  { %v1271_v2 = vcombine.low %v10554_v17, %v10560_v24  ;;  %v8946_v5 = vcombine.high %v10554_v17, %v10560_v24  ;;  %v735_v7 = vcombine.low %v509_v49, %v516_v50  ;;  %v8938_v8 = vcombine.high %v509_v49, %v516_v50 }
 0x1d1   :  { %v1123_v9 = vcombine.high %v977_v48, %v10515_v18  ;;  %v989_v10 = vpack.i.b16 %v988_v52, %v987_v51  ;;  %v559_v12 = vrot.slane %v551_v53, %v10528_v40  ;;  %v566_v13 = vrot.slane %v552_v54, %v10528_v40 }
 0x1d2   :  { %v10594_v14 = vrot.slane %v719_v55, %v10519_v21  ;;  %v10597_v15 = vrot.slane %v8937_v56, %v10519_v21  ;;  %v575_v16 = vrot.slane %v567_v60, %v10528_v40  ;;  %v582_v19 = vrot.slane %v568_v47, %v10528_v40 }
 0x1d3   :  { %v1189_v22 = vcombine.high %v981_v62, %v10515_v18  ;;  %v1138_v23 = vcombine.high %v985_v63, %v10515_v18  ;;  %v1305_v26 = vcombine.low %v10570_v38, %v10573_v39  ;;  %v8947_v27 = vcombine.high %v10570_v38, %v10573_v39 }
 0x1d4   :  { %v1130_v28 = vrot.slane %v977_v48, %v10519_v21  ;;  %v1145_v30 = vrot.slane %v985_v63, %v10519_v21  ;;  %v10610_v31 = vrot.slane %v735_v7, %v10519_v21  ;;  %v10613_v35 = vrot.slane %v8938_v8, %v10519_v21 }
 0x1d5   :  { %v1137_v37 = vrot.slane %v1123_v9, %v10519_v21  ;;  %v1196_v41 = vrot.slane %v981_v62, %v10519_v21  ;;  %v751_v44 = vcombine.low %v10594_v14, %v10597_v15  ;;  %v769_v46 = vcombine.low %v559_v12, %v566_v13 }
 0x1d6   :  { %v8939_v49 = vcombine.high %v559_v12, %v566_v13  ;;  %v1204_v48 = vcombine.high %v989_v10, %v10515_v18  ;;  %v785_v50 = vcombine.low %v575_v16, %v582_v19  ;;  %v1203_v51 = vrot.slane %v1189_v22, %v10519_v21 }
 0x1d7   :  { %v1152_v52 = vrot.slane %v1138_v23, %v10519_v21  ;;  %v444_v53 = vshrl.u32 %v408_v1, 16  ;;  %v1153_v54 = vcombine.low %v1130_v28, %v1145_v30  ;;  %v1154_v55 = vcombine.high %v1130_v28, %v1145_v30 }
 0x1d8   :  { %v451_v56 = vshrl.u32 %v412_v42, 16  ;;  %v449_v60 = vpack.i.b16 %v416_v43, %v412_v42  ;;  %v759_v47 = vcombine.low %v10610_v31, %v10613_v35  ;;  %v8940_v62 = vcombine.high %v575_v16, %v582_v19 }
 0x1d9   :  { %v1211_v63 = vrot.slane %v989_v10, %v10519_v21  ;;  %v452_v7 = vshrl.u32 %v416_v43, 16  ;;  %v10626_v8 = vrot.slane %v769_v46, %v10519_v21  ;;  %v10629_v9 = vrot.slane %v8939_v49, %v10519_v21 }
 0x1da   :  { %v1218_v12 = vrot.slane %v1204_v48, %v10519_v21  ;;  %v441_v13 = vpack.i.b16 %v408_v1, %v10480_v57  ;;  %v1169_v22 = vcombine.low %v1137_v37, %v1152_v52  ;;  %v1170_v23 = vcombine.high %v1137_v37, %v1152_v52 }
 0x1db   :  { %v445_v28 = vpack.i.b16 %v444_v53, %v443_v45  ;;  %v453_v30 = vpack.i.b16 %v452_v7, %v451_v56  ;;  %v10636_v16 = vrot.slane %v785_v50, %v10519_v21  ;;  %v10639_v10 = vrot.slane %v1153_v54, %v10528_v40 }
 0x1dc   :  { %v10642_v19 = vrot.slane %v1154_v55, %v10528_v40  ;;  %v602_v42 = vcombine.high %v449_v60, %v10515_v18  ;;  %v10646_v43 = vrot.slane %v8940_v62, %v10519_v21  ;;  %v1219_v1 = vcombine.low %v1196_v41, %v1211_v63 }
 0x1dd   :  { %v1220_v37 = vcombine.high %v1196_v41, %v1211_v63  ;;  %v668_v57 = vcombine.high %v453_v30, %v10515_v18  ;;  %v801_v45 = vcombine.low %v10626_v8, %v10629_v9  ;;  %v1235_v46 = vcombine.low %v1203_v51, %v1218_v12 }
 0x1de   :  { %v587_v49 = vcombine.high %v441_v13, %v10515_v18  ;;  %v609_v48 = vrot.slane %v449_v60, %v10519_v21  ;;  %v10654_v50 = vrot.slane %v1169_v22, %v10528_v40  ;;  %v10657_v52 = vrot.slane %v1170_v23, %v10528_v40 }
 0x1df   :  { %v1236_v53 = vcombine.high %v1203_v51, %v1218_v12  ;;  %v653_v54 = vcombine.high %v445_v28, %v10515_v18  ;;  %v1355_v41 = vcombine.low %v10639_v10, %v10642_v19  ;;  %v8949_v55 = vcombine.high %v10639_v10, %v10642_v19 }
 0x1e0   :  { %v594_v56 = vrot.slane %v441_v13, %v10519_v21  ;;  %v616_v62 = vrot.slane %v602_v42, %v10519_v21  ;;  %v10667_v60 = vrot.slane %v1219_v1, %v10528_v40  ;;  %v10670_v63 = vrot.slane %v1220_v37, %v10528_v40 }
 0x1e1   :  { %v682_v51 = vrot.slane %v668_v57, %v10519_v21  ;;  %v1262_v7 = vrot.slane %v1255_v25, %v10519_v21  ;;  %v601_v12 = vrot.slane %v587_v49, %v10519_v21  ;;  %v1278_v13 = vrot.slane %v1271_v2, %v10519_v21 }
 0x1e2   :  { %v617_v22 = vcombine.low %v594_v56, %v609_v48  ;;  %v1286_v23 = vrot.slane %v8946_v5, %v10519_v21  ;;  %v667_v42 = vrot.slane %v653_v54, %v10519_v21  ;;  %v618_v1 = vcombine.high %v594_v56, %v609_v48 }
 0x1e3   :  { %v675_v37 = vrot.slane %v453_v30, %v10519_v21  ;;  %v1270_v25 = vrot.slane %v8945_v29, %v10519_v21  ;;  %v10693_v57 = vrot.slane %v1235_v46, %v10528_v40  ;;  %v10696_v2 = vrot.slane %v1236_v53, %v10528_v40 }
 0x1e4   :  { %v633_v49 = vcombine.low %v601_v12, %v616_v62  ;;  %v634_v59 = vcombine.high %v601_v12, %v616_v62  ;;  %v1371_v17 = vcombine.low %v10654_v50, %v10657_v52  ;;  %v660_v24 = vrot.slane %v445_v28, %v10519_v21 }
 0x1e5   :  { %v699_v5 = vcombine.low %v667_v42, %v682_v51  ;;  %v700_v30 = vcombine.high %v667_v42, %v682_v51  ;;  %v10702_v48 = vrot.slane %v617_v22, %v10528_v40  ;;  %v1295_v61 = vcombine.low %v1278_v13, %v1286_v23 }
 0x1e6   :  { %v1312_v3 = vrot.slane %v1305_v26, %v10519_v21  ;;  %v1320_v29 = vrot.slane %v8947_v27, %v10519_v21  ;;  %v10713_v46 = vrot.slane %v618_v1, %v10528_v40  ;;  %v683_v28 = vcombine.low %v660_v24, %v675_v37 }
 0x1e7   :  { %v1287_v53 = vcombine.low %v1262_v7, %v1270_v25  ;;  %v1321_v54 = vcombine.low %v10581_v4, %v10584_v58  ;;  %v10718_v56 = vrot.slane %v633_v49, %v10528_v40  ;;  %v10721_v62 = vrot.slane %v634_v59, %v10528_v40 }
 0x1e8   :  { %v684_v26 = vcombine.high %v660_v24, %v675_v37  ;;  %v8948_v51 = vcombine.high %v10581_v4, %v10584_v58  ;;  %v707_v38 = vrot.slane %v699_v5, %v10528_v40  ;;  %v714_v39 = vrot.slane %v700_v30, %v10528_v40 }
 0x1e9   :  { %v1302_v27 = vrot.slane %v1295_v61, %v10528_v40  ;;  %v1328_v7 = vrot.slane %v1321_v54, %v10519_v21  ;;  %v8950_v12 = vcombine.high %v10654_v50, %v10657_v52  ;;  %v1405_v59 = vcombine.low %v10667_v60, %v10670_v63 }
 0x1ea   :  { %v1336_v22 = vrot.slane %v8948_v51, %v10519_v21  ;;  %v1337_v13 = vcombine.low %v1312_v3, %v1320_v29  ;;  %v8951_v4 = vcombine.high %v10667_v60, %v10670_v63  ;;  %v819_v58 = vcombine.low %v10702_v48, %v10713_v46 }
 0x1eb   :  { %v1294_v23 = vrot.slane %v1287_v53, %v10528_v40  ;;  %v809_v42 = vcombine.low %v10636_v16, %v10646_v43  ;;  %v691_v1 = vrot.slane %v683_v28, %v10528_v40  ;;  %v698_v50 = vrot.slane %v684_v26, %v10528_v40 }
 0x1ec   :  { %v8941_v52 = vcombine.high %v10702_v48, %v10713_v46  ;;  %v1345_v37 = vcombine.low %v1328_v7, %v1336_v22  ;;  %v835_v25 = vcombine.low %v10718_v56, %v10721_v62  ;;  %v8942_v60 = vcombine.high %v10718_v56, %v10721_v62 }
 0x1ed   :  { %v885_v63 = vcombine.low %v707_v38, %v714_v39  ;;  %v1303_v49 = vcombine.low %v1294_v23, %v1302_v27  ;;  %v8944_v24 = vcombine.high %v707_v38, %v714_v39  ;;  %v1344_v5 = vrot.slane %v1337_v13, %v10528_v40 }
 0x1ee   :  { %v1352_v16 = vrot.slane %v1345_v37, %v10528_v40  ;;  %v10755_v43 = vrot.slane %v751_v44, %v10528_v40  ;;  %v766_v30 = vrot.slane %v759_v47, %v10528_v40  ;;  %v808_v61 = vrot.slane %v801_v45, %v10528_v40 }
 0x1ef   :  { %v816_v3 = vrot.slane %v809_v42, %v10528_v40  ;;  %v1378_v29 = vrot.slane %v1371_v17, %v10519_v21  ;;  %v1386_v53 = vrot.slane %v8950_v12, %v10519_v21  ;;  %v1412_v14 = vrot.slane %v1405_v59, %v10519_v21 }
 0x1f0   :  { %v1353_v28 = vcombine.low %v1344_v5, %v1352_v16  ;;  %v1420_v15 = vrot.slane %v8951_v4, %v10519_v21  ;;  %v1458_v44 = vshrl.u32 %v1303_v49, 16  ;;  %v1362_v31 = vrot.slane %v1355_v41, %v10519_v21 }
 0x1f1   :  { %v1421_v35 = vcombine.low %v10693_v57, %v10696_v2  ;;  %v8952_v47 = vcombine.high %v10693_v57, %v10696_v2  ;;  %v1354_v45 = vcombine.high %v1344_v5, %v1352_v16  ;;  %v1370_v17 = vrot.slane %v8949_v55, %v10519_v21 }
 0x1f2   :  { %v1457_v8 = vpack.i.b16 %v1353_v28, %v1303_v49  ;;  %v1459_v9 = vshrl.u32 %v1353_v28, 16  ;;  %v817_v54 = vcombine.low %v808_v61, %v816_v3  ;;  %v1304_v56 = vcombine.high %v1294_v23, %v1302_v27 }
 0x1f3   :  { %v1428_v62 = vrot.slane %v1421_v35, %v10519_v21  ;;  %v1436_v41 = vrot.slane %v8952_v47, %v10519_v21  ;;  %v1395_v38 = vcombine.low %v1378_v29, %v1386_v53  ;;  %v1437_v39 = vcombine.low %v1412_v14, %v1420_v15 }
 0x1f4   :  { %v2028_v26 = vsel %vm2023_vm1, %v1457_v8, 0  ;;  %v1460_v51 = vpack.i.b16 %v1459_v9, %v1458_v44  ;;  %v869_v57 = vcombine.low %v691_v1, %v698_v50  ;;  %v8943_v2 = vcombine.high %v691_v1, %v698_v50 }
 0x1f5   :  { %9410 = vmatpush3.bf16.xpose.msra.mxu1 %v2028_v26  ;;  %v767_v7 = vcombine.low %v10755_v43, %v766_v30  ;;  %v1445_v12 = vcombine.low %v1428_v62, %v1436_v41  ;;  %v842_v10 = vrot.slane %v835_v25, %v10519_v21  ;;  %v1465_v55 = vshrl.u32 %v1354_v45, 16 }
 0x1f6   :  { %v2075_v19 = vsel %vm2023_vm1, %v1460_v51, 0  ;;  %9421 = vmatprep.subr.bf16.mxu1 %v10212_v20  ;;  %v1387_v27 = vcombine.low %v1362_v31, %v1370_v17  ;;  %v892_v59 = vrot.slane %v885_v63, %v10519_v21  ;;  %v900_v22 = vrot.slane %v8944_v24, %v10519_v21 }
 0x1f7   :  { %9416 = vmatpush3.bf16.xpose.msra.mxu0 %v2075_v19  ;;  %v1464_v13 = vshrl.u32 %v1304_v56, 16  ;;  %v1452_v4 = vrot.slane %v1445_v12, %v10528_v40  ;;  %v923_v23 = vshrl.u32 %v817_v54, 16  ;;  %v1463_v42 = vpack.i.b16 %v1354_v45, %v1304_v56 }
 0x1f8   :  { %9427 = vmatprep.subr.bf16.mxu0 %v10212_v20  ;;  %v1402_v1 = vrot.slane %v1395_v38, %v10528_v40  ;;  %v1444_v50 = vrot.slane %v1437_v39, %v10528_v40  ;;  %v850_v37 = vrot.slane %v8942_v60, %v10519_v21  ;;  %v876_v25 = vrot.slane %v869_v57, %v10519_v21 }
 0x1f9   :  { %v884_v63 = vrot.slane %v8943_v2, %v10519_v21  ;;  %v922_v49 = vshrl.u32 %v767_v7, 16  ;;  %v921_v24 = vpack.i.b16 %v817_v54, %v767_v7  ;;  %v1466_v5 = vpack.i.b16 %v1465_v55, %v1464_v13 }
 0x1fa   :  { %v1394_v16 = vrot.slane %v1387_v27, %v10528_v40  ;;  %v1453_v29 = vcombine.low %v1444_v50, %v1452_v4  ;;  %v826_v28 = vrot.slane %v819_v58, %v10519_v21  ;;  %v834_v60 = vrot.slane %v8941_v52, %v10519_v21 }
 0x1fb   :  { %v818_v53 = vcombine.high %v808_v61, %v816_v3  ;;  %v2122_v14 = vsel %vm2023_vm1, %v1463_v42, 0  ;;  %v924_v15 = vpack.i.b16 %v923_v23, %v922_v49  ;;  %v909_v31 = vcombine.low %v892_v59, %v900_v22 }
 0x1fc   :  { %9412 = vmatmul.mubr.msk.bf16.vlgmr.msra.gmra.mrb[4].mxu1 %vm2023_vm1, %v921_v24  ;;  %v1403_v44 = vcombine.low %v1394_v16, %v1402_v1  ;;  %v768_v35 = vcombine.high %v10755_v43, %v766_v30  ;;  %v859_v58 = vcombine.low %v842_v10, %v850_v37  ;;  %v901_v47 = vcombine.low %v876_v25, %v884_v63 }
 0x1fd   :  { %9422 = vmatpush3.bf16.xpose.msra.mxu1 %v2122_v14  ;;  %9423 = vmatprep.mubr.msk.bf16.mxu1 %vm10215_vm0, %v10212_v20  ;;  %v2169_v48 = vsel %vm2023_vm1, %v1466_v5, 0  ;;  %v1471_v46 = vshrl.u32 %v1453_v29, 16  ;;  %v851_v52 = vcombine.low %v826_v28, %v834_v60  ;;  %v929_v3 = vshrl.u32 %v818_v53, 16 }
 0x1fe   :  { %9418 = vmatmul.mubr.msk.bf16.vlgmr.msra.gmra.mrb[8].mxu0 %vm2023_vm1, %v924_v15  ;;  %9433 = vmatprep.subr.bf16.mxu1 %v10212_v20  ;;  %v1469_v61 = vpack.i.b16 %v1453_v29, %v1403_v44  ;;  %v1470_v8 = vshrl.u32 %v1403_v44, 16  ;;  %v916_v43 = vrot.slane %v909_v31, %v10528_v40  ;;  %v927_v30 = vpack.i.b16 %v818_v53, %v768_v35 }
 0x1ff   :  { %9428 = vmatpush3.bf16.xpose.msra.mxu0 %v2169_v48  ;;  %9429 = vmatprep.mubr.msk.bf16.mxu0 %vm10215_vm0, %v10212_v20  ;;  %v928_v9 = vshrl.u32 %v768_v35, 16  ;;  %v866_v17 = vrot.slane %v859_v58, %v10528_v40  ;;  %v908_v54 = vrot.slane %v901_v47, %v10528_v40  ;;  %v1454_v56 = vcombine.high %v1444_v50, %v1452_v4 }
 0x200   :  { %9439 = vmatprep.subr.bf16.mxu0 %v10212_v20  ;;  %v1472_v45 = vpack.i.b16 %v1471_v46, %v1470_v8  ;;  %v858_v62 = vrot.slane %v851_v52, %v10528_v40  ;;  %v2216_v41 = vsel %vm2023_vm1, %v1469_v61, 0  ;;  %v1404_v38 = vcombine.high %v1394_v16, %v1402_v1 }
 0x201   :  { %v930_v26 = vpack.i.b16 %v929_v3, %v928_v9  ;;  %v917_v51 = vcombine.low %v908_v54, %v916_v43  ;;  %v1477_v2 = vshrl.u32 %v1454_v56, 16  ;;  %v918_v13 = vcombine.high %v908_v54, %v916_v43 }
 0x202   :  { %v2263_v39 = vsel %vm2023_vm1, %v1472_v45, 0  ;;  %v867_v57 = vcombine.low %v858_v62, %v866_v17  ;;  %v1475_v7 = vpack.i.b16 %v1454_v56, %v1404_v38  ;;  %v1476_v10 = vshrl.u32 %v1404_v38, 16 }
 0x203   :  { %v935_v12 = vshrl.u32 %v917_v51, 16  ;;  %v868_v23 = vcombine.high %v858_v62, %v866_v17  ;;  %v941_v42 = vshrl.u32 %v918_v13, 16  ;;  %v115_v25 = vand.u32 127, %v111_v32 }
 0x204   :  { %9424 = vmatmul.mubr.msk.bf16.vlgmr.msra.gmra.mrb[8].mxu1 %vm2023_vm1, %v927_v30  ;;  %v933_v19 = vpack.i.b16 %v917_v51, %v867_v57  ;;  %v934_v55 = vshrl.u32 %v867_v57, 16  ;;  %v1478_v27 = vpack.i.b16 %v1477_v2, %v1476_v10  ;;  %v2310_v59 = vsel %vm2023_vm1, %v1475_v7, 0 }
 0x205   :  { %9434 = vmatpush3.bf16.xpose.msra.mxu1 %v2216_v41  ;;  %9435 = vmatprep.mubr.msk.bf16.mxu1 %vm10215_vm0, %v10212_v20  ;;  %v939_v1 = vpack.i.b16 %v918_v13, %v868_v23  ;;  %v940_v50 = vshrl.u32 %v868_v23, 16  ;;  %v113_v63 = vadd.s32 8, %v10455_v33  ;;  %vm116_vm2 = vcmp.gt.s32.totalorder %v115_v25, %v10455_v33 }
 0x206   :  { %9430 = vmatmul.mubr.msk.bf16.vlgmr.msra.gmra.mrb[12].mxu0 %vm2023_vm1, %v930_v26  ;;  %9445 = vmatprep.subr.bf16.mxu1 %v10212_v20  ;;  %v936_v22 = vpack.i.b16 %v935_v12, %v934_v55  ;;  %v2357_v4 = vsel %vm2023_vm1, %v1478_v27, 0  ;;  %v10852_v49 = vsel %vm116_vm2, -1e+30, %v10212_v20 }
 0x207   :  { %9440 = vmatpush3.bf16.xpose.msra.mxu0 %v2263_v39  ;;  %9441 = vmatprep.mubr.msk.bf16.mxu0 %vm10215_vm0, %v10212_v20  ;;  %v942_v37 = vpack.i.b16 %v941_v42, %v940_v50  ;;  %vm117_vm3 = vcmp.gt.s32.totalorder %v115_v25, %v113_v63 }
 0x208   :  { %9451 = vmatprep.subr.bf16.mxu0 %v10212_v20  ;;  %v10855_v29 = vsel %vm117_vm3, -1e+30, %v10212_v20 }
 0x20c   :  { %9436 = vmatmul.mubr.msk.bf16.vlgmr.msra.gmra.mrb[12].mxu1 %vm2023_vm1, %v933_v19 }
 0x20d   :  { %9446 = vmatpush3.bf16.xpose.msra.mxu1 %v2310_v59  ;;  %9447 = vmatprep.mubr.msk.bf16.mxu1 %vm10215_vm0, %v10212_v20 }
 0x20e   :  { %9442 = vmatmul.mubr.msk.bf16.vlgmr.msra.gmra.mrb[16].mxu0 %vm2023_vm1, %v936_v22  ;;  %9457 = vmatprep.subr.bf16.mxu1 %v10212_v20 }
 0x20f   :  { %9452 = vmatpush3.bf16.xpose.msra.mxu0 %v2357_v4  ;;  %9453 = vmatprep.mubr.msk.bf16.mxu0 %vm10215_vm0, %v10212_v20 }
 0x210   :  { %9463 = vmatprep.subr.bf16.mxu0 %v10212_v20 }
 0x214   :  { %9448 = vmatmul.mubr.msk.bf16.vlgmr.msra.gmra.mrb[16].mxu1 %vm2023_vm1, %v939_v1 }
 0x215   :  { %9459 = vmatprep.mubr.msk.bf16.mxu1 %vm10215_vm0, %v10212_v20 }
 0x216   :  { %9454 = vmatmul.mubr.msk.bf16.vlgmr.msra.gmra.mrb[20].mxu0 %vm2023_vm1, %v942_v37 }
 0x217   :  { %9465 = vmatprep.mubr.msk.bf16.mxu0 %vm10215_vm0, %v10212_v20 }
 0x2cf   :  { %v2064_v24 = vpop.f32.mrb[4].mxu1 }
 0x2d0   :  { %v2400_v5 = vmul.f32 0.17677669, %v2064_v24  ;;  %v9413_v16 = vpop.f32.mrb[5].mxu1 }
 0x2d1   :  { %v2067_v28 = vpop.f32.mrb[6].mxu1  ;;  %v2111_v60 = vpop.f32.mrb[8].mxu0 }
 0x2d2   :  { %v2401_v53 = vmul.f32 0.17677669, %v2067_v28  ;;  %v2402_v14 = vmul.f32 0.17677669, %v2111_v60  ;;  %v9414_v32 = vpop.f32.mrb[7].mxu1  ;;  %v9419_v15 = vpop.f32.mrb[9].mxu0  ;;  %v10858_v44 = vadd.f32 %v2400_v5, %v10852_v49 }
 0x2d3   :  { %v2114_v31 = vpop.f32.mrb[10].mxu0 }
 0x2d4   :  { %v2403_v35 = vmul.f32 0.17677669, %v2114_v31  ;;  %v9420_v58 = vpop.f32.mrb[11].mxu0  ;;  %v2433_v47 = vsel %vm2432_vm4, %v10858_v44, -inf  ;;  %v10863_v48 = vadd.f32 %v2401_v53, %v10855_v29  ;;  %v10866_v46 = vadd.f32 %v2402_v14, %v10852_v49 }
 0x2d5   :  { %2434 = vmax.xlane.f32.xlu0 %v2433_v47 }
 0x2d6   :  { %v2436_v52 = vsel %vm2432_vm4, %v10863_v48, -inf  ;;  %v10871_v3 = vadd.f32 %v2403_v35, %v10855_v29  ;;  %v2439_v30 = vsel %vm2432_vm4, %v10866_v46, -inf }
 0x2d7   :  { %2437 = vmax.xlane.f32.xlu1 %v2436_v52  ;;  %v2158_v61 = vpop.f32.mrb[8].mxu1 }
 0x2d8   :  { %v2404_v8 = vmul.f32 0.17677669, %v2158_v61  ;;  %v9425_v43 = vpop.f32.mrb[9].mxu1  ;;  %v2442_v51 = vsel %vm2432_vm4, %v10871_v3, -inf }
 0x2d9   :  { %v2205_v9 = vpop.f32.mrb[12].mxu0  ;;  %2440 = vmax.xlane.f32.xlu0 %v2439_v30  ;;  %v2161_v45 = vpop.f32.mrb[10].mxu1 }
 0x2da   :  { %v2406_v17 = vmul.f32 0.17677669, %v2205_v9  ;;  %v2405_v54 = vmul.f32 0.17677669, %v2161_v45  ;;  %v9426_v56 = vpop.f32.mrb[11].mxu1  ;;  %v9431_v62 = vpop.f32.mrb[13].mxu0  ;;  %v10876_v41 = vadd.f32 %v2404_v8, %v10852_v49 }
 0x2db   :  { %v2208_v26 = vpop.f32.mrb[14].mxu0 }
 0x2dc   :  { %v2407_v38 = vmul.f32 0.17677669, %v2208_v26  ;;  %v9432_v39 = vpop.f32.mrb[15].mxu0  ;;  %v2445_v57 = vsel %vm2432_vm4, %v10876_v41, -inf  ;;  %v10883_v2 = vadd.f32 %v2406_v17, %v10852_v49  ;;  %v10886_v7 = vadd.f32 %v2405_v54, %v10855_v29 }
 0x2dd   :  { %2443 = vmax.xlane.f32.xlu0 %v2442_v51  ;;  %2446 = vmax.xlane.f32.xlu1 %v2445_v57  ;;  %v10945_v57 = vpop.permute.xlu1 %1483 }
 0x2de   :  { %v10889_v10 = vadd.f32 %v2407_v38, %v10855_v29  ;;  %v2451_v27 = vsel %vm2432_vm4, %v10883_v2, -inf  ;;  %v2448_v59 = vsel %vm2432_vm4, %v10886_v7, -inf }
 0x2df   :  { %v2252_v12 = vpop.f32.mrb[12].mxu1 }
 0x2e0   :  { %v2408_v19 = vmul.f32 0.17677669, %v2252_v12  ;;  %v9437_v55 = vpop.f32.mrb[13].mxu1  ;;  %v2454_v25 = vsel %vm2432_vm4, %v10889_v10, -inf }
 0x2e1   :  { %v2299_v22 = vpop.f32.mrb[16].mxu0  ;;  %2452 = vmax.xlane.f32.xlu1 %v2451_v27  ;;  %2449 = vmax.xlane.f32.xlu0 %v2448_v59  ;;  %v2255_v13 = vpop.f32.mrb[14].mxu1 }
 0x2e2   :  { %v2410_v4 = vmul.f32 0.17677669, %v2299_v22  ;;  %v2409_v23 = vmul.f32 0.17677669, %v2255_v13  ;;  %v9438_v42 = vpop.f32.mrb[15].mxu1  ;;  %v9443_v1 = vpop.f32.mrb[17].mxu0  ;;  %v10896_v50 = vadd.f32 %v2408_v19, %v10852_v49 }
 0x2e3   :  { %v2302_v37 = vpop.f32.mrb[18].mxu0 }
 0x2e4   :  { %v2411_v63 = vmul.f32 0.17677669, %v2302_v37  ;;  %v9444_v24 = vpop.f32.mrb[19].mxu0  ;;  %v2457_v5 = vsel %vm2432_vm4, %v10896_v50, -inf  ;;  %v10903_v16 = vadd.f32 %v2410_v4, %v10852_v49  ;;  %v10906_v28 = vadd.f32 %v2409_v23, %v10855_v29 }
 0x2e5   :  { %2455 = vmax.xlane.f32.xlu0 %v2454_v25  ;;  %2458 = vmax.xlane.f32.xlu1 %v2457_v5 }
 0x2e6   :  { %v10909_v53 = vadd.f32 %v2411_v63, %v10855_v29  ;;  %v2463_v15 = vsel %vm2432_vm4, %v10903_v16, -inf  ;;  %v2460_v31 = vsel %vm2432_vm4, %v10906_v28, -inf }
 0x2e7   :  { %v2346_v60 = vpop.f32.mrb[16].mxu1 }
 0x2e8   :  { %v2412_v14 = vmul.f32 0.17677669, %v2346_v60  ;;  %v9449_v32 = vpop.f32.mrb[17].mxu1  ;;  %v2466_v9 = vsel %vm2432_vm4, %v10909_v53, -inf }
 0x2e9   :  { %v2393_v35 = vpop.f32.mrb[20].mxu0  ;;  %2464 = vmax.xlane.f32.xlu1 %v2463_v15  ;;  %2461 = vmax.xlane.f32.xlu0 %v2460_v31  ;;  %v2349_v58 = vpop.f32.mrb[18].mxu1 }
 0x2ea   :  { %v2414_v47 = vmul.f32 0.17677669, %v2393_v35  ;;  %v2413_v52 = vmul.f32 0.17677669, %v2349_v58  ;;  %v9450_v61 = vpop.f32.mrb[19].mxu1  ;;  %v9455_v8 = vpop.f32.mrb[21].mxu0  ;;  %v10916_v43 = vadd.f32 %v2412_v14, %v10852_v49 }
 0x2eb   :  { %v2396_v30 = vpop.f32.mrb[22].mxu0 }
 0x2ec   :  { %v2415_v45 = vmul.f32 0.17677669, %v2396_v30  ;;  %v9456_v17 = vpop.f32.mrb[23].mxu0  ;;  %v2469_v54 = vsel %vm2432_vm4, %v10916_v43, -inf  ;;  %v10923_v56 = vadd.f32 %v2414_v47, %v10852_v49  ;;  %v10926_v62 = vadd.f32 %v2413_v52, %v10855_v29 }
 0x2ed   :  { %2467 = vmax.xlane.f32.xlu0 %v2466_v9  ;;  %2470 = vmax.xlane.f32.xlu1 %v2469_v54 }
 0x2ee   :  { %v2475_v26 = vsel %vm2432_vm4, %v10923_v56, -inf  ;;  %v2472_v51 = vsel %vm2432_vm4, %v10926_v62, -inf  ;;  %v10933_v38 = vadd.f32 %v2415_v45, %v10855_v29 }
 0x2f0   :  { %v2478_v39 = vsel %vm2432_vm4, %v10933_v38, -inf }
 0x2f1   :  { %2476 = vmax.xlane.f32.xlu1 %v2475_v26  ;;  %2473 = vmax.xlane.f32.xlu0 %v2472_v51 }
 0x2f5   :  { %2479 = vmax.xlane.f32.xlu0 %v2478_v39 }
 0x302   :  { %1491 = vrot.lane.b32.xlu1 %v10509_v11, %s10213_s28 }
 0x306   :  { %1489 = vrot.lane.b32.xlu1 %v10507_v6, %s10207_s7 }
 0x30b   :  { %1487 = vrot.lane.b32.xlu0 %v10509_v11, %s10207_s7 }
 0x30f   :  { %1485 = vrot.lane.b32.xlu0 %v10507_v6, %s10214_s29 }
 0x362   :  { %v2435_v12 = vpop.xlane.xlu0 %2434 }
 0x363   :  { %v2481_v19 = vsub.f32 %v10858_v44, %v2435_v12 }
 0x364   :  { %v2438_v55 = vpop.xlane.xlu1 %2437 }
 0x365   :  { %v2497_v27 = vmul.f32 1.442695, %v2481_v19  ;;  %v2482_v59 = vsub.f32 %v10863_v48, %v2438_v55 }
 0x366   :  { %v2441_v22 = vpop.xlane.xlu0 %2440 }
 0x367   :  { %9921 = vpow2.f32 %v2497_v27  ;;  %v2499_v13 = vmul.f32 1.442695, %v2482_v59  ;;  %v2483_v4 = vsub.f32 %v10866_v46, %v2441_v22 }
 0x369   :  { %9923 = vpow2.f32 %v2499_v13  ;;  %v2501_v23 = vmul.f32 1.442695, %v2483_v4 }
 0x36a   :  { %v2444_v42 = vpop.xlane.xlu0 %2443  ;;  %v2447_v1 = vpop.xlane.xlu1 %2446 }
 0x36b   :  { %9925 = vpow2.f32 %v2501_v23  ;;  %v2484_v37 = vsub.f32 %v10871_v3, %v2444_v42  ;;  %v2485_v25 = vsub.f32 %v10876_v41, %v2447_v1  ;;  %v1499_v23 = vshrl.u32 %v10509_v11, 16 }
 0x36c   :  { %v1497_v42 = vpack.i.b16 %v10945_v57, %v10509_v11  ;;  %v1500_v1 = vshrl.u32 %v10945_v57, 16 }
 0x36d   :  { %v2503_v63 = vmul.f32 1.442695, %v2484_v37  ;;  %v2505_v44 = vmul.f32 1.442695, %v2485_v25 }
 0x36e   :  { %v2453_v24 = vpop.xlane.xlu1 %2452  ;;  %v2450_v5 = vpop.xlane.xlu0 %2449  ;;  %v1527_v11 = vcombine.high %v1497_v42, %v10515_v18 }
 0x36f   :  { %9927 = vpow2.f32 %v2503_v63  ;;  %v2487_v48 = vsub.f32 %v10883_v2, %v2453_v24  ;;  %v2486_v60 = vsub.f32 %v10886_v7, %v2450_v5 }
 0x370   :  { %9929 = vpow2.f32 %v2505_v44 }
 0x371   :  { %v10954_v46 = vpop.eup %9921  ;;  %v2509_v14 = vmul.f32 1.442695, %v2487_v48  ;;  %v2507_v32 = vmul.f32 1.442695, %v2486_v60  ;;  %v1501_v48 = vpack.i.b16 %v1500_v1, %v1499_v23 }
 0x372   :  { %v2456_v15 = vpop.xlane.xlu0 %2455  ;;  %v2459_v31 = vpop.xlane.xlu1 %2458  ;;  %v2529_v3 = vsel %vm2432_vm4, %v10954_v46, 0.0 }
 0x373   :  { %v10958_v41 = vpop.eup %9923  ;;  %9931 = vpow2.f32 %v2509_v14  ;;  %v2488_v35 = vsub.f32 %v10889_v10, %v2456_v15  ;;  %v2489_v58 = vsub.f32 %v10896_v50, %v2459_v31  ;;  %2530 = vadd.xlane.f32.xlu1 %v2529_v3  ;;  %v1534_v3 = vrot.slane %v1497_v42, %v10519_v21 }
 0x374   :  { %9933 = vpow2.f32 %v2507_v32  ;;  %v2532_v2 = vsel %vm2432_vm4, %v10958_v41, 0.0 }
 0x375   :  { %v10964_v7 = vpop.eup %9925  ;;  %v2511_v47 = vmul.f32 1.442695, %v2488_v35  ;;  %v2513_v52 = vmul.f32 1.442695, %v2489_v58  ;;  %2533 = vadd.xlane.f32.xlu0 %v2532_v2 }
 0x376   :  { %v2465_v61 = vpop.xlane.xlu1 %2464  ;;  %v10966_v8 = vpop.xlane.xlu0 %2461  ;;  %v2535_v10 = vsel %vm2432_vm4, %v10964_v7, 0.0 }
 0x377   :  { %9935 = vpow2.f32 %v2511_v47  ;;  %v2491_v30 = vsub.f32 %v10903_v16, %v2465_v61  ;;  %v1541_v47 = vrot.slane %v1527_v11, %v10519_v21 }
 0x378   :  { %9937 = vpow2.f32 %v2513_v52  ;;  %v1593_v52 = vcombine.high %v1501_v48, %v10515_v18 }
 0x379   :  { %v10971_v50 = vpop.eup %9927  ;;  %v2517_v9 = vmul.f32 1.442695, %v2491_v30  ;;  %2536 = vadd.xlane.f32.xlu0 %v2535_v10 }
 0x37a   :  { %v10973_v45 = vpop.eup %9929  ;;  %v2468_v17 = vpop.xlane.xlu0 %2467  ;;  %v2538_v26 = vsel %vm2432_vm4, %v10971_v50, 0.0 }
 0x37b   :  { %v10975_v54 = vpop.xlane.xlu1 %2470  ;;  %9939 = vpow2.f32 %v2517_v9  ;;  %v2492_v51 = vsub.f32 %v10909_v53, %v2468_v17  ;;  %2539 = vadd.xlane.f32.xlu1 %v2538_v26  ;;  %v2541_v16 = vsel %vm2432_vm4, %v10973_v45, 0.0  ;;  %v1600_v17 = vrot.slane %v1501_v48, %v10519_v21 }
 0x37d   :  { %v10982_v39 = vpop.eup %9931  ;;  %v2519_v12 = vmul.f32 1.442695, %v2492_v51  ;;  %2542 = vadd.xlane.f32.xlu0 %v2541_v16 }
 0x37e   :  { %v10984_v19 = vpop.eup %9933  ;;  %v2474_v27 = vpop.xlane.xlu0 %2473  ;;  %v2547_v53 = vsel %vm2432_vm4, %v10982_v39, 0.0 }
 0x37f   :  { %v10986_v55 = vpop.xlane.xlu1 %2476  ;;  %9941 = vpow2.f32 %v2519_v12  ;;  %v2494_v59 = vsub.f32 %v10926_v62, %v2474_v27  ;;  %v2544_v22 = vsel %vm2432_vm4, %v10984_v19, 0.0 }
 0x380   :  { %2545 = vadd.xlane.f32.xlu1 %v2544_v22  ;;  %v1607_v22 = vrot.slane %v1593_v52, %v10519_v21 }
 0x381   :  { %v10993_v13 = vpop.eup %9935  ;;  %2548 = vadd.xlane.f32.xlu0 %v2547_v53  ;;  %v2523_v25 = vmul.f32 1.442695, %v2494_v59 }
 0x382   :  { %v10995_v4 = vpop.eup %9937  ;;  %v2480_v62 = vpop.xlane.xlu0 %2479  ;;  %v2550_v37 = vsel %vm2432_vm4, %v10993_v13, 0.0 }
 0x383   :  { %v2496_v63 = vsub.f32 %v10933_v38, %v2480_v62  ;;  %v1492_v44 = vpop.permute.xlu1 %1491  ;;  %v2553_v24 = vsel %vm2432_vm4, %v10995_v4, 0.0  ;;  %9943 = vpow2.f32 %v2523_v25 }
 0x384   :  { %2551 = vadd.xlane.f32.xlu1 %v2550_v37  ;;  %v1508_v14 = vshrl.u32 %v1492_v44, 16 }
 0x385   :  { %v11006_v5 = vpop.eup %9939  ;;  %2554 = vadd.xlane.f32.xlu0 %v2553_v24  ;;  %v2527_v60 = vmul.f32 1.442695, %v2496_v63 }
 0x386   :  { %v1488_v57 = vpop.permute.xlu0 %1487  ;;  %v2559_v38 = vsel %vm2432_vm4, %v11006_v5, 0.0 }
 0x387   :  { %v1505_v32 = vpack.i.b16 %v1492_v44, %v1488_v57  ;;  %v1507_v15 = vshrl.u32 %v1488_v57, 16  ;;  %9945 = vpow2.f32 %v2527_v60 }
 0x389   :  { %v11011_v31 = vpop.eup %9941  ;;  %v1509_v35 = vpack.i.b16 %v1508_v14, %v1507_v15  ;;  %v1542_v58 = vcombine.high %v1505_v32, %v10515_v18  ;;  %v1549_v2 = vrot.slane %v1505_v32, %v10519_v21  ;;  %2560 = vadd.xlane.f32.xlu0 %v2559_v38 }
 0x38a   :  { %v2562_v51 = vsel %vm2432_vm4, %v11011_v31, 0.0 }
 0x38b   :  { %v1556_v61 = vrot.slane %v1542_v58, %v10519_v21  ;;  %v1557_v30 = vcombine.low %v1534_v3, %v1549_v2  ;;  %v1558_v10 = vcombine.high %v1534_v3, %v1549_v2  ;;  %v1608_v9 = vcombine.high %v1509_v35, %v10515_v18 }
 0x38c   :  { %v1615_v26 = vrot.slane %v1509_v35, %v10519_v21 }
 0x38d   :  { %v1565_v16 = vrot.slane %v1557_v30, %v10528_v40  ;;  %v1572_v12 = vrot.slane %v1558_v10, %v10528_v40  ;;  %v1573_v27 = vcombine.low %v1541_v47, %v1556_v61  ;;  %v1574_v59 = vcombine.high %v1541_v47, %v1556_v61  ;;  %2563 = vadd.xlane.f32.xlu0 %v2562_v51  ;;  %v11032_v11 = vpop.eup %9943 }
 0x38e   :  { %v1622_v53 = vrot.slane %v1608_v9, %v10519_v21  ;;  %v1623_v23 = vcombine.low %v1600_v17, %v1615_v26  ;;  %v1624_v42 = vcombine.high %v1600_v17, %v1615_v26  ;;  %v2568_v52 = vsel %vm2432_vm4, %v11032_v11, 0.0 }
 0x38f   :  { %v1581_v1 = vrot.slane %v1573_v27, %v10528_v40  ;;  %v1588_v62 = vrot.slane %v1574_v59, %v10528_v40  ;;  %v1791_v37 = vcombine.low %v1565_v16, %v1572_v12  ;;  %v8953_v25 = vcombine.high %v1565_v16, %v1572_v12 }
 0x390   :  { %v1631_v63 = vrot.slane %v1623_v23, %v10528_v40  ;;  %v1638_v44 = vrot.slane %v1624_v42, %v10528_v40  ;;  %v1639_v24 = vcombine.low %v1607_v22, %v1622_v53  ;;  %v1640_v48 = vcombine.high %v1607_v22, %v1622_v53 }
 0x391   :  { %v1798_v60 = vrot.slane %v1791_v37, %v10519_v21  ;;  %v1806_v57 = vrot.slane %v8953_v25, %v10519_v21  ;;  %v1807_v14 = vcombine.low %v1581_v1, %v1588_v62  ;;  %v8954_v32 = vcombine.high %v1581_v1, %v1588_v62  ;;  %v11038_v58 = vpop.eup %9945  ;;  %2569 = vadd.xlane.f32.xlu0 %v2568_v52 }
 0x392   :  { %v1647_v15 = vrot.slane %v1639_v24, %v10528_v40  ;;  %v1654_v38 = vrot.slane %v1640_v48, %v10528_v40  ;;  %v1841_v3 = vcombine.low %v1631_v63, %v1638_v44  ;;  %v8955_v35 = vcombine.high %v1631_v63, %v1638_v44 }
 0x393   :  { %v1814_v61 = vrot.slane %v1807_v14, %v10519_v21  ;;  %v1822_v30 = vrot.slane %v8954_v32, %v10519_v21  ;;  %v1823_v10 = vcombine.low %v1798_v60, %v1806_v57  ;;  %v2574_v16 = vsel %vm2432_vm4, %v11038_v58, 0.0 }
 0x394   :  { %v1857_v2 = vcombine.low %v1647_v15, %v1654_v38  ;;  %v8956_v47 = vcombine.high %v1647_v15, %v1654_v38  ;;  %v1848_v9 = vrot.slane %v1841_v3, %v10519_v21  ;;  %v1856_v17 = vrot.slane %v8955_v35, %v10519_v21 }
 0x395   :  { %1493 = vrot.lane.b32.xlu1 %v10507_v6, %s10213_s28  ;;  %v1831_v12 = vcombine.low %v1814_v61, %v1822_v30  ;;  %2575 = vadd.xlane.f32.xlu0 %v2574_v16  ;;  %v1830_v22 = vrot.slane %v1823_v10, %v10528_v40  ;;  %v2490_v15 = vsub.f32 %v10906_v28, %v10966_v8 }
 0x396   :  { %v1864_v26 = vrot.slane %v1857_v2, %v10519_v21  ;;  %v1872_v51 = vrot.slane %v8956_v47, %v10519_v21  ;;  %v1873_v27 = vcombine.low %v1848_v9, %v1856_v17  ;;  %v2493_v3 = vsub.f32 %v10916_v43, %v10975_v54  ;;  %v1490_v54 = vpop.permute.xlu1 %1489 }
 0x397   :  { %v1838_v53 = vrot.slane %v1831_v12, %v10528_v40  ;;  %v2515_v38 = vmul.f32 1.442695, %v2490_v15  ;;  %v2495_v2 = vsub.f32 %v10923_v56, %v10986_v55  ;;  %v1486_v55 = vpop.permute.xlu0 %1485 }
 0x398   :  { %v1881_v59 = vcombine.low %v1864_v26, %v1872_v51  ;;  %v1880_v23 = vrot.slane %v1873_v27, %v10528_v40  ;;  %v2521_v35 = vmul.f32 1.442695, %v2493_v3  ;;  %v1516_v27 = vshrl.u32 %v1486_v55, 16 }
 0x399   :  { %v1839_v1 = vcombine.low %v1830_v22, %v1838_v53  ;;  %v11056_v62 = vcombine.high %v1830_v22, %v1838_v53  ;;  %9947 = vpow2.f32 %v2515_v38  ;;  %v2525_v47 = vmul.f32 1.442695, %v2495_v2 }
 0x39a   :  { %v1888_v42 = vrot.slane %v1881_v59, %v10528_v40  ;;  %9949 = vpow2.f32 %v2521_v35 }
 0x39b   :  { %v1995_v63 = vshrl.u32 %v1839_v1, 16  ;;  %v2003_v44 = vshrl.u32 %v11056_v62, 16  ;;  %9951 = vpow2.f32 %v2525_v47 }
 0x39c   :  { %v1889_v37 = vcombine.low %v1880_v23, %v1888_v42  ;;  %v1890_v25 = vcombine.high %v1880_v23, %v1888_v42  ;;  %v1515_v23 = vshrl.u32 %v10507_v6, 16 }
 0x39e   :  { %v1993_v24 = vpack.i.b16 %v1889_v37, %v1839_v1  ;;  %v1996_v48 = vshrl.u32 %v1889_v37, 16  ;;  %v2001_v60 = vpack.i.b16 %v1890_v25, %v11056_v62  ;;  %v2004_v57 = vshrl.u32 %v1890_v25, 16 }
 0x39f   :  { %v1513_v62 = vpack.i.b16 %v1486_v55, %v10507_v6  ;;  %v1517_v25 = vpack.i.b16 %v1516_v27, %v1515_v23 }
 0x3a0   :  { %9458 = vmatpush3.bf16.msra.mxu1 %v1993_v24  ;;  %v1997_v14 = vpack.i.b16 %v1996_v48, %v1995_v63  ;;  %v11060_v32 = vpack.i.b16 %v2004_v57, %v2003_v44  ;;  %v1523_v24 = vshrl.u32 %v1490_v54, 16 }
 0x3a1   :  { %9469 = vmatprep.subr.bf16.mxu1 %v10212_v20  ;;  %v1659_v6 = vcombine.high %v1513_v62, %v10515_v18  ;;  %v1666_v35 = vrot.slane %v1513_v62, %v10519_v21 }
 0x3a2   :  { %9464 = vmatpush3.bf16.msra.mxu0 %v1997_v14  ;;  %v1725_v14 = vcombine.high %v1517_v25, %v10515_v18 }
 0x3a3   :  { %9475 = vmatprep.subr.bf16.mxu0 %v10212_v20  ;;  %v11070_v52 = vpop.eup %9947 }
 0x3a4   :  { %v2556_v28 = vsel %vm2432_vm4, %v11070_v52, 0.0  ;;  %v11074_v8 = vpop.eup %9949 }
 0x3a5   :  { %v2565_v61 = vsel %vm2432_vm4, %v11074_v8, 0.0  ;;  %v11078_v43 = vpop.eup %9951 }
 0x3a6   :  { %v2571_v56 = vsel %vm2432_vm4, %v11078_v43, 0.0 }
 0x3b9   :  { %2557 = vadd.xlane.f32.xlu1 %v2556_v28 }
 0x3bd   :  { %2566 = vadd.xlane.f32.xlu1 %v2565_v61 }
 0x3c1   :  { %2572 = vadd.xlane.f32.xlu1 %v2571_v56  ;;  %v1673_v56 = vrot.slane %v1659_v6, %v10519_v21 }
 0x400   :  { %v2531_v30 = vpop.xlane.xlu1 %2530 }
 0x401   :  { %9953 = vrcp.f32 %v2531_v30  ;;  %v1739_v30 = vrot.slane %v1725_v14, %v10519_v21 }
 0x402   :  { %v2534_v10 = vpop.xlane.xlu0 %2533 }
 0x403   :  { %9955 = vrcp.f32 %v2534_v10 }
 0x406   :  { %v2537_v9 = vpop.xlane.xlu0 %2536 }
 0x407   :  { %9957 = vrcp.f32 %v2537_v9 }
 0x408   :  { %v2540_v17 = vpop.xlane.xlu1 %2539 }
 0x409   :  { %9959 = vrcp.f32 %v2540_v17 }
 0x40a   :  { %v2543_v26 = vpop.xlane.xlu0 %2542 }
 0x40b   :  { %v9954_v51 = vpop.eup %9953  ;;  %9961 = vrcp.f32 %v2543_v26 }
 0x40c   :  { %v2578_v59 = vmul.f32 %v9954_v51, %v10954_v46 }
 0x40d   :  { %v9956_v16 = vpop.eup %9955  ;;  %v2546_v12 = vpop.xlane.xlu1 %2545 }
 0x40e   :  { %v2580_v22 = vmul.f32 %v9956_v16, %v10958_v41  ;;  %9963 = vrcp.f32 %v2546_v12  ;;  %v2549_v53 = vpop.xlane.xlu0 %2548 }
 0x40f   :  { %9965 = vrcp.f32 %v2549_v53 }
 0x410   :  { %v2609_v42 = vpack.c.bf16 %v2580_v22, %v2578_v59 }
 0x411   :  { %v9958_v1 = vpop.eup %9957  ;;  %v2552_v37 = vpop.xlane.xlu1 %2551 }
 0x412   :  { %9967 = vrcp.f32 %v2552_v37  ;;  %9460 = vmatmul.mubr.msk.bf16.vlgmr.msra.gmra.mrb[20].mxu1 %vm2432_vm4, %v2609_v42  ;;  %v11087_v63 = vpop.xlane.xlu0 %2554  ;;  %v2582_v46 = vmul.f32 %v9958_v1, %v10964_v7  ;;  %v1732_v7 = vrot.slane %v1517_v25, %v10519_v21 }
 0x413   :  { %v9960_v44 = vpop.eup %9959  ;;  %9470 = vmatpush3.bf16.msra.mxu1 %v2001_v60  ;;  %9471 = vmatprep.mubr.msk.bf16.mxu1 %vm10215_vm0, %v10212_v20 }
 0x414   :  { %v2584_v41 = vmul.f32 %v9960_v44, %v10971_v50  ;;  %9481 = vmatprep.subr.bf16.mxu1 %v10212_v20 }
 0x415   :  { %v1494_v48 = vpop.permute.xlu1 %1493  ;;  %v9962_v57 = vpop.eup %9961 }
 0x416   :  { %v1521_v15 = vpack.i.b16 %v1494_v48, %v1490_v54  ;;  %v1524_v38 = vshrl.u32 %v1494_v48, 16  ;;  %v2561_v3 = vpop.xlane.xlu0 %2560  ;;  %v2610_v60 = vpack.c.bf16 %v2584_v41, %v2582_v46  ;;  %v2586_v54 = vmul.f32 %v9962_v57, %v10973_v45 }
 0x418   :  { %v9964_v2 = vpop.eup %9963  ;;  %v1525_v47 = vpack.i.b16 %v1524_v38, %v1523_v24  ;;  %v1674_v50 = vcombine.high %v1521_v15, %v10515_v18  ;;  %v1681_v28 = vrot.slane %v1521_v15, %v10519_v21  ;;  %9466 = vmatmul.mubr.msk.bf16.vlgmr.msra.gmra.mrb[24].mxu0 %vm2432_vm4, %v2610_v60 }
 0x419   :  { %v9966_v61 = vpop.eup %9965  ;;  %v2588_v55 = vmul.f32 %v9964_v2, %v10984_v19  ;;  %9476 = vmatpush3.bf16.msra.mxu0 %v11060_v32  ;;  %9477 = vmatprep.mubr.msk.bf16.mxu0 %vm10215_vm0, %v10212_v20 }
 0x41a   :  { %v1688_v10 = vrot.slane %v1674_v50, %v10519_v21  ;;  %v1689_v9 = vcombine.low %v1666_v35, %v1681_v28  ;;  %v1690_v17 = vcombine.high %v1666_v35, %v1681_v28  ;;  %v2564_v26 = vpop.xlane.xlu0 %2563  ;;  %9487 = vmatprep.subr.bf16.mxu0 %v10212_v20  ;;  %v2590_v51 = vmul.f32 %v9966_v61, %v10982_v39 }
 0x41b   :  { %v1740_v45 = vcombine.high %v1525_v47, %v10515_v18  ;;  %v1747_v19 = vrot.slane %v1525_v47, %v10519_v21  ;;  %v2611_v16 = vpack.c.bf16 %v2588_v55, %v2586_v54  ;;  %9969 = vrcp.f32 %v2564_v26 }
 0x41c   :  { %v9968_v32 = vpop.eup %9967  ;;  %v1697_v12 = vrot.slane %v1689_v9, %v10528_v40  ;;  %v1704_v27 = vrot.slane %v1690_v17, %v10528_v40  ;;  %v1705_v59 = vcombine.low %v1673_v56, %v1688_v10  ;;  %v1706_v22 = vcombine.high %v1673_v56, %v1688_v10 }
 0x41d   :  { %v1754_v53 = vrot.slane %v1740_v45, %v10519_v21  ;;  %v1755_v23 = vcombine.low %v1732_v7, %v1747_v19  ;;  %v1756_v42 = vcombine.high %v1732_v7, %v1747_v19  ;;  %9472 = vmatmul.mubr.msk.bf16.vlgmr.msra.gmra.mrb[24].mxu1 %vm2432_vm4, %v2611_v16  ;;  %v2592_v39 = vmul.f32 %v9968_v32, %v10993_v13 }
 0x41e   :  { %v1713_v1 = vrot.slane %v1705_v59, %v10528_v40  ;;  %v1720_v62 = vrot.slane %v1706_v22, %v10528_v40  ;;  %v1891_v37 = vcombine.low %v1697_v12, %v1704_v27  ;;  %9483 = vmatprep.mubr.msk.bf16.mxu1 %vm10215_vm0, %v10212_v20  ;;  %v8957_v6 = vcombine.high %v1697_v12, %v1704_v27 }
 0x41f   :  { %v1763_v25 = vrot.slane %v1755_v23, %v10528_v40  ;;  %v1770_v44 = vrot.slane %v1756_v42, %v10528_v40  ;;  %v1771_v46 = vcombine.low %v1739_v30, %v1754_v53  ;;  %v1772_v41 = vcombine.high %v1739_v30, %v1754_v53 }
 0x420   :  { %v1898_v24 = vrot.slane %v1891_v37, %v10519_v21  ;;  %v1907_v48 = vcombine.low %v1713_v1, %v1720_v62  ;;  %v8958_v57 = vcombine.high %v1713_v1, %v1720_v62  ;;  %v1906_v60 = vrot.slane %v8957_v6, %v10519_v21 }
 0x421   :  { %v1779_v13 = vrot.slane %v1771_v46, %v10528_v40  ;;  %v1786_v14 = vrot.slane %v1772_v41, %v10528_v40  ;;  %v1941_v15 = vcombine.low %v1763_v25, %v1770_v44  ;;  %v8959_v38 = vcombine.high %v1763_v25, %v1770_v44 }
 0x422   :  { %v2612_v35 = vpack.c.bf16 %v2592_v39, %v2590_v51  ;;  %v1914_v2 = vrot.slane %v1907_v48, %v10519_v21  ;;  %9971 = vrcp.f32 %v2561_v3  ;;  %v1922_v50 = vrot.slane %v8958_v57, %v10519_v21 }
 0x423   :  { %v1957_v7 = vcombine.low %v1779_v13, %v1786_v14  ;;  %v8960_v47 = vcombine.high %v1779_v13, %v1786_v14  ;;  %v1923_v28 = vcombine.low %v1898_v24, %v1906_v60  ;;  %v1948_v61 = vrot.slane %v1941_v15, %v10519_v21 }
 0x424   :  { %9478 = vmatmul.mubr.msk.bf16.vlgmr.msra.gmra.mrb[28].mxu0 %vm2432_vm4, %v2612_v35  ;;  %v1956_v56 = vrot.slane %v8959_v38, %v10519_v21  ;;  %v1931_v54 = vcombine.low %v1914_v2, %v1922_v50  ;;  %9973 = vrcp.f32 %v11087_v63 }
 0x425   :  { %v1964_v55 = vrot.slane %v1957_v7, %v10519_v21  ;;  %v1972_v30 = vrot.slane %v8960_v47, %v10519_v21  ;;  %9489 = vmatprep.mubr.msk.bf16.mxu0 %vm10215_vm0, %v10212_v20  ;;  %v9970_v9 = vpop.eup %9969  ;;  %v1930_v3 = vrot.slane %v1923_v28, %v10528_v40 }
 0x426   :  { %v1973_v10 = vcombine.low %v1948_v61, %v1956_v56  ;;  %v1938_v17 = vrot.slane %v1931_v54, %v10528_v40  ;;  %v2600_v23 = vmul.f32 %v9970_v9, %v11011_v31  ;;  %v2570_v31 = vpop.xlane.xlu0 %2569 }
 0x427   :  { %v1981_v26 = vcombine.low %v1964_v55, %v1972_v30 }
 0x428   :  { %v1939_v51 = vcombine.low %v1930_v3, %v1938_v17  ;;  %v1980_v45 = vrot.slane %v1973_v10, %v10528_v40  ;;  %v1940_v53 = vcombine.high %v1930_v3, %v1938_v17 }
 0x429   :  { %v1988_v19 = vrot.slane %v1981_v26, %v10528_v40 }
 0x42a   :  { %v2011_v59 = vshrl.u32 %v1939_v51, 16  ;;  %v2019_v62 = vshrl.u32 %v1940_v53, 16 }
 0x42b   :  { %v1989_v16 = vcombine.low %v1980_v45, %v1988_v19  ;;  %v1990_v32 = vcombine.high %v1980_v45, %v1988_v19 }
 0x42c   :  { %v9972_v12 = vpop.eup %9971 }
 0x42d   :  { %v2009_v27 = vpack.i.b16 %v1989_v16, %v1939_v51  ;;  %v2012_v22 = vshrl.u32 %v1989_v16, 16  ;;  %v2020_v39 = vshrl.u32 %v1990_v32, 16  ;;  %v2598_v1 = vmul.f32 %v9972_v12, %v11006_v5  ;;  %v2576_v5 = vpop.xlane.xlu0 %2575 }
 0x42e   :  { %v9974_v24 = vpop.eup %9973  ;;  %v2017_v15 = vpack.i.b16 %v1990_v32, %v1940_v53 }
 0x42f   :  { %9482 = vmatpush3.bf16.msra.mxu1 %v2009_v27  ;;  %v2013_v42 = vpack.i.b16 %v2012_v22, %v2011_v59  ;;  %v2614_v37 = vpack.c.bf16 %v2600_v23, %v2598_v1  ;;  %v2021_v25 = vpack.i.b16 %v2020_v39, %v2019_v62  ;;  %v2594_v48 = vmul.f32 %v9974_v24, %v10995_v4 }
 0x430   :  { %9493 = vmatprep.subr.bf16.mxu1 %v10212_v20 }
 0x431   :  { %9488 = vmatpush3.bf16.msra.mxu0 %v2013_v42 }
 0x432   :  { %9499 = vmatprep.subr.bf16.mxu0 %v10212_v20 }
 0x434   :  { %9490 = vmatmul.mubr.msk.bf16.vlgmr.msra.gmra.mrb[32].mxu0 %vm2432_vm4, %v2614_v37 }
 0x435   :  { %9500 = vmatpush3.bf16.msra.mxu0 %v2021_v25  ;;  %9501 = vmatprep.mubr.msk.bf16.mxu0 %vm10215_vm0, %v10212_v20 }
 0x446   :  { %v2558_v44 = vpop.xlane.xlu1 %2557 }
 0x447   :  { %9975 = vrcp.f32 %v2558_v44 }
 0x44a   :  { %v2567_v46 = vpop.xlane.xlu1 %2566 }
 0x44b   :  { %9977 = vrcp.f32 %v2567_v46 }
 0x44c   :  { %9979 = vrcp.f32 %v2570_v31 }
 0x44d   :  { %9981 = vrcp.f32 %v2576_v5 }
 0x44e   :  { %v2573_v41 = vpop.xlane.xlu1 %2572 }
 0x44f   :  { %9983 = vrcp.f32 %v2573_v41 }
 0x451   :  { %v9976_v6 = vpop.eup %9975 }
 0x452   :  { %v2596_v57 = vmul.f32 %v9976_v6, %v11070_v52 }
 0x454   :  { %v2613_v13 = vpack.c.bf16 %v2596_v57, %v2594_v48 }
 0x455   :  { %v9978_v14 = vpop.eup %9977 }
 0x456   :  { %v9980_v38 = vpop.eup %9979  ;;  %9484 = vmatmul.mubr.msk.bf16.vlgmr.msra.gmra.mrb[28].mxu1 %vm2432_vm4, %v2613_v13  ;;  %v2602_v60 = vmul.f32 %v9978_v14, %v11074_v8 }
 0x457   :  { %v9982_v63 = vpop.eup %9981  ;;  %9494 = vmatpush3.bf16.msra.mxu1 %v2017_v15  ;;  %9495 = vmatprep.mubr.msk.bf16.mxu1 %vm10215_vm0, %v10212_v20  ;;  %v2604_v2 = vmul.f32 %v9980_v38, %v11032_v11 }
 0x458   :  { %v2608_v4 = vmul.f32 %v9982_v63, %v11038_v58 }
 0x459   :  { %v9984_v35 = vpop.eup %9983  ;;  %v2615_v7 = vpack.c.bf16 %v2604_v2, %v2602_v60 }
 0x45a   :  { %v2606_v52 = vmul.f32 %v9984_v35, %v11078_v43 }
 0x45c   :  { %v2616_v47 = vpack.c.bf16 %v2608_v4, %v2606_v52 }
 0x45e   :  { %9496 = vmatmul.mubr.msk.bf16.vlgmr.msra.gmra.mrb[32].mxu1 %vm2432_vm4, %v2615_v7  ;;  %9502 = vmatmul.mubr.msk.bf16.vlgmr.msra.gmra.mrb[36].mxu0 %vm2432_vm4, %v2616_v47 }
 0x45f   :  { %3910 = vmatprep.mubr.bf16.mxu0 %v10211_v0 }
 0x4e5   :  { %v2654_v50 = vpop.f32.mrb[20].mxu1 }
 0x4e6   :  { %v9461_v28 = vpop.f32.mrb[21].mxu1 }
 0x4e7   :  { %v2657_v61 = vpop.f32.mrb[22].mxu1 }
 0x4e8   :  { %v9462_v56 = vpop.f32.mrb[23].mxu1 }
 0x4eb   :  { %v2698_v8 = vpop.f32.mrb[24].mxu0 }
 0x4ec   :  { %v9467_v54 = vpop.f32.mrb[25].mxu0 }
 0x4ed   :  { %v2701_v55 = vpop.f32.mrb[26].mxu0 }
 0x4ee   :  { %v9468_v11 = vpop.f32.mrb[27].mxu0 }
 0x4f0   :  { %v2742_v30 = vpop.f32.mrb[24].mxu1 }
 0x4f1   :  { %v2969_v58 = vcombine.low %v2654_v50, %v2742_v30  ;;  %v2970_v10 = vcombine.high %v2654_v50, %v2742_v30  ;;  %v9473_v43 = vpop.f32.mrb[25].mxu1 }
 0x4f2   :  { %v2745_v9 = vpop.f32.mrb[26].mxu1 }
 0x4f3   :  { %v3037_v3 = vcombine.low %v2657_v61, %v2745_v9  ;;  %v3038_v17 = vcombine.high %v2657_v61, %v2745_v9  ;;  %v9474_v26 = vpop.f32.mrb[27].mxu1  ;;  %v2977_v32 = vrot.slane %v2969_v58, %v10519_v21  ;;  %v2984_v12 = vrot.slane %v2970_v10, %v10519_v21 }
 0x4f5   :  { %v3045_v25 = vrot.slane %v3037_v3, %v10519_v21  ;;  %v3052_v31 = vrot.slane %v3038_v17, %v10519_v21 }
 0x4f7   :  { %v2786_v51 = vpop.f32.mrb[28].mxu0 }
 0x4f8   :  { %v2985_v45 = vcombine.low %v2698_v8, %v2786_v51  ;;  %v2986_v19 = vcombine.high %v2698_v8, %v2786_v51  ;;  %v9479_v16 = vpop.f32.mrb[29].mxu0 }
 0x4f9   :  { %v2789_v27 = vpop.f32.mrb[30].mxu0 }
 0x4fa   :  { %v2993_v59 = vrot.slane %v2985_v45, %v10519_v21  ;;  %v3000_v22 = vrot.slane %v2986_v19, %v10519_v21  ;;  %v3053_v53 = vcombine.low %v2701_v55, %v2789_v27  ;;  %v3054_v23 = vcombine.high %v2701_v55, %v2789_v27  ;;  %v9480_v42 = vpop.f32.mrb[31].mxu0 }
 0x4fc   :  { %v3001_v39 = vcombine.low %v2977_v32, %v2993_v59  ;;  %v3002_v1 = vcombine.high %v2977_v32, %v2993_v59  ;;  %v3017_v62 = vcombine.low %v2984_v12, %v3000_v22  ;;  %v3018_v37 = vcombine.high %v2984_v12, %v3000_v22 }
 0x4fd   :  { %v3061_v44 = vrot.slane %v3053_v53, %v10519_v21  ;;  %v3068_v5 = vrot.slane %v3054_v23, %v10519_v21 }
 0x4fe   :  { %v3009_v46 = vrot.slane %v3001_v39, %v10528_v40  ;;  %v3016_v41 = vrot.slane %v3002_v1, %v10528_v40  ;;  %v3025_v24 = vrot.slane %v3017_v62, %v10528_v40  ;;  %v3032_v6 = vrot.slane %v3018_v37, %v10528_v40  ;;  %v9769_v39 = vld [vmem:[#allocation2] sm:$0xff]   ;;  %v9770_v1 = vld [vmem:[#allocation2 + $0x8] sm:$0xff]  }
 0x4ff   :  { %v3069_v48 = vcombine.low %v3045_v25, %v3061_v44  ;;  %v3070_v57 = vcombine.high %v3045_v25, %v3061_v44  ;;  %v3085_v13 = vcombine.low %v3052_v31, %v3068_v5  ;;  %v3086_v14 = vcombine.high %v3052_v31, %v3068_v5  ;;  %9505 = vmatprep.subr.bf16.mxu1 %v9769_v39 }
 0x500   :  { %v3241_v15 = vcombine.low %v3009_v46, %v3016_v41  ;;  %v8977_v38 = vcombine.high %v3009_v46, %v3016_v41  ;;  %v3257_v63 = vcombine.low %v3025_v24, %v3032_v6  ;;  %v8978_v60 = vcombine.high %v3025_v24, %v3032_v6  ;;  %9506 = vmatpush3.bf16.msra.mxu1 %v9769_v39 }
 0x501   :  { %v3077_v35 = vrot.slane %v3069_v48, %v10528_v40  ;;  %v3084_v2 = vrot.slane %v3070_v57, %v10528_v40  ;;  %v3093_v4 = vrot.slane %v3085_v13, %v10528_v40  ;;  %v3100_v52 = vrot.slane %v3086_v14, %v10528_v40  ;;  %9507 = vmatprep.subr.bf16.mxu1 %v9770_v1  ;;  %v9771_v48 = vld [vmem:[#allocation2 + $0x10] sm:$0xff]  }
 0x502   :  { %v3248_v7 = vrot.slane %v3241_v15, %v10519_v21  ;;  %v3256_v47 = vrot.slane %v8977_v38, %v10519_v21  ;;  %v3264_v50 = vrot.slane %v3257_v63, %v10519_v21  ;;  %v3272_v28 = vrot.slane %v8978_v60, %v10519_v21  ;;  %v9772_v15 = vld [vmem:[#allocation2 + $0x18] sm:$0xff]   ;;  %v9773_v38 = vld [vmem:[#allocation2 + $0x20] sm:$0xff]   ;;  %v9774_v63 = vld [vmem:[#allocation2 + $0x28] sm:$0xff]  }
 0x503   :  { %v3309_v61 = vcombine.low %v3077_v35, %v3084_v2  ;;  %v8979_v56 = vcombine.high %v3077_v35, %v3084_v2  ;;  %v3325_v8 = vcombine.low %v3093_v4, %v3100_v52  ;;  %v8980_v54 = vcombine.high %v3093_v4, %v3100_v52 }
 0x504   :  { %v3273_v55 = vcombine.low %v3248_v7, %v3256_v47  ;;  %v3289_v11 = vcombine.low %v3264_v50, %v3272_v28  ;;  %v3274_v30 = vcombine.high %v3248_v7, %v3256_v47  ;;  %v3290_v58 = vcombine.high %v3264_v50, %v3272_v28  ;;  %9508 = vmatpush3.bf16.msra.mxu1 %v9770_v1 }
 0x505   :  { %v3316_v10 = vrot.slane %v3309_v61, %v10519_v21  ;;  %v3324_v43 = vrot.slane %v8979_v56, %v10519_v21  ;;  %v3332_v9 = vrot.slane %v3325_v8, %v10519_v21  ;;  %v3340_v3 = vrot.slane %v8980_v54, %v10519_v21  ;;  %9509 = vmatprep.subr.bf16.mxu1 %v9771_v48 }
 0x506   :  { %v11186_v17 = vrot.slane %v3273_v55, %v10528_v40  ;;  %v11189_v26 = vrot.slane %v3289_v11, %v10528_v40  ;;  %v3288_v51 = vrot.slane %v3274_v30, %v10528_v40  ;;  %v3304_v45 = vrot.slane %v3290_v58, %v10528_v40 }
 0x507   :  { %v2874_v19 = vpop.f32.mrb[32].mxu0  ;;  %v3341_v16 = vcombine.low %v3316_v10, %v3324_v43  ;;  %v3357_v32 = vcombine.low %v3332_v9, %v3340_v3  ;;  %v3342_v12 = vcombine.high %v3316_v10, %v3324_v43  ;;  %v3358_v27 = vcombine.high %v3332_v9, %v3340_v3 }
 0x508   :  { %v9491_v59 = vpop.f32.mrb[33].mxu0  ;;  %v3305_v22 = vcombine.low %v11186_v17, %v11189_v26  ;;  %v3306_v53 = vcombine.high %v11186_v17, %v11189_v26  ;;  %v3307_v23 = vcombine.low %v3288_v51, %v3304_v45  ;;  %v3308_v42 = vcombine.high %v3288_v51, %v3304_v45  ;;  %9510 = vmatpush3.bf16.msra.mxu1 %v9771_v48 }
 0x509   :  { %v11197_v62 = vpop.f32.mrb[34].mxu0  ;;  %v11200_v37 = vrot.slane %v3341_v16, %v10528_v40  ;;  %v11203_v25 = vrot.slane %v3357_v32, %v10528_v40  ;;  %v3356_v31 = vrot.slane %v3342_v12, %v10528_v40  ;;  %v3372_v44 = vrot.slane %v3358_v27, %v10528_v40  ;;  %9511 = vmatprep.subr.bf16.mxu1 %v9772_v15 }
 0x50a   :  { %v9492_v5 = vpop.f32.mrb[35].mxu0 }
 0x50b   :  { %v3374_v46 = vcombine.high %v11200_v37, %v11203_v25  ;;  %v3373_v41 = vcombine.low %v11200_v37, %v11203_v25  ;;  %v3375_v24 = vcombine.low %v3356_v31, %v3372_v44  ;;  %v3376_v6 = vcombine.high %v3356_v31, %v3372_v44 }
 0x50c   :  { %9512 = vmatpush3.bf16.msra.mxu1 %v9772_v15 }
 0x50d   :  { %v9677_v57 = vpack.i.bf16 %v3374_v46, %v3306_v53  ;;  %v9682_v13 = vpack.i.bf16 %v3375_v24, %v3307_v23  ;;  %v11211_v14 = vpack.i.bf16 %v3376_v6, %v3308_v42  ;;  %9513 = vmatprep.subr.bf16.mxu1 %v9773_v38 }
 0x50f   :  { %9678 = vrot.lane.b32.xlu1 %v9677_v57, %s10213_s28 }
 0x510   :  { %9514 = vmatpush3.bf16.msra.mxu1 %v9773_v38 }
 0x511   :  { %9515 = vmatprep.subr.bf16.mxu1 %v9774_v63 }
 0x513   :  { %9683 = vrot.lane.b32.xlu1 %v9682_v13, %s10207_s7 }
 0x514   :  { %9516 = vmatpush3.bf16.msra.mxu1 %v9774_v63 }
 0x529   :  { %v2830_v60 = vpop.f32.mrb[28].mxu1 }
 0x52a   :  { %v9485_v35 = vpop.f32.mrb[29].mxu1 }
 0x52b   :  { %v2833_v2 = vpop.f32.mrb[30].mxu1 }
 0x52c   :  { %v9486_v4 = vpop.f32.mrb[31].mxu1 }
 0x531   :  { %v2918_v52 = vpop.f32.mrb[32].mxu1  ;;  %v2962_v7 = vpop.f32.mrb[36].mxu0 }
 0x532   :  { %v3105_v47 = vcombine.low %v2830_v60, %v2918_v52  ;;  %v3106_v50 = vcombine.high %v2830_v60, %v2918_v52  ;;  %v3121_v28 = vcombine.low %v2874_v19, %v2962_v7  ;;  %v3122_v61 = vcombine.high %v2874_v19, %v2962_v7  ;;  %v9497_v56 = vpop.f32.mrb[33].mxu1  ;;  %v9503_v8 = vpop.f32.mrb[37].mxu0 }
 0x533   :  { %v2921_v54 = vpop.f32.mrb[34].mxu1  ;;  %v2965_v55 = vpop.f32.mrb[38].mxu0 }
 0x534   :  { %v3113_v11 = vrot.slane %v3105_v47, %v10519_v21  ;;  %v3120_v30 = vrot.slane %v3106_v50, %v10519_v21  ;;  %v3129_v58 = vrot.slane %v3121_v28, %v10519_v21  ;;  %v3136_v10 = vrot.slane %v3122_v61, %v10519_v21  ;;  %v9498_v43 = vpop.f32.mrb[35].mxu1  ;;  %v9504_v9 = vpop.f32.mrb[39].mxu0 }
 0x535   :  { %v3173_v3 = vcombine.low %v2833_v2, %v2921_v54  ;;  %v3174_v51 = vcombine.high %v2833_v2, %v2921_v54  ;;  %v3189_v45 = vcombine.low %v11197_v62, %v2965_v55  ;;  %v3190_v19 = vcombine.high %v11197_v62, %v2965_v55  ;;  %v9775_v55 = vld [vmem:[#allocation2 + $0x30] sm:$0xff]  }
 0x536   :  { %v3137_v16 = vcombine.low %v3113_v11, %v3129_v58  ;;  %v3138_v32 = vcombine.high %v3113_v11, %v3129_v58  ;;  %v3153_v12 = vcombine.low %v3120_v30, %v3136_v10  ;;  %v3154_v27 = vcombine.high %v3120_v30, %v3136_v10  ;;  %9517 = vmatprep.subr.bf16.mxu1 %v9775_v55 }
 0x537   :  { %v3181_v59 = vrot.slane %v3173_v3, %v10519_v21  ;;  %v3188_v53 = vrot.slane %v3174_v51, %v10519_v21  ;;  %v3197_v23 = vrot.slane %v3189_v45, %v10519_v21  ;;  %v3204_v42 = vrot.slane %v3190_v19, %v10519_v21  ;;  %9518 = vmatpush3.bf16.msra.mxu1 %v9775_v55 }
 0x538   :  { %v3145_v39 = vrot.slane %v3137_v16, %v10528_v40  ;;  %v3152_v1 = vrot.slane %v3138_v32, %v10528_v40  ;;  %v3161_v31 = vrot.slane %v3153_v12, %v10528_v40  ;;  %v3168_v62 = vrot.slane %v3154_v27, %v10528_v40 }
 0x539   :  { %v3205_v44 = vcombine.low %v3181_v59, %v3197_v23  ;;  %v3206_v5 = vcombine.high %v3181_v59, %v3197_v23  ;;  %v3221_v46 = vcombine.low %v3188_v53, %v3204_v42  ;;  %v3222_v24 = vcombine.high %v3188_v53, %v3204_v42 }
 0x53a   :  { %v3377_v6 = vcombine.low %v3145_v39, %v3152_v1  ;;  %v8981_v48 = vcombine.high %v3145_v39, %v3152_v1  ;;  %v3393_v57 = vcombine.low %v3161_v31, %v3168_v62  ;;  %v8982_v13 = vcombine.high %v3161_v31, %v3168_v62  ;;  %v9776_v31 = vld [vmem:[#allocation2 + $0x38] sm:$0xff]  }
 0x53b   :  { %v3213_v15 = vrot.slane %v3205_v44, %v10528_v40  ;;  %v3220_v38 = vrot.slane %v3206_v5, %v10528_v40  ;;  %v3229_v63 = vrot.slane %v3221_v46, %v10528_v40  ;;  %v3236_v60 = vrot.slane %v3222_v24, %v10528_v40  ;;  %9519 = vmatprep.subr.bf16.mxu1 %v9776_v31 }
 0x53c   :  { %v3384_v35 = vrot.slane %v3377_v6, %v10519_v21  ;;  %v3392_v2 = vrot.slane %v8981_v48, %v10519_v21  ;;  %v3400_v4 = vrot.slane %v3393_v57, %v10519_v21  ;;  %v3408_v52 = vrot.slane %v8982_v13, %v10519_v21  ;;  %9520 = vmatpush3.bf16.msra.mxu1 %v9776_v31 }
 0x53d   :  { %v3445_v7 = vcombine.low %v3213_v15, %v3220_v38  ;;  %v8983_v47 = vcombine.high %v3213_v15, %v3220_v38  ;;  %v3461_v50 = vcombine.low %v3229_v63, %v3236_v60  ;;  %v8984_v28 = vcombine.high %v3229_v63, %v3236_v60 }
 0x53e   :  { %v3410_v61 = vcombine.high %v3384_v35, %v3392_v2  ;;  %v3426_v56 = vcombine.high %v3400_v4, %v3408_v52  ;;  %v3409_v8 = vcombine.low %v3384_v35, %v3392_v2  ;;  %v3425_v54 = vcombine.low %v3400_v4, %v3408_v52 }
 0x53f   :  { %v3452_v11 = vrot.slane %v3445_v7, %v10519_v21  ;;  %v3460_v30 = vrot.slane %v8983_v47, %v10519_v21  ;;  %v3468_v58 = vrot.slane %v3461_v50, %v10519_v21  ;;  %v3476_v10 = vrot.slane %v8984_v28, %v10519_v21 }
 0x540   :  { %v3424_v43 = vrot.slane %v3410_v61, %v10528_v40  ;;  %v3440_v9 = vrot.slane %v3426_v56, %v10528_v40  ;;  %v3417_v3 = vrot.slane %v3409_v8, %v10528_v40  ;;  %v3433_v51 = vrot.slane %v3425_v54, %v10528_v40 }
 0x541   :  { %v3478_v45 = vcombine.high %v3452_v11, %v3460_v30  ;;  %v3494_v19 = vcombine.high %v3468_v58, %v3476_v10  ;;  %v3477_v16 = vcombine.low %v3452_v11, %v3460_v30  ;;  %v3493_v32 = vcombine.low %v3468_v58, %v3476_v10 }
 0x542   :  { %v3443_v12 = vcombine.low %v3424_v43, %v3440_v9  ;;  %v3441_v27 = vcombine.low %v3417_v3, %v3433_v51  ;;  %v3442_v59 = vcombine.high %v3417_v3, %v3433_v51  ;;  %v3444_v53 = vcombine.high %v3424_v43, %v3440_v9  ;;  %v8985_v3 = vld [vmem:[%s12313_s4] ss:$0 sm:$0xff] }
 0x543   :  { %v3492_v23 = vrot.slane %v3478_v45, %v10528_v40  ;;  %v3508_v42 = vrot.slane %v3494_v19, %v10528_v40  ;;  %v3485_v39 = vrot.slane %v3477_v16, %v10528_v40  ;;  %v3501_v1 = vrot.slane %v3493_v32, %v10528_v40 }
 0x545   :  { %v3511_v62 = vcombine.low %v3492_v23, %v3508_v42  ;;  %v3510_v44 = vcombine.high %v3485_v39, %v3501_v1  ;;  %v3509_v5 = vcombine.low %v3485_v39, %v3501_v1  ;;  %v3512_v46 = vcombine.high %v3492_v23, %v3508_v42  ;;  %v10082_v23 = vld [vmem:[%s12309_s0 + $0x8] sm:$0xff]  ;;  %v10083_v1 = vld [vmem:[%s12309_s0 + $0x10] sm:$0xff] }
 0x547   :  { %v9697_v24 = vpack.i.bf16 %v3511_v62, %v3443_v12  ;;  %v9687_v6 = vpack.i.bf16 %v3510_v44, %v3442_v59  ;;  %v9702_v48 = vpack.i.bf16 %v3512_v46, %v3444_v53  ;;  %v10081_v59 = vld [vmem:[%s12309_s0] sm:$0xff]  ;;  %v10084_v62 = vld [vmem:[%s12309_s0 + $0x18] sm:$0xff] }
 0x548   :  { %v9779_v46 = vld [vmem:[#allocation5 + $0x4] ss:$8 sps:$4 sm:$0xff]  }
 0x549   :  { %9698 = vrot.lane.b32.xlu1 %v9697_v24, %s10207_s7  ;;  %9688 = vrot.lane.b32.xlu0 %v9687_v6, %s10213_s28  ;;  %v9782_v24 = vld [vmem:[#allocation5 + $0x14] ss:$8 sps:$4 sm:$0xff]   ;;  %v9780_v6 = vld [vmem:[#allocation5 + $0x10] ss:$8 sps:$4 sm:$0xff]  }
 0x54a   :  { %3878 = vmatprep.subr.bf16.mxu0 %v9779_v46 }
 0x54d   :  { %9703 = vrot.lane.b32.xlu1 %v9702_v48, %s10214_s29  ;;  %9693 = vrot.lane.b32.xlu0 %v11211_v14, %s10214_s29 }
 0x581   :  { %v9679_v57 = vpop.permute.xlu1 %9678 }
 0x582   :  { %v9681_v15 = vunpack.i.h.bf16 %v9679_v57  ;;  %v9680_v38 = vunpack.i.l.bf16 %v9679_v57 }
 0x584   :  { %v3561_v14 = vsel %vm2023_vm1, %v3305_v22, %v9680_v38  ;;  %v3562_v61 = vsel %vm2023_vm1, %v3373_v41, %v9681_v15 }
 0x585   :  { %v9684_v13 = vpop.permute.xlu1 %9683 }
 0x586   :  { %v9686_v4 = vunpack.i.h.bf16 %v9684_v13  ;;  %v9685_v52 = vunpack.i.l.bf16 %v9684_v13 }
 0x588   :  { %v3566_v58 = vsel %vm3565_vm5, %v3561_v14, %v9685_v52  ;;  %v3567_v10 = vsel %vm3565_vm5, %v3562_v61, %v9686_v4  ;;  %v9785_v61 = vld [vmem:[#allocation5 + $0x24] ss:$8 sps:$4 sm:$0xff]  }
 0x5bb   :  { %v9699_v63 = vpop.permute.xlu1 %9698  ;;  %v9689_v60 = vpop.permute.xlu0 %9688 }
 0x5bc   :  { %v9691_v35 = vunpack.i.h.bf16 %v9689_v60  ;;  %v9690_v2 = vunpack.i.l.bf16 %v9689_v60  ;;  %v9701_v7 = vunpack.i.h.bf16 %v9699_v63  ;;  %v9700_v47 = vunpack.i.l.bf16 %v9699_v63 }
 0x5be   :  { %v3563_v50 = vsel %vm2023_vm1, %v3441_v27, %v9690_v2  ;;  %v3564_v28 = vsel %vm2023_vm1, %v3509_v5, %v9691_v35  ;;  %v9777_v5 = vld [vmem:[#allocation5] ss:$8 sps:$4 sm:$0xff]  }
 0x5bf   :  { %v9704_v56 = vpop.permute.xlu1 %9703  ;;  %v9694_v8 = vpop.permute.xlu0 %9693  ;;  %v3568_v17 = vsel %vm3565_vm5, %v3563_v50, %v9700_v47  ;;  %v3569_v26 = vsel %vm3565_vm5, %v3564_v28, %v9701_v7  ;;  %3879 = vmatpush1.bf16.msra.mxu0 %v9777_v5 }
 0x5c0   :  { %v9706_v54 = vunpack.i.h.bf16 %v9704_v56  ;;  %v9705_v55 = vunpack.i.l.bf16 %v9704_v56  ;;  %v9696_v11 = vunpack.i.h.bf16 %v9694_v8  ;;  %v9695_v30 = vunpack.i.l.bf16 %v9694_v8  ;;  %3880 = vmatprep.subr.bf16.mxu0 %v9782_v24  ;;  %v9783_v56 = vld [vmem:[#allocation5 + $0x20] ss:$8 sps:$4 sm:$0xff]   ;;  %v9788_v8 = vld [vmem:[#allocation5 + $0x34] ss:$8 sps:$4 sm:$0xff]  }
 0x5c1   :  { %v8994_v24 = vld [vmem:[%s12314_s5] ss:$0 sm:$0xff] }
 0x5c2   :  { %v3573_v22 = vsel %vm3570_vm6, %v3568_v17, %v9705_v55  ;;  %v3574_v37 = vsel %vm3570_vm6, %v3569_v26, %v9706_v54  ;;  %v3571_v25 = vsel %vm3570_vm6, %v3566_v58, %v9695_v30  ;;  %v3572_v41 = vsel %vm3570_vm6, %v3567_v10, %v9696_v11  ;;  %v9786_v54 = vld [vmem:[#allocation5 + $0x30] ss:$8 sps:$4 sm:$0xff]   ;;  %v9791_v55 = vld [vmem:[#allocation5 + $0x44] ss:$8 sps:$4 sm:$0xff]   ;;  %v9789_v11 = vld [vmem:[#allocation5 + $0x40] ss:$8 sps:$4 sm:$0xff]  }
 0x5c3   :  { %v3576_v43 = vpack.c.bf16 %v3574_v37, %v3573_v22  ;;  %v3575_v9 = vpack.c.bf16 %v3572_v41, %v3571_v25  ;;  %3881 = vmatpush1.bf16.msra.mxu0 %v9780_v6  ;;  %v9794_v30 = vld [vmem:[#allocation5 + $0x54] ss:$8 sps:$4 sm:$0xff]   ;;  %v9792_v58 = vld [vmem:[#allocation5 + $0x50] ss:$8 sps:$4 sm:$0xff]   ;;  %v9797_v10 = vld [vmem:[#allocation5 + $0x64] ss:$8 sps:$4 sm:$0xff]  }
 0x5c4   :  { %3882 = vmatprep.subr.bf16.mxu0 %v9785_v61  ;;  %v9795_v17 = vld [vmem:[#allocation5 + $0x60] ss:$8 sps:$4 sm:$0xff]   ;;  %v9800_v26 = vld [vmem:[#allocation5 + $0x74] ss:$8 sps:$4 sm:$0xff]   ;;  %v9798_v22 = vld [vmem:[#allocation5 + $0x70] ss:$8 sps:$4 sm:$0xff]  }
 0x5c5   :  { %9521 = vmatprep.mubr.bf16.mxu1 %v3575_v9  ;;  %v9801_v37 = vld [vmem:[#allocation7 + $0x40] sm:$0xff]   ;;  %v9803_v41 = vld [vmem:[#allocation7 + $0x48] sm:$0xff]   ;;  %v9805_v9 = vld [vmem:[#allocation7 + $0x50] sm:$0xff]  }
 0x5c6   :  { %9522 = vmatmul.mubr.bf16.vlgmr.msra.gmra.mrb[36].mxu1 %v3576_v43  ;;  %v9802_v25 = vld [vmem:[#allocation7] sm:$0xff]   ;;  %9281 = vmatprep.subr.bf16.mxu1 %v9801_v37  ;;  %v9804_v43 = vld [vmem:[#allocation7 + $0x8] sm:$0xff]  }
 0x5c7   :  { %3883 = vmatpush1.bf16.msra.mxu0 %v9783_v56  ;;  %9282 = vmatpush3.bf16.msra.mxu1 %v9802_v25 }
 0x5c8   :  { %3884 = vmatprep.subr.bf16.mxu0 %v9788_v8  ;;  %9283 = vmatprep.subr.bf16.mxu1 %v9803_v41 }
 0x5cb   :  { %3885 = vmatpush1.bf16.msra.mxu0 %v9786_v54  ;;  %9284 = vmatpush3.bf16.msra.mxu1 %v9804_v43  ;;  %v9813_v54 = vld [vmem:[#allocation7 + $0x70] sm:$0xff]  }
 0x5cc   :  { %3886 = vmatprep.subr.bf16.mxu0 %v9791_v55  ;;  %9285 = vmatprep.subr.bf16.mxu1 %v9805_v9  ;;  %v9814_v55 = vld [vmem:[#allocation7 + $0x30] sm:$0xff]  }
 0x5cf   :  { %3887 = vmatpush1.bf16.msra.mxu0 %v9789_v11  ;;  %v9816_v11 = vld [vmem:[#allocation7 + $0x38] sm:$0xff]  }
 0x5d0   :  { %3888 = vmatprep.subr.bf16.mxu0 %v9794_v30  ;;  %v3786_v30 = vld [vmem:[%s12317_s8] sm:$0x3] }
 0x5d3   :  { %3889 = vmatpush1.bf16.msra.mxu0 %v9792_v58  ;;  %v3791_v58 = vrot.slane %v3786_v30, %v10458_v34 }
 0x5d4   :  { %3890 = vmatprep.subr.bf16.mxu0 %v9797_v10  ;;  %v3795_v10 = vrot.slane %v3786_v30, %v10464_v36 }
 0x5d7   :  { %3891 = vmatpush1.bf16.msra.mxu0 %v9795_v17 }
 0x5d8   :  { %3892 = vmatprep.subr.bf16.mxu0 %v9800_v26 }
 0x5db   :  { %3893 = vmatpush1.bf16.msra.mxu0 %v9798_v22 }
 0x699   :  { %v9523_v51 = vpop.f32.mrb[36].mxu1 }
 0x69a   :  { %v3682_v45 = vpop.f32.mrb[37].mxu1  ;;  %v3691_v12 = vadd.f32 %v9523_v51, %v8985_v3  ;;  %v9807_v51 = vld [vmem:[#allocation7 + $0x58] sm:$0xff]  }
 0x69b   :  { %v3683_v19 = vadd.f32 %v8985_v3, %v3682_v45  ;;  %v9524_v16 = vpop.f32.mrb[38].mxu1  ;;  %v9808_v45 = vld [vmem:[#allocation7 + $0x18] sm:$0xff]  }
 0x69c   :  { %v3685_v32 = vpop.f32.mrb[39].mxu1  ;;  %v3694_v39 = vadd.f32 %v9524_v16, %v8985_v3  ;;  %v3699_v31 = vadd.f32 %v10083_v1, %v3691_v12  ;;  %v9810_v16 = vld [vmem:[#allocation7 + $0x20] sm:$0xff]  }
 0x69d   :  { %v3686_v27 = vadd.f32 %v8985_v3, %v3685_v32  ;;  %v3697_v53 = vadd.f32 %v10081_v59, %v3683_v19  ;;  %v9806_v3 = vld [vmem:[#allocation7 + $0x10] sm:$0xff]   ;;  %v9809_v19 = vld [vmem:[#allocation7 + $0x60] sm:$0xff]   ;;  %v9811_v32 = vld [vmem:[#allocation7 + $0x68] sm:$0xff]  }
 0x69e   :  { %v3700_v44 = vadd.f32 %v10084_v62, %v3694_v39  ;;  %9286 = vmatpush3.bf16.msra.mxu1 %v9806_v3 }
 0x69f   :  { %3703 = vadd.xlane.f32.xlu0 %v3697_v53  ;;  %v3698_v42 = vadd.f32 %v10082_v23, %v3686_v27  ;;  %9287 = vmatprep.subr.bf16.mxu1 %v9807_v51 }
 0x6a1   :  { %3705 = vadd.xlane.f32.xlu1 %v3698_v42 }
 0x6a2   :  { %9288 = vmatpush3.bf16.msra.mxu1 %v9808_v45 }
 0x6a3   :  { %3707 = vadd.xlane.f32.xlu0 %v3699_v31  ;;  %9289 = vmatprep.subr.bf16.mxu1 %v9809_v19 }
 0x6a6   :  { %9290 = vmatpush3.bf16.msra.mxu1 %v9810_v16 }
 0x6a7   :  { %3709 = vadd.xlane.f32.xlu0 %v3700_v44  ;;  %9291 = vmatprep.subr.bf16.mxu1 %v9811_v32 }
 0x72c   :  { %v3704_v48 = vpop.xlane.xlu0 %3703 }
 0x72d   :  { %v3712_v57 = vmul.f32 0.0078125, %v3704_v48 }
 0x72e   :  { %v3706_v13 = vpop.xlane.xlu1 %3705 }
 0x72f   :  { %v11287_v15 = vsub.f32 %v3697_v53, %v3712_v57  ;;  %v3713_v38 = vmul.f32 0.0078125, %v3706_v13 }
 0x730   :  { %v3708_v63 = vpop.xlane.xlu0 %3707 }
 0x731   :  { %v11289_v60 = vsub.f32 %v3698_v42, %v3713_v38  ;;  %v3714_v35 = vmul.f32 0.0078125, %v3708_v63  ;;  %v3720_v2 = vmul.f32 %v11287_v15, %v11287_v15  ;;  %v8995_v63 = vld [vmem:[%s12315_s6] ss:$0 sm:$0xff] }
 0x733   :  { %v11293_v4 = vsub.f32 %v3699_v31, %v3714_v35  ;;  %3724 = vadd.xlane.f32.xlu1 %v3720_v2  ;;  %v3721_v52 = vmul.f32 %v11289_v60, %v11289_v60 }
 0x734   :  { %v3710_v7 = vpop.xlane.xlu0 %3709 }
 0x735   :  { %v3715_v47 = vmul.f32 0.0078125, %v3710_v7  ;;  %3726 = vadd.xlane.f32.xlu0 %v3721_v52  ;;  %v3722_v50 = vmul.f32 %v11293_v4, %v11293_v4 }
 0x737   :  { %v11299_v28 = vsub.f32 %v3700_v44, %v3715_v47  ;;  %3728 = vadd.xlane.f32.xlu1 %v3722_v50 }
 0x739   :  { %v3723_v14 = vmul.f32 %v11299_v28, %v11299_v28 }
 0x73b   :  { %3730 = vadd.xlane.f32.xlu0 %v3723_v14 }
 0x7c0   :  { %v3725_v12 = vpop.xlane.xlu1 %3724 }
 0x7c1   :  { %v3732_v27 = vmul.f32 0.0078125, %v3725_v12 }
 0x7c2   :  { %v3727_v59 = vpop.xlane.xlu0 %3726 }
 0x7c3   :  { %v3736_v53 = vadd.f32 1e-05, %v3732_v27  ;;  %v3733_v23 = vmul.f32 0.0078125, %v3727_v59 }
 0x7c4   :  { %v3729_v42 = vpop.xlane.xlu1 %3728 }
 0x7c5   :  { %9985 = vrsqrt.f32 %v3736_v53  ;;  %v3737_v39 = vadd.f32 1e-05, %v3733_v23  ;;  %v3734_v1 = vmul.f32 0.0078125, %v3729_v42 }
 0x7c7   :  { %9987 = vrsqrt.f32 %v3737_v39  ;;  %v3738_v31 = vadd.f32 1e-05, %v3734_v1 }
 0x7c8   :  { %v3731_v62 = vpop.xlane.xlu0 %3730 }
 0x7c9   :  { %9989 = vrsqrt.f32 %v3738_v31  ;;  %v3735_v44 = vmul.f32 0.0078125, %v3731_v62 }
 0x7cb   :  { %v3739_v5 = vadd.f32 1e-05, %v3735_v44 }
 0x7cd   :  { %9991 = vrsqrt.f32 %v3739_v5 }
 0x7cf   :  { %v9986_v46 = vpop.eup %9985 }
 0x7d0   :  { %v3744_v6 = vmul.f32 %v9986_v46, %v11287_v15 }
 0x7d1   :  { %v9988_v48 = vpop.eup %9987 }
 0x7d2   :  { %v3745_v57 = vmul.f32 %v9988_v48, %v11289_v60  ;;  %v3754_v13 = vmul.f32 %v8994_v24, %v3744_v6  ;;  %v9012_v48 = vld [vmem:[%s12319_s10] ss:$0 sm:$0xff] }
 0x7d3   :  { %v9990_v38 = vpop.eup %9989 }
 0x7d4   :  { %v3755_v35 = vmul.f32 %v8994_v24, %v3745_v57  ;;  %v11311_v2 = vadd.f32 %v8995_v63, %v3754_v13  ;;  %v3746_v7 = vmul.f32 %v9990_v38, %v11293_v4  ;;  %v9812_v4 = vld [vmem:[#allocation7 + $0x28] sm:$0xff]  }
 0x7d5   :  { %9292 = vmatpush3.bf16.msra.mxu1 %v9812_v4 }
 0x7d6   :  { %v11313_v52 = vadd.f32 %v8995_v63, %v3755_v35  ;;  %v3756_v60 = vmul.f32 %v8994_v24, %v3746_v7  ;;  %9293 = vmatprep.subr.bf16.mxu1 %v9813_v54 }
 0x7d7   :  { %v9992_v47 = vpop.eup %9991 }
 0x7d8   :  { %v3768_v15 = vpack.c.bf16 %v11313_v52, %v11311_v2  ;;  %v3747_v50 = vmul.f32 %v9992_v47, %v11299_v28  ;;  %v11322_v56 = vadd.f32 %v8995_v63, %v3756_v60  ;;  %v9815_v28 = vld [vmem:[#allocation7 + $0x78] sm:$0xff]  }
 0x7d9   :  { %9294 = vmatpush3.bf16.msra.mxu1 %v9814_v55 }
 0x7da   :  { %3911 = vmatmul.mubr.bf16.vlgmr.msra.gmra.mrb[40].mxu0 %v3768_v15  ;;  %v3757_v14 = vmul.f32 %v8994_v24, %v3747_v50  ;;  %9295 = vmatprep.subr.bf16.mxu1 %v9815_v28 }
 0x7db   :  { %3920 = vmatprep.mubr.bf16.mxu0 %v10211_v0 }
 0x7dc   :  { %v11320_v61 = vadd.f32 %v8995_v63, %v3757_v14 }
 0x7dd   :  { %9296 = vmatpush3.bf16.msra.mxu1 %v9816_v11 }
 0x7de   :  { %v3769_v8 = vpack.c.bf16 %v11320_v61, %v11322_v56 }
 0x7e2   :  { %3921 = vmatmul.mubr.bf16.gmra.mrb[44].mxu0 %v3769_v8 }
 0x7e3   :  { %4410 = vmatprep.mubr.bf16.mxu0 %v10211_v0 }
 0x8ad   :  { %v3912_v17 = vpop.f32.mrb[40].mxu0 }
 0x8ae   :  { %v3913_v26 = vadd.f32 %v3912_v17, %v3791_v58  ;;  %v3914_v22 = vpop.f32.mrb[41].mxu0 }
 0x8af   :  { %v3915_v37 = vadd.f32 %v3914_v22, %v3795_v10  ;;  %v3916_v25 = vpop.f32.mrb[42].mxu0 }
 0x8b0   :  { %v3917_v41 = vadd.f32 %v3916_v25, %v3791_v58  ;;  %v3918_v43 = vpop.f32.mrb[43].mxu0  ;;  %v3931_v3 = vmax.f32 %v3913_v26, 0.0 }
 0x8b1   :  { %v3919_v9 = vadd.f32 %v3918_v43, %v3795_v10  ;;  %v3932_v45 = vmax.f32 %v3915_v37, 0.0 }
 0x8b2   :  { %v3933_v51 = vmax.f32 %v3917_v41, 0.0 }
 0x8b3   :  { %v3934_v19 = vmax.f32 %v3919_v9, 0.0 }
 0x8b4   :  { %v3939_v16 = vpack.c.bf16 %v3933_v51, %v3931_v3 }
 0x8b5   :  { %v3940_v32 = vpack.c.bf16 %v3934_v19, %v3932_v45  ;;  %v3922_v12 = vpop.f32.mrb[44].mxu0 }
 0x8b6   :  { %v3923_v27 = vadd.f32 %v3922_v12, %v3791_v58  ;;  %v3924_v59 = vpop.f32.mrb[45].mxu0 }
 0x8b7   :  { %v3925_v53 = vadd.f32 %v3924_v59, %v3795_v10  ;;  %v3926_v23 = vpop.f32.mrb[46].mxu0  ;;  %4110 = vmatprep.mubr.bf16.mxu1 %v3940_v32  ;;  %v9826_v59 = vld [vmem:[%s12310_s1 + $0xc8] ss:$12 sps:$4 sm:$0xff]  }
 0x8b8   :  { %v3927_v42 = vadd.f32 %v3926_v23, %v3791_v58  ;;  %v3928_v39 = vpop.f32.mrb[47].mxu0  ;;  %4111 = vmatmul.mubr.bf16.vlgmr.msra.gmra.mrb[40].mxu1 %v3939_v16  ;;  %v3935_v31 = vmax.f32 %v3923_v27, 0.0  ;;  %v9825_v27 = vld [vmem:[%s12310_s1 + $0xf4] ss:$12 sps:$4 sm:$0xff]   ;;  %9525 = vmatprep.subr.bf16.mxu1 %v9826_v59  ;;  %v9829_v23 = vld [vmem:[%s12310_s1 + $0x10c] ss:$12 sps:$4 sm:$0xff]  }
 0x8b9   :  { %v3929_v1 = vadd.f32 %v3928_v39, %v3795_v10  ;;  %v3936_v44 = vmax.f32 %v3925_v53, 0.0  ;;  %v9822_v10 = vld [vmem:[%s12310_s1 + $0xdc] ss:$12 sps:$4 sm:$0xff]   ;;  %9526 = vmatpush3.bf16.msra.mxu1 %v9826_v59 }
 0x8ba   :  { %v3937_v62 = vmax.f32 %v3927_v42, 0.0  ;;  %v9823_v53 = vld [vmem:[%s12310_s1 + $0xf0] ss:$12 sps:$4 sm:$0xff]   ;;  %v9830_v42 = vld [vmem:[%s12310_s1 + $0xe0] ss:$12 sps:$4 sm:$0xff]  }
 0x8bb   :  { %v3938_v5 = vmax.f32 %v3929_v1, 0.0  ;;  %v9827_v39 = vld [vmem:[%s12310_s1 + $0x108] ss:$12 sps:$4 sm:$0xff]   ;;  %9527 = vmatprep.subr.bf16.mxu1 %v9830_v42  ;;  %v9833_v1 = vld [vmem:[%s12310_s1 + $0x124] ss:$12 sps:$4 sm:$0xff]  }
 0x8bc   :  { %v3941_v46 = vpack.c.bf16 %v3937_v62, %v3935_v31  ;;  %v9834_v31 = vld [vmem:[%s12310_s1 + $0xf8] ss:$12 sps:$4 sm:$0xff]   ;;  %v9831_v62 = vld [vmem:[%s12310_s1 + $0x120] ss:$12 sps:$4 sm:$0xff]  }
 0x8bd   :  { %v3942_v24 = vpack.c.bf16 %v3938_v5, %v3936_v44  ;;  %9528 = vmatpush3.bf16.msra.mxu1 %v9830_v42  ;;  %v9837_v44 = vld [vmem:[%s12310_s1 + $0x13c] ss:$12 sps:$4 sm:$0xff]  }
 0x8be   :  { %9529 = vmatprep.subr.bf16.mxu1 %v9834_v31  ;;  %v9838_v5 = vld [vmem:[%s12310_s1 + $0x110] ss:$12 sps:$4 sm:$0xff]  }
 0x8bf   :  { %4118 = vmatprep.mubr.bf16.mxu1 %v3942_v24  ;;  %v9839_v24 = vld [vmem:[%s12310_s1 + $0x150] ss:$12 sps:$4 sm:$0xff]  }
 0x8c0   :  { %4119 = vmatmul.mubr.bf16.gmra.mrb[44].mxu1 %v3941_v46  ;;  %v9835_v46 = vld [vmem:[%s12310_s1 + $0x138] ss:$12 sps:$4 sm:$0xff]  }
 0x8c1   :  { %9530 = vmatpush3.bf16.msra.mxu1 %v9834_v31 }
 0x8c2   :  { %9531 = vmatprep.subr.bf16.mxu1 %v9838_v5 }
 0x8c5   :  { %9532 = vmatpush3.bf16.msra.mxu1 %v9838_v5 }
 0x98b   :  { %v9297_v6 = vpop.f32.mrb[40].mxu1 }
 0x98c   :  { %v9298_v57 = vpop.f32.mrb[41].mxu1 }
 0x98d   :  { %v9299_v13 = vadd.f32 %v9298_v57, %v9297_v6  ;;  %v9300_v38 = vpop.f32.mrb[42].mxu1  ;;  %v9841_v6 = vld [vmem:[%s12310_s1 + $0x154] ss:$12 sps:$4 sm:$0xff]   ;;  %v9845_v57 = vld [vmem:[%s12310_s1 + $0x16c] ss:$12 sps:$4 sm:$0xff]  }
 0x98e   :  { %v9301_v63 = vpop.f32.mrb[43].mxu1 }
 0x98f   :  { %v4113_v35 = vadd.f32 %v9299_v13, %v9012_v48  ;;  %v9302_v7 = vadd.f32 %v9301_v63, %v9300_v38  ;;  %v9846_v13 = vld [vmem:[%s12310_s1 + $0x140] ss:$12 sps:$4 sm:$0xff]   ;;  %v9843_v38 = vld [vmem:[%s12310_s1 + $0x168] ss:$12 sps:$4 sm:$0xff]   ;;  %v9847_v63 = vld [vmem:[%s12310_s1 + $0x158] ss:$12 sps:$4 sm:$0xff]  }
 0x991   :  { %v4116_v47 = vadd.f32 %v9302_v7, %v9012_v48  ;;  %v4127_v15 = vadd.f32 %v4113_v35, %v11311_v2  ;;  %v9817_v2 = vld [vmem:[%s12310_s1 + $0xc0] ss:$12 sps:$4 sm:$0xff]   ;;  %v9848_v35 = vld [vmem:[%s12310_s1 + $0x170] ss:$12 sps:$4 sm:$0xff]  }
 0x993   :  { %4133 = vadd.xlane.f32.xlu1 %v4127_v15  ;;  %v9303_v50 = vpop.f32.mrb[44].mxu1  ;;  %v4128_v60 = vadd.f32 %v4116_v47, %v11313_v52  ;;  %v9819_v52 = vld [vmem:[%s12310_s1 + $0xc4] ss:$12 sps:$4 sm:$0xff]  }
 0x994   :  { %v9304_v14 = vpop.f32.mrb[45].mxu1  ;;  %4378 = vmatprep.subr.bf16.mxu0 %v9819_v52 }
 0x995   :  { %v9305_v8 = vadd.f32 %v9304_v14, %v9303_v50  ;;  %4135 = vadd.xlane.f32.xlu0 %v4128_v60  ;;  %v9306_v4 = vpop.f32.mrb[46].mxu1  ;;  %4379 = vmatpush1.bf16.msra.mxu0 %v9817_v2 }
 0x996   :  { %v9307_v54 = vpop.f32.mrb[47].mxu1  ;;  %4380 = vmatprep.subr.bf16.mxu0 %v9822_v10 }
 0x997   :  { %v4121_v55 = vadd.f32 %v9305_v8, %v9012_v48  ;;  %v9308_v28 = vadd.f32 %v9307_v54, %v9306_v4 }
 0x999   :  { %v4124_v11 = vadd.f32 %v9308_v28, %v9012_v48  ;;  %v4129_v30 = vadd.f32 %v4121_v55, %v11322_v56  ;;  %v9820_v56 = vld [vmem:[%s12310_s1 + $0xd8] ss:$12 sps:$4 sm:$0xff]   ;;  %v9842_v48 = vld [vmem:[%s12310_s1 + $0x128] ss:$12 sps:$4 sm:$0xff]  }
 0x99a   :  { %4381 = vmatpush1.bf16.msra.mxu0 %v9820_v56  ;;  %9533 = vmatprep.subr.bf16.mxu1 %v9842_v48 }
 0x99b   :  { %4137 = vadd.xlane.f32.xlu1 %v4129_v30  ;;  %v4130_v58 = vadd.f32 %v4124_v11, %v11320_v61  ;;  %4382 = vmatprep.subr.bf16.mxu0 %v9825_v27 }
 0x99c   :  { %9534 = vmatpush3.bf16.msra.mxu1 %v9842_v48 }
 0x99d   :  { %4139 = vadd.xlane.f32.xlu0 %v4130_v58  ;;  %9535 = vmatprep.subr.bf16.mxu1 %v9846_v13 }
 0x99e   :  { %4383 = vmatpush1.bf16.msra.mxu0 %v9823_v53 }
 0x99f   :  { %4384 = vmatprep.subr.bf16.mxu0 %v9829_v23 }
 0x9a0   :  { %9536 = vmatpush3.bf16.msra.mxu1 %v9846_v13 }
 0x9a1   :  { %9537 = vmatprep.subr.bf16.mxu1 %v9847_v63 }
 0x9a2   :  { %4385 = vmatpush1.bf16.msra.mxu0 %v9827_v39 }
 0x9a3   :  { %4386 = vmatprep.subr.bf16.mxu0 %v9833_v1 }
 0x9a4   :  { %9538 = vmatpush3.bf16.msra.mxu1 %v9847_v63 }
 0x9a5   :  { %9539 = vmatprep.subr.bf16.mxu1 %v9848_v35 }
 0x9a6   :  { %4387 = vmatpush1.bf16.msra.mxu0 %v9831_v62 }
 0x9a7   :  { %4388 = vmatprep.subr.bf16.mxu0 %v9837_v44 }
 0x9a8   :  { %9540 = vmatpush3.bf16.msra.mxu1 %v9848_v35 }
 0x9a9   :  { %9563 = vmatprep.subr.bf16.mxu1 %v10212_v20 }
 0x9aa   :  { %4389 = vmatpush1.bf16.msra.mxu0 %v9835_v46  ;;  %v12330_v46 = vsub.s32 2, %v10455_v33 }
 0x9ab   :  { %4390 = vmatprep.subr.bf16.mxu0 %v9841_v6 }
 0x9ae   :  { %4391 = vmatpush1.bf16.msra.mxu0 %v9839_v24 }
 0x9af   :  { %4392 = vmatprep.subr.bf16.mxu0 %v9845_v57 }
 0x9b2   :  { %4393 = vmatpush1.bf16.msra.mxu0 %v9843_v38 }
 0x9b3   :  { %9545 = vmatprep.subr.bf16.mxu0 %v10212_v20 }
 0xa20   :  { %v4134_v61 = vpop.xlane.xlu1 %4133 }
 0xa21   :  { %v4141_v17 = vmul.f32 0.0078125, %v4134_v61  ;;  %v9030_v61 = vld [vmem:[%s12321_s12] ss:$0 sm:$0xff] }
 0xa22   :  { %v4136_v26 = vpop.xlane.xlu0 %4135 }
 0xa23   :  { %v11351_v22 = vsub.f32 %v4127_v15, %v4141_v17  ;;  %v4142_v37 = vmul.f32 0.0078125, %v4136_v26 }
 0xa25   :  { %v11353_v25 = vsub.f32 %v4128_v60, %v4142_v37  ;;  %v4149_v41 = vmul.f32 %v11351_v22, %v11351_v22 }
 0xa27   :  { %4153 = vadd.xlane.f32.xlu1 %v4149_v41  ;;  %v4150_v43 = vmul.f32 %v11353_v25, %v11353_v25 }
 0xa28   :  { %v4138_v9 = vpop.xlane.xlu1 %4137 }
 0xa29   :  { %v4143_v3 = vmul.f32 0.0078125, %v4138_v9  ;;  %4155 = vadd.xlane.f32.xlu0 %v4150_v43 }
 0xa2a   :  { %v4140_v51 = vpop.xlane.xlu0 %4139 }
 0xa2b   :  { %v11359_v45 = vsub.f32 %v4129_v30, %v4143_v3  ;;  %v4144_v19 = vmul.f32 0.0078125, %v4140_v51 }
 0xa2d   :  { %v11361_v16 = vsub.f32 %v4130_v58, %v4144_v19  ;;  %v4151_v32 = vmul.f32 %v11359_v45, %v11359_v45  ;;  %v9029_v58 = vld [vmem:[%s12320_s11] ss:$0 sm:$0xff] }
 0xa2f   :  { %4157 = vadd.xlane.f32.xlu1 %v4151_v32  ;;  %v4152_v12 = vmul.f32 %v11361_v16, %v11361_v16 }
 0xa31   :  { %4159 = vadd.xlane.f32.xlu0 %v4152_v12 }
 0xab4   :  { %v4154_v7 = vpop.xlane.xlu1 %4153 }
 0xab5   :  { %v4161_v47 = vmul.f32 0.0078125, %v4154_v7 }
 0xab6   :  { %v4156_v15 = vpop.xlane.xlu0 %4155 }
 0xab7   :  { %v4165_v50 = vadd.f32 1e-05, %v4161_v47  ;;  %v4162_v60 = vmul.f32 0.0078125, %v4156_v15 }
 0xab9   :  { %9993 = vrsqrt.f32 %v4165_v50  ;;  %v4166_v14 = vadd.f32 1e-05, %v4162_v60 }
 0xabb   :  { %9995 = vrsqrt.f32 %v4166_v14 }
 0xabc   :  { %v4158_v8 = vpop.xlane.xlu1 %4157 }
 0xabd   :  { %v4163_v4 = vmul.f32 0.0078125, %v4158_v8 }
 0xabe   :  { %v4160_v54 = vpop.xlane.xlu0 %4159 }
 0xabf   :  { %v4167_v55 = vadd.f32 1e-05, %v4163_v4  ;;  %v4164_v28 = vmul.f32 0.0078125, %v4160_v54 }
 0xac1   :  { %9997 = vrsqrt.f32 %v4167_v55  ;;  %v4168_v11 = vadd.f32 1e-05, %v4164_v28 }
 0xac3   :  { %v9994_v30 = vpop.eup %9993  ;;  %9999 = vrsqrt.f32 %v4168_v11 }
 0xac4   :  { %v4173_v2 = vmul.f32 %v9994_v30, %v11351_v22 }
 0xac5   :  { %v9996_v52 = vpop.eup %9995 }
 0xac6   :  { %v4183_v10 = vmul.f32 %v9029_v58, %v4173_v2  ;;  %v4174_v56 = vmul.f32 %v9996_v52, %v11353_v25 }
 0xac8   :  { %v4184_v17 = vmul.f32 %v9029_v58, %v4174_v56  ;;  %v11437_v26 = vadd.f32 %v9030_v61, %v4183_v10 }
 0xaca   :  { %v11439_v37 = vadd.f32 %v9030_v61, %v4184_v17 }
 0xacb   :  { %v9998_v41 = vpop.eup %9997 }
 0xacc   :  { %v4197_v43 = vpack.c.bf16 %v11439_v37, %v11437_v26  ;;  %v4175_v9 = vmul.f32 %v9998_v41, %v11359_v45  ;;  %v9063_v45 = vld [vmem:[%s12311_s2 + $0x3] sm:$0x7] }
 0xacd   :  { %v10000_v22 = vpop.eup %9999  ;;  %v4242_v59 = vrot.slane %v9063_v45, %v10464_v36  ;;  %v4246_v24 = vrot.slane %v9063_v45, %v12330_v46 }
 0xace   :  { %4411 = vmatmul.mubr.bf16.vlgmr.msra.gmra.mrb[48].mxu0 %v4197_v43  ;;  %9541 = vmatprep.mubr.bf16.mxu1 %v4197_v43  ;;  %v4176_v25 = vmul.f32 %v10000_v22, %v11361_v16  ;;  %v4185_v3 = vmul.f32 %v9029_v58, %v4175_v9  ;;  %v4238_v16 = vrot.slane %v9063_v45, %v10458_v34 }
 0xacf   :  { %4420 = vmatprep.mubr.bf16.mxu0 %v10211_v0 }
 0xad0   :  { %v4186_v51 = vmul.f32 %v9029_v58, %v4176_v25  ;;  %v11446_v19 = vadd.f32 %v9030_v61, %v4185_v3 }
 0xad2   :  { %v11448_v32 = vadd.f32 %v9030_v61, %v4186_v51 }
 0xad4   :  { %v4198_v12 = vpack.c.bf16 %v11448_v32, %v11446_v19 }
 0xad6   :  { %4421 = vmatmul.mubr.bf16.gmra.mrb[52].mxu0 %v4198_v12  ;;  %9542 = vmatmul.mubr.bf16.vlgmr.msra.gmra.mrb[48].mxu1 %v4198_v12 }
 0xad7   :  { %9547 = vmatprep.mubr.msk.bf16.mxu0 %vm10215_vm0, %v10212_v20  ;;  %9565 = vmatprep.mubr.msk.bf16.mxu1 %vm10215_vm0, %v10212_v20 }
 0xba1   :  { %v4412_v27 = vpop.f32.mrb[48].mxu0 }
 0xba2   :  { %v4414_v53 = vpop.f32.mrb[49].mxu0  ;;  %v4413_v42 = vadd.f32 %v4412_v27, %v4238_v16 }
 0xba3   :  { %v4416_v23 = vpop.f32.mrb[50].mxu0  ;;  %v4415_v31 = vadd.f32 %v4414_v53, %v4242_v59 }
 0xba4   :  { %v4417_v39 = vadd.f32 %v4416_v23, %v4238_v16  ;;  %v4418_v1 = vpop.f32.mrb[51].mxu0 }
 0xba5   :  { %v4419_v62 = vadd.f32 %v4418_v1, %v4242_v59 }
 0xba6   :  { %v11461_v44 = vpack.c.bf16 %v4417_v39, %v4413_v42 }
 0xba7   :  { %v5016_v5 = vpack.c.bf16 %v4419_v62, %v4415_v31 }
 0xba9   :  { %5024 = vrot.lane.b32.xlu0 %v5016_v5, %s10207_s7  ;;  %5020 = vrot.lane.b32.xlu1 %v5016_v5, %s10214_s29  ;;  %v4422_v6 = vpop.f32.mrb[52].mxu0  ;;  %v9543_v48 = vpop.f32.mrb[48].mxu1  ;;  %v5036_v10 = vshrl.u32 %v5016_v5, 16 }
 0xbaa   :  { %v4424_v57 = vpop.f32.mrb[53].mxu0  ;;  %v4465_v13 = vpop.f32.mrb[49].mxu1  ;;  %v4423_v38 = vadd.f32 %v4422_v6, %v4238_v16  ;;  %v4474_v7 = vadd.f32 %v9543_v48, %v4246_v24 }
 0xbab   :  { %v4426_v63 = vpop.f32.mrb[54].mxu0  ;;  %v9544_v35 = vpop.f32.mrb[50].mxu1  ;;  %v4425_v47 = vadd.f32 %v4424_v57, %v4242_v59  ;;  %v4466_v8 = vadd.f32 %v4465_v13, %v4246_v24  ;;  %v4500_v57 = vshrl.u32 %v11461_v44, 16 }
 0xbac   :  { %v4427_v15 = vadd.f32 %v4426_v63, %v4238_v16  ;;  %v4477_v50 = vadd.f32 %v9544_v35, %v4246_v24  ;;  %v4428_v60 = vpop.f32.mrb[55].mxu0  ;;  %v4468_v14 = vpop.f32.mrb[51].mxu1 }
 0xbad   :  { %v4429_v33 = vadd.f32 %v4428_v60, %v4242_v59  ;;  %v4469_v4 = vadd.f32 %v4468_v14, %v4246_v24  ;;  %5028 = vrot.lane.b32.xlu1 %v5016_v5, %s10213_s28  ;;  %4488 = vrot.lane.b32.xlu0 %v11461_v44, %s10207_s7 }
 0xbae   :  { %v11470_v54 = vpack.c.bf16 %v4427_v15, %v4423_v38  ;;  %v11472_v55 = vpack.c.bf16 %v4477_v50, %v4474_v7 }
 0xbaf   :  { %v11474_v28 = vpack.c.bf16 %v4429_v33, %v4425_v47  ;;  %v11476_v11 = vpack.c.bf16 %v4469_v4, %v4466_v8 }
 0xbb1   :  { %4484 = vrot.lane.b32.xlu1 %v11461_v44, %s10214_s29  ;;  %5022 = vrot.lane.b32.xlu0 %v11474_v28, %s10214_s29 }
 0xbb5   :  { %4492 = vrot.lane.b32.xlu1 %v11461_v44, %s10213_s28  ;;  %5030 = vrot.lane.b32.xlu0 %v11474_v28, %s10213_s28 }
 0xbb9   :  { %5026 = vrot.lane.b32.xlu1 %v11474_v28, %s10207_s7  ;;  %4490 = vrot.lane.b32.xlu0 %v11470_v54, %s10207_s7 }
 0xbbd   :  { %4486 = vrot.lane.b32.xlu1 %v11470_v54, %s10214_s29 }
 0xbc1   :  { %4494 = vrot.lane.b32.xlu1 %v11470_v54, %s10213_s28 }
 0xc1b   :  { %v5021_v30 = vpop.permute.xlu1 %5020  ;;  %v5025_v52 = vpop.permute.xlu0 %5024 }
 0xc1c   :  { %v5034_v58 = vpack.i.b16 %v5021_v30, %v5016_v5  ;;  %v5037_v2 = vshrl.u32 %v5021_v30, 16  ;;  %v5044_v43 = vshrl.u32 %v5025_v52, 16  ;;  %v5052_v30 = vshrl.u32 %v11474_v28, 16 }
 0xc1e   :  { %v5064_v56 = vcombine.high %v5034_v58, %v10515_v18  ;;  %v5038_v17 = vpack.i.b16 %v5037_v2, %v5036_v10  ;;  %v5071_v22 = vrot.slane %v5034_v58, %v10519_v21 }
 0xc1f   :  { %v5029_v61 = vpop.permute.xlu1 %5028  ;;  %v4489_v45 = vpop.permute.xlu0 %4488 }
 0xc20   :  { %v5042_v41 = vpack.i.b16 %v5029_v61, %v5025_v52  ;;  %v5045_v9 = vshrl.u32 %v5029_v61, 16  ;;  %v5078_v51 = vrot.slane %v5064_v56, %v10519_v21  ;;  %v5130_v27 = vcombine.high %v5038_v17, %v10515_v18 }
 0xc21   :  { %v5137_v46 = vrot.slane %v5038_v17, %v10519_v21  ;;  %v4508_v4 = vshrl.u32 %v4489_v45, 16 }
 0xc22   :  { %v5079_v25 = vcombine.high %v5042_v41, %v10515_v18  ;;  %v5086_v3 = vrot.slane %v5042_v41, %v10519_v21  ;;  %v5046_v12 = vpack.i.b16 %v5045_v9, %v5044_v43  ;;  %v5144_v48 = vrot.slane %v5130_v27, %v10519_v21 }
 0xc23   :  { %v4485_v16 = vpop.permute.xlu1 %4484  ;;  %v11510_v7 = vpop.permute.xlu0 %5022 }
 0xc24   :  { %v5093_v59 = vrot.slane %v5079_v25, %v10519_v21  ;;  %v5094_v53 = vcombine.low %v5071_v22, %v5086_v3  ;;  %v5095_v23 = vcombine.high %v5071_v22, %v5086_v3  ;;  %v5145_v42 = vcombine.high %v5046_v12, %v10515_v18 }
 0xc25   :  { %v5152_v39 = vrot.slane %v5046_v12, %v10519_v21  ;;  %v4501_v6 = vshrl.u32 %v4485_v16, 16  ;;  %v4498_v35 = vpack.i.b16 %v4485_v16, %v11461_v44  ;;  %v5050_v58 = vpack.i.b16 %v11510_v7, %v11474_v28 }
 0xc26   :  { %v5102_v1 = vrot.slane %v5094_v53, %v10528_v40  ;;  %v5109_v31 = vrot.slane %v5095_v23, %v10528_v40  ;;  %v5110_v62 = vcombine.low %v5078_v51, %v5093_v59  ;;  %v5111_v5 = vcombine.high %v5078_v51, %v5093_v59 }
 0xc27   :  { %v5159_v24 = vrot.slane %v5145_v42, %v10519_v21  ;;  %v5160_v13 = vcombine.low %v5137_v46, %v5152_v39  ;;  %v5161_v38 = vcombine.high %v5137_v46, %v5152_v39  ;;  %v4493_v47 = vpop.permute.xlu1 %4492  ;;  %v4502_v33 = vpack.i.b16 %v4501_v6, %v4500_v57  ;;  %v5031_v59 = vpop.permute.xlu0 %5030 }
 0xc28   :  { %v5328_v63 = vcombine.low %v5102_v1, %v5109_v31  ;;  %v11513_v15 = vrot.slane %v5110_v62, %v10528_v40  ;;  %v11516_v50 = vrot.slane %v5111_v5, %v10528_v40  ;;  %v9096_v60 = vcombine.high %v5102_v1, %v5109_v31 }
 0xc29   :  { %v5176_v14 = vcombine.low %v5144_v48, %v5159_v24  ;;  %v5177_v8 = vcombine.high %v5144_v48, %v5159_v24  ;;  %v4516_v44 = vshrl.u32 %v11470_v54, 16  ;;  %v11523_v2 = vrot.slane %v5160_v13, %v10528_v40 }
 0xc2a   :  { %v11526_v52 = vrot.slane %v5161_v38, %v10528_v40  ;;  %v11529_v10 = vrot.slane %v5328_v63, %v10519_v21  ;;  %v4528_v56 = vcombine.high %v4498_v35, %v10515_v18  ;;  %v11533_v61 = vrot.slane %v9096_v60, %v10519_v21 }
 0xc2b   :  { %v5344_v17 = vcombine.low %v11513_v15, %v11516_v50  ;;  %v9097_v28 = vcombine.high %v11513_v15, %v11516_v50  ;;  %v4506_v41 = vpack.i.b16 %v4493_v47, %v4489_v45  ;;  %v11540_v43 = vrot.slane %v5176_v14, %v10528_v40  ;;  %v5027_v3 = vpop.permute.xlu1 %5026 }
 0xc2c   :  { %v11543_v9 = vrot.slane %v5177_v8, %v10528_v40  ;;  %v4594_v22 = vcombine.high %v4502_v33, %v10515_v18  ;;  %v4509_v25 = vshrl.u32 %v4493_v47, 16  ;;  %v4535_v51 = vrot.slane %v4498_v35, %v10519_v21 }
 0xc2d   :  { %v4601_v12 = vrot.slane %v4502_v33, %v10519_v21  ;;  %v4543_v16 = vcombine.high %v4506_v41, %v10515_v18  ;;  %v4550_v27 = vrot.slane %v4506_v41, %v10519_v21  ;;  %v4542_v45 = vrot.slane %v4528_v56, %v10519_v21 }
 0xc2e   :  { %v5053_v53 = vshrl.u32 %v11510_v7, 16  ;;  %v5196_v23 = vcombine.high %v5050_v58, %v10515_v18  ;;  %v4510_v42 = vpack.i.b16 %v4509_v25, %v4508_v4  ;;  %v5058_v62 = vpack.i.b16 %v5031_v59, %v5027_v3 }
 0xc2f   :  { %v4557_v39 = vrot.slane %v4543_v16, %v10519_v21  ;;  %v4558_v1 = vcombine.low %v4535_v51, %v4550_v27  ;;  %v4559_v31 = vcombine.high %v4535_v51, %v4550_v27  ;;  %v4608_v5 = vrot.slane %v4594_v22, %v10519_v21 }
 0xc30   :  { %v4609_v46 = vcombine.high %v4510_v42, %v10515_v18  ;;  %v4616_v24 = vrot.slane %v4510_v42, %v10519_v21  ;;  %v5061_v6 = vshrl.u32 %v5031_v59, 16  ;;  %v5060_v47 = vshrl.u32 %v5027_v3, 16 }
 0xc31   :  { %v4566_v48 = vrot.slane %v4558_v1, %v10528_v40  ;;  %v4573_v57 = vrot.slane %v4559_v31, %v10528_v40  ;;  %v4574_v13 = vcombine.low %v4542_v45, %v4557_v39  ;;  %v4575_v38 = vcombine.high %v4542_v45, %v4557_v39 }
 0xc32   :  { %v4623_v63 = vrot.slane %v4609_v46, %v10519_v21  ;;  %v4624_v35 = vcombine.low %v4601_v12, %v4616_v24  ;;  %v4625_v7 = vcombine.high %v4601_v12, %v4616_v24  ;;  %v5211_v33 = vcombine.high %v5058_v62, %v10515_v18 }
 0xc33   :  { %v4582_v60 = vrot.slane %v4574_v13, %v10528_v40  ;;  %v4589_v14 = vrot.slane %v4575_v38, %v10528_v40  ;;  %v4792_v8 = vcombine.low %v4566_v48, %v4573_v57  ;;  %v9088_v25 = vcombine.high %v4566_v48, %v4573_v57 }
 0xc34   :  { %v4632_v4 = vrot.slane %v4624_v35, %v10528_v40  ;;  %v4639_v56 = vrot.slane %v4625_v7, %v10528_v40  ;;  %v4640_v41 = vcombine.low %v4608_v5, %v4623_v63  ;;  %v4641_v22 = vcombine.high %v4608_v5, %v4623_v63 }
 0xc35   :  { %v4808_v51 = vcombine.low %v4582_v60, %v4589_v14  ;;  %v9089_v16 = vcombine.high %v4582_v60, %v4589_v14  ;;  %v5218_v27 = vrot.slane %v5058_v62, %v10519_v21  ;;  %v5054_v42 = vpack.i.b16 %v5053_v53, %v5052_v30 }
 0xc36   :  { %v4648_v3 = vrot.slane %v4640_v41, %v10528_v40  ;;  %v4655_v12 = vrot.slane %v4641_v22, %v10528_v40  ;;  %v4842_v59 = vcombine.low %v4632_v4, %v4639_v56  ;;  %v9090_v45 = vcombine.high %v4632_v4, %v4639_v56 }
 0xc37   :  { %v5203_v39 = vrot.slane %v5050_v58, %v10519_v21  ;;  %v5210_v1 = vrot.slane %v5196_v23, %v10519_v21  ;;  %v5225_v31 = vrot.slane %v5211_v33, %v10519_v21  ;;  %v4799_v5 = vrot.slane %v4792_v8, %v10519_v21 }
 0xc38   :  { %v4858_v46 = vcombine.low %v4648_v3, %v4655_v12  ;;  %v9091_v24 = vcombine.high %v4648_v3, %v4655_v12  ;;  %v5062_v48 = vpack.i.b16 %v5061_v6, %v5060_v47  ;;  %v4807_v62 = vrot.slane %v9088_v25, %v10519_v21  ;;  %v4487_v47 = vpop.permute.xlu1 %4486 }
 0xc39   :  { %v4815_v57 = vrot.slane %v4808_v51, %v10519_v21  ;;  %v5226_v13 = vcombine.low %v5203_v39, %v5218_v27  ;;  %v5227_v38 = vcombine.high %v5203_v39, %v5218_v27  ;;  %v4823_v63 = vrot.slane %v9089_v16, %v10519_v21 }
 0xc3a   :  { %v4849_v30 = vrot.slane %v4842_v59, %v10519_v21  ;;  %v4857_v58 = vrot.slane %v9090_v45, %v10519_v21  ;;  %v5242_v53 = vcombine.low %v5210_v1, %v5225_v31  ;;  %v5378_v23 = vcombine.low %v11523_v2, %v11526_v52  ;;  %v4491_v45 = vpop.permute.xlu0 %4490 }
 0xc3b   :  { %v4865_v35 = vrot.slane %v4858_v46, %v10519_v21  ;;  %v4873_v6 = vrot.slane %v9091_v24, %v10519_v21  ;;  %v5243_v7 = vcombine.high %v5210_v1, %v5225_v31  ;;  %v5262_v60 = vcombine.high %v5054_v42, %v10515_v18 }
 0xc3c   :  { %v5234_v14 = vrot.slane %v5226_v13, %v10528_v40  ;;  %v5241_v8 = vrot.slane %v5227_v38, %v10528_v40  ;;  %v5277_v33 = vcombine.high %v5062_v48, %v10515_v18  ;;  %v9098_v4 = vcombine.high %v11523_v2, %v11526_v52 }
 0xc3d   :  { %v5250_v56 = vrot.slane %v5242_v53, %v10528_v40  ;;  %v5257_v41 = vrot.slane %v5243_v7, %v10528_v40  ;;  %v5284_v22 = vrot.slane %v5062_v48, %v10519_v21  ;;  %v5394_v25 = vcombine.low %v11540_v43, %v11543_v9 }
 0xc3e   :  { %v4824_v51 = vcombine.low %v4799_v5, %v4807_v62  ;;  %v4832_v16 = vcombine.low %v4815_v57, %v4823_v63  ;;  %v4874_v27 = vcombine.low %v4849_v30, %v4857_v58  ;;  %v5269_v3 = vrot.slane %v5054_v42, %v10519_v21  ;;  %v4495_v57 = vpop.permute.xlu1 %4494 }
 0xc3f   :  { %v4882_v12 = vcombine.low %v4865_v35, %v4873_v6  ;;  %v5291_v59 = vrot.slane %v5277_v33, %v10519_v21  ;;  %v4514_v39 = vpack.i.b16 %v4487_v47, %v11470_v54  ;;  %v9099_v1 = vcombine.high %v11540_v43, %v11543_v9 }
 0xc40   :  { %v5276_v31 = vrot.slane %v5262_v60, %v10519_v21  ;;  %v5428_v46 = vcombine.low %v5234_v14, %v5241_v8  ;;  %v9100_v24 = vcombine.high %v5234_v14, %v5241_v8  ;;  %v5292_v48 = vcombine.low %v5269_v3, %v5284_v22 }
 0xc41   :  { %v5293_v13 = vcombine.high %v5269_v3, %v5284_v22  ;;  %v5444_v5 = vcombine.low %v5250_v56, %v5257_v41  ;;  %v4517_v62 = vshrl.u32 %v4487_v47, 16  ;;  %v11599_v42 = vrot.slane %v4824_v51, %v10528_v40 }
 0xc42   :  { %v11602_v38 = vrot.slane %v4832_v16, %v10528_v40  ;;  %v11605_v63 = vrot.slane %v4874_v27, %v10528_v40  ;;  %v4524_v30 = vshrl.u32 %v4491_v45, 16  ;;  %v11608_v58 = vrot.slane %v4882_v12, %v10528_v40 }
 0xc43   :  { %v5308_v53 = vcombine.low %v5276_v31, %v5291_v59  ;;  %v4518_v35 = vpack.i.b16 %v4517_v62, %v4516_v44  ;;  %v4660_v6 = vcombine.high %v4514_v39, %v10515_v18  ;;  %v5309_v7 = vcombine.high %v5276_v31, %v5291_v59 }
 0xc44   :  { %v11614_v47 = vrot.slane %v5428_v46, %v10519_v21  ;;  %v11617_v60 = vrot.slane %v9100_v24, %v10519_v21  ;;  %v4522_v14 = vpack.i.b16 %v4495_v57, %v4491_v45  ;;  %v11620_v8 = vrot.slane %v5292_v48, %v10528_v40 }
 0xc45   :  { %v11623_v33 = vrot.slane %v5293_v13, %v10528_v40  ;;  %v11626_v22 = vrot.slane %v5444_v5, %v10519_v21  ;;  %v9101_v54 = vcombine.high %v5250_v56, %v5257_v41  ;;  %v4667_v44 = vrot.slane %v4514_v39, %v10519_v21 }
 0xc46   :  { %v4525_v51 = vshrl.u32 %v4495_v57, 16  ;;  %v4675_v16 = vcombine.high %v4522_v14, %v10515_v18  ;;  %v4682_v27 = vrot.slane %v4522_v14, %v10519_v21  ;;  %v11632_v3 = vrot.slane %v5308_v53, %v10528_v40 }
 0xc47   :  { %v4674_v12 = vrot.slane %v4660_v6, %v10519_v21  ;;  %v4726_v59 = vcombine.high %v4518_v35, %v10515_v18  ;;  %v5351_v45 = vrot.slane %v5344_v17, %v10519_v21  ;;  %v5359_v31 = vrot.slane %v9097_v28, %v10519_v21 }
 0xc48   :  { %v4526_v56 = vpack.i.b16 %v4525_v51, %v4524_v30  ;;  %v4689_v41 = vrot.slane %v4675_v16, %v10519_v21  ;;  %v4690_v39 = vcombine.low %v4667_v44, %v4682_v27  ;;  %v11646_v46 = vrot.slane %v5309_v7, %v10528_v40 }
 0xc49   :  { %v11649_v24 = vrot.slane %v9101_v54, %v10519_v21  ;;  %v5478_v48 = vcombine.low %v11620_v8, %v11623_v33  ;;  %v4691_v13 = vcombine.high %v4667_v44, %v4682_v27  ;;  %v9102_v17 = vcombine.high %v11620_v8, %v11623_v33 }
 0xc4a   :  { %v4733_v5 = vrot.slane %v4518_v35, %v10519_v21  ;;  %v4706_v62 = vcombine.low %v4674_v12, %v4689_v41  ;;  %v4707_v57 = vcombine.high %v4674_v12, %v4689_v41  ;;  %v4740_v15 = vrot.slane %v4726_v59, %v10519_v21 }
 0xc4b   :  { %v4741_v50 = vcombine.high %v4526_v56, %v10515_v18  ;;  %v4748_v28 = vrot.slane %v4526_v56, %v10519_v21  ;;  %v5360_v30 = vcombine.low %v11529_v10, %v11533_v61  ;;  %v4698_v53 = vrot.slane %v4690_v39, %v10528_v40 }
 0xc4c   :  { %v5368_v6 = vcombine.low %v5351_v45, %v5359_v31  ;;  %v5385_v7 = vrot.slane %v5378_v23, %v10519_v21  ;;  %v5393_v35 = vrot.slane %v9098_v4, %v10519_v21  ;;  %v4705_v14 = vrot.slane %v4691_v13, %v10528_v40 }
 0xc4d   :  { %v4755_v8 = vrot.slane %v4741_v50, %v10519_v21  ;;  %v4756_v33 = vcombine.low %v4733_v5, %v4748_v28  ;;  %v4757_v54 = vcombine.high %v4733_v5, %v4748_v28  ;;  %v4714_v10 = vrot.slane %v4706_v62, %v10528_v40 }
 0xc4e   :  { %v4721_v61 = vrot.slane %v4707_v57, %v10528_v40  ;;  %v5401_v23 = vrot.slane %v5394_v25, %v10519_v21  ;;  %v5409_v44 = vrot.slane %v9099_v1, %v10519_v21  ;;  %v5494_v16 = vcombine.low %v11632_v3, %v11646_v46 }
 0xc4f   :  { %v4764_v2 = vrot.slane %v4756_v33, %v10528_v40  ;;  %v4771_v52 = vrot.slane %v4757_v54, %v10528_v40  ;;  %v4772_v4 = vcombine.low %v4740_v15, %v4755_v8  ;;  %v4773_v51 = vcombine.high %v4740_v15, %v4755_v8 }
 0xc50   :  { %v9103_v27 = vcombine.high %v11632_v3, %v11646_v46  ;;  %v5375_v12 = vrot.slane %v5368_v6, %v10528_v40  ;;  %v5410_v59 = vcombine.low %v5385_v7, %v5393_v35  ;;  %v4892_v25 = vcombine.low %v4698_v53, %v4705_v14 }
 0xc51   :  { %v4780_v43 = vrot.slane %v4772_v4, %v10528_v40  ;;  %v4787_v9 = vrot.slane %v4773_v51, %v10528_v40  ;;  %v9092_v1 = vcombine.high %v4698_v53, %v4705_v14  ;;  %v4908_v45 = vcombine.low %v4714_v10, %v4721_v61 }
 0xc52   :  { %v9093_v56 = vcombine.high %v4714_v10, %v4721_v61  ;;  %v5367_v41 = vrot.slane %v5360_v30, %v10528_v40  ;;  %v5418_v39 = vcombine.low %v5401_v23, %v5409_v44  ;;  %v4942_v31 = vcombine.low %v4764_v2, %v4771_v52 }
 0xc53   :  { %v9094_v13 = vcombine.high %v4764_v2, %v4771_v52  ;;  %v4958_v5 = vcombine.low %v4780_v43, %v4787_v9  ;;  %v9095_v62 = vcombine.high %v4780_v43, %v4787_v9  ;;  %v5485_v3 = vrot.slane %v5478_v48, %v10519_v21 }
 0xc54   :  { %v5417_v46 = vrot.slane %v5410_v59, %v10528_v40  ;;  %v5425_v57 = vrot.slane %v5418_v39, %v10528_v40  ;;  %v11692_v15 = vcombine.high %v5367_v41, %v5375_v12  ;;  %v5493_v50 = vrot.slane %v9102_v17, %v10519_v21 }
 0xc55   :  { %v4899_v28 = vrot.slane %v4892_v25, %v10519_v21  ;;  %v4907_v53 = vrot.slane %v9092_v1, %v10519_v21  ;;  %v5376_v30 = vcombine.low %v5367_v41, %v5375_v12  ;;  %v4915_v6 = vrot.slane %v4908_v45, %v10519_v21 }
 0xc56   :  { %v4923_v7 = vrot.slane %v9093_v56, %v10519_v21  ;;  %v5426_v35 = vcombine.low %v5417_v46, %v5425_v57  ;;  %v11699_v14 = vcombine.high %v5417_v46, %v5425_v57  ;;  %v4949_v48 = vrot.slane %v4942_v31, %v10519_v21 }
 0xc57   :  { %v4957_v8 = vrot.slane %v9094_v13, %v10519_v21  ;;  %v4965_v33 = vrot.slane %v4958_v5, %v10519_v21  ;;  %v4973_v17 = vrot.slane %v9095_v62, %v10519_v21  ;;  %v5537_v10 = vshrl.u32 %v11692_v15, 16 }
 0xc58   :  { %v5530_v54 = vpack.i.b16 %v5426_v35, %v5376_v30  ;;  %v5538_v61 = vshrl.u32 %v11699_v14, 16  ;;  %v11709_v23 = vcombine.high %v11605_v63, %v11608_v58  ;;  %v4890_v44 = vcombine.low %v11605_v63, %v11608_v58 }
 0xc59   :  { %v5460_v2 = vcombine.low %v11614_v47, %v11617_v60  ;;  %v5468_v52 = vcombine.low %v11626_v22, %v11649_v24  ;;  %v5501_v4 = vrot.slane %v5494_v16, %v10519_v21  ;;  %v5532_v59 = vshrl.u32 %v5426_v35, 16 }
 0xc5a   :  { %v6100_v51 = vsel %vm2023_vm1, %v5530_v54, 0  ;;  %v5539_v12 = vpack.i.b16 %v5538_v61, %v5537_v10  ;;  %v11721_v43 = vcombine.high %v11599_v42, %v11602_v38  ;;  %v4982_v9 = vcombine.low %v4965_v33, %v4973_v17 }
 0xc5b   :  { %9546 = vmatpush3.bf16.xpose.msra.mxu0 %v6100_v51  ;;  %v5475_v63 = vrot.slane %v5468_v52, %v10528_v40  ;;  %v5509_v58 = vrot.slane %v9103_v27, %v10519_v21  ;;  %v5510_v47 = vcombine.low %v5485_v3, %v5493_v50  ;;  %v4840_v60 = vcombine.low %v11599_v42, %v11602_v38 }
 0xc5c   :  { %v6241_v22 = vsel %vm2023_vm1, %v5539_v12, 0  ;;  %9551 = vmatprep.subr.bf16.mxu0 %v10212_v20  ;;  %v5531_v24 = vshrl.u32 %v5376_v30, 16  ;;  %v5002_v16 = vshrl.u32 %v11709_v23, 16  ;;  %v4932_v25 = vcombine.low %v4915_v6, %v4923_v7 }
 0xc5d   :  { %v4974_v1 = vcombine.low %v4949_v48, %v4957_v8  ;;  %9564 = vmatpush3.bf16.xpose.msra.mxu1 %v6241_v22  ;;  %v5467_v45 = vrot.slane %v5460_v2, %v10528_v40  ;;  %v5518_v56 = vcombine.low %v5501_v4, %v5509_v58  ;;  %v4924_v41 = vcombine.low %v4899_v28, %v4907_v53 }
 0xc5e   :  { %v4994_v39 = vpack.i.b16 %v4890_v44, %v4840_v60  ;;  %v5533_v27 = vpack.i.b16 %v5532_v59, %v5531_v24  ;;  %v5001_v31 = vshrl.u32 %v11721_v43, 16  ;;  %9575 = vmatprep.subr.bf16.mxu1 %v10212_v20  ;;  %v5517_v38 = vrot.slane %v5510_v47, %v10528_v40 }
 0xc5f   :  { %v5476_v42 = vcombine.low %v5467_v45, %v5475_v63  ;;  %v5525_v13 = vrot.slane %v5518_v56, %v10528_v40  ;;  %v4989_v5 = vrot.slane %v4982_v9, %v10528_v40  ;;  %v4939_v3 = vrot.slane %v4932_v25, %v10528_v40 }
 0xc60   :  { %v5003_v62 = vpack.i.b16 %v5002_v16, %v5001_v31  ;;  %v4981_v46 = vrot.slane %v4974_v1, %v10528_v40  ;;  %v4931_v50 = vrot.slane %v4924_v41, %v10528_v40  ;;  %v6147_v28 = vsel %vm2023_vm1, %v5533_v27, 0 }
 0xc61   :  { %v5526_v57 = vcombine.low %v5517_v38, %v5525_v13  ;;  %v5543_v53 = vshrl.u32 %v5476_v42, 16  ;;  %v5527_v7 = vcombine.high %v5517_v38, %v5525_v13  ;;  %v4996_v35 = vshrl.u32 %v4890_v44, 16 }
 0xc62   :  { %9548 = vmatmul.mubr.msk.bf16.vlgmr.msra.gmra.mrb[56].mxu0 %vm2023_vm1, %v4994_v39  ;;  %v4990_v6 = vcombine.low %v4981_v46, %v4989_v5  ;;  %v4940_v8 = vcombine.low %v4931_v50, %v4939_v3  ;;  %v5477_v33 = vcombine.high %v5467_v45, %v5475_v63  ;;  %v4995_v17 = vshrl.u32 %v4840_v60, 16 }
 0xc63   :  { %9552 = vmatpush3.bf16.xpose.msra.mxu0 %v6147_v28  ;;  %9553 = vmatprep.mubr.msk.bf16.mxu0 %vm10215_vm0, %v10212_v20  ;;  %v5544_v30 = vshrl.u32 %v5526_v57, 16  ;;  %v5536_v54 = vpack.i.b16 %v11699_v14, %v11692_v15  ;;  %v5550_v2 = vshrl.u32 %v5527_v7, 16  ;;  %v4991_v14 = vcombine.high %v4981_v46, %v4989_v5 }
 0xc64   :  { %9566 = vmatmul.mubr.msk.bf16.vlgmr.msra.gmra.mrb[52].mxu1 %vm2023_vm1, %v5003_v62  ;;  %9557 = vmatprep.subr.bf16.mxu0 %v10212_v20  ;;  %v5008_v61 = vshrl.u32 %v4990_v6, 16  ;;  %v4997_v52 = vpack.i.b16 %v4996_v35, %v4995_v17  ;;  %v5007_v4 = vshrl.u32 %v4940_v8, 16  ;;  %v5549_v44 = vshrl.u32 %v5477_v33, 16 }
 0xc65   :  { %v5545_v48 = vpack.i.b16 %v5544_v30, %v5543_v53  ;;  %9577 = vmatprep.mubr.msk.bf16.mxu1 %vm10215_vm0, %v10212_v20  ;;  %v6194_v51 = vsel %vm2023_vm1, %v5536_v54, 0  ;;  %v5542_v59 = vpack.i.b16 %v5526_v57, %v5476_v42  ;;  %v4941_v63 = vcombine.high %v4931_v50, %v4939_v3 }
 0xc66   :  { %v5009_v12 = vpack.i.b16 %v5008_v61, %v5007_v4  ;;  %v5551_v15 = vpack.i.b16 %v5550_v2, %v5549_v44  ;;  %v5000_v58 = vpack.i.b16 %v11709_v23, %v11721_v43  ;;  %v5014_v47 = vshrl.u32 %v4991_v14, 16 }
 0xc67   :  { %v6335_v10 = vsel %vm2023_vm1, %v5545_v48, 0  ;;  %v6288_v60 = vsel %vm2023_vm1, %v5542_v59, 0  ;;  %v5013_v22 = vshrl.u32 %v4941_v63, 16  ;;  %v5548_v16 = vpack.i.b16 %v5527_v7, %v5477_v33 }
 0xc68   :  { %9576 = vmatpush3.bf16.xpose.msra.mxu1 %v6335_v10  ;;  %v6429_v9 = vsel %vm2023_vm1, %v5551_v15, 0  ;;  %v5006_v23 = vpack.i.b16 %v4990_v6, %v4940_v8  ;;  %v5012_v25 = vpack.i.b16 %v4991_v14, %v4941_v63 }
 0xc69   :  { %9587 = vmatprep.subr.bf16.mxu1 %v10212_v20  ;;  %v5015_v24 = vpack.i.b16 %v5014_v47, %v5013_v22  ;;  %v6382_v43 = vsel %vm2023_vm1, %v5548_v16, 0 }
 0xc6a   :  { %9554 = vmatmul.mubr.msk.bf16.vlgmr.msra.gmra.mrb[60].mxu0 %vm2023_vm1, %v4997_v52 }
 0xc6b   :  { %9558 = vmatpush3.bf16.xpose.msra.mxu0 %v6194_v51  ;;  %9559 = vmatprep.mubr.msk.bf16.mxu0 %vm10215_vm0, %v10212_v20 }
 0xc6c   :  { %9569 = vmatprep.subr.bf16.mxu0 %v10212_v20 }
 0xc6f   :  { %9578 = vmatmul.mubr.msk.bf16.vlgmr.msra.gmra.mrb[56].mxu1 %vm2023_vm1, %v5009_v12 }
 0xc70   :  { %9588 = vmatpush3.bf16.xpose.msra.mxu1 %v6429_v9  ;;  %9589 = vmatprep.mubr.msk.bf16.mxu1 %vm10215_vm0, %v10212_v20 }
 0xc71   :  { %9599 = vmatprep.subr.bf16.mxu1 %v10212_v20 }
 0xc72   :  { %9560 = vmatmul.mubr.msk.bf16.vlgmr.msra.gmra.mrb[64].mxu0 %vm2023_vm1, %v5000_v58 }
 0xc73   :  { %9570 = vmatpush3.bf16.xpose.msra.mxu0 %v6288_v60  ;;  %9571 = vmatprep.mubr.msk.bf16.mxu0 %vm10215_vm0, %v10212_v20 }
 0xc74   :  { %9581 = vmatprep.subr.bf16.mxu0 %v10212_v20 }
 0xc77   :  { %9590 = vmatmul.mubr.msk.bf16.vlgmr.msra.gmra.mrb[60].mxu1 %vm2023_vm1, %v5015_v24 }
 0xc78   :  { %9601 = vmatprep.mubr.msk.bf16.mxu1 %vm10215_vm0, %v10212_v20 }
 0xc7a   :  { %9572 = vmatmul.mubr.msk.bf16.vlgmr.msra.gmra.mrb[68].mxu0 %vm2023_vm1, %v5006_v23 }
 0xc7b   :  { %9582 = vmatpush3.bf16.xpose.msra.mxu0 %v6382_v43  ;;  %9583 = vmatprep.mubr.msk.bf16.mxu0 %vm10215_vm0, %v10212_v20 }
 0xc7c   :  { %9593 = vmatprep.subr.bf16.mxu0 %v10212_v20 }
 0xc82   :  { %9584 = vmatmul.mubr.msk.bf16.vlgmr.msra.gmra.mrb[72].mxu0 %vm2023_vm1, %v5012_v25 }
 0xc83   :  { %9595 = vmatprep.mubr.msk.bf16.mxu0 %vm10215_vm0, %v10212_v20 }
 0xd35   :  { %v6136_v1 = vpop.f32.mrb[56].mxu0 }
 0xd36   :  { %v6472_v45 = vmul.f32 0.17677669, %v6136_v1  ;;  %v9549_v56 = vpop.f32.mrb[57].mxu0 }
 0xd37   :  { %v6139_v41 = vpop.f32.mrb[58].mxu0  ;;  %v6277_v39 = vpop.f32.mrb[52].mxu1 }
 0xd38   :  { %v6473_v27 = vmul.f32 0.17677669, %v6139_v41  ;;  %v6478_v31 = vmul.f32 0.17677669, %v6277_v39  ;;  %v9550_v42 = vpop.f32.mrb[59].mxu0  ;;  %v9567_v38 = vpop.f32.mrb[53].mxu1  ;;  %v11780_v13 = vadd.f32 %v6472_v45, %v10852_v49 }
 0xd39   :  { %v6280_v5 = vpop.f32.mrb[54].mxu1 }
 0xd3a   :  { %v9568_v62 = vpop.f32.mrb[55].mxu1  ;;  %v6504_v3 = vsel %vm2432_vm4, %v11780_v13, -inf  ;;  %v11785_v46 = vadd.f32 %v6473_v27, %v10855_v29  ;;  %v11790_v50 = vadd.f32 %v6478_v31, %v10852_v49  ;;  %v6479_v33 = vmul.f32 0.17677669, %v6280_v5 }
 0xd3b   :  { %6505 = vmax.xlane.f32.xlu0 %v6504_v3 }
 0xd3c   :  { %v6507_v57 = vsel %vm2432_vm4, %v11785_v46, -inf  ;;  %v6522_v48 = vsel %vm2432_vm4, %v11790_v50, -inf  ;;  %v11808_v59 = vadd.f32 %v6479_v33, %v10855_v29 }
 0xd3d   :  { %6508 = vmax.xlane.f32.xlu1 %v6507_v57  ;;  %v6183_v28 = vpop.f32.mrb[60].mxu0 }
 0xd3e   :  { %v6474_v53 = vmul.f32 0.17677669, %v6183_v28  ;;  %v9555_v30 = vpop.f32.mrb[61].mxu0  ;;  %v6525_v24 = vsel %vm2432_vm4, %v11808_v59, -inf }
 0xd3f   :  { %v6186_v6 = vpop.f32.mrb[62].mxu0 }
 0xd40   :  { %v6475_v7 = vmul.f32 0.17677669, %v6186_v6  ;;  %v9556_v35 = vpop.f32.mrb[63].mxu0  ;;  %v11795_v8 = vadd.f32 %v6474_v53, %v10852_v49 }
 0xd41   :  { %6523 = vmax.xlane.f32.xlu1 %v6522_v48 }
 0xd42   :  { %v6510_v17 = vsel %vm2432_vm4, %v11795_v8, -inf  ;;  %v6371_v54 = vpop.f32.mrb[56].mxu1  ;;  %v11800_v10 = vadd.f32 %v6475_v7, %v10855_v29 }
 0xd43   :  { %6511 = vmax.xlane.f32.xlu0 %v6510_v17  ;;  %v6482_v61 = vmul.f32 0.17677669, %v6371_v54  ;;  %v9579_v2 = vpop.f32.mrb[57].mxu1 }
 0xd44   :  { %v6374_v52 = vpop.f32.mrb[58].mxu1  ;;  %v6513_v14 = vsel %vm2432_vm4, %v11800_v10, -inf }
 0xd45   :  { %v6230_v4 = vpop.f32.mrb[64].mxu0  ;;  %v9580_v44 = vpop.f32.mrb[59].mxu1  ;;  %v11803_v51 = vadd.f32 %v6482_v61, %v10852_v49  ;;  %v6483_v22 = vmul.f32 0.17677669, %v6374_v52 }
 0xd46   :  { %v6476_v12 = vmul.f32 0.17677669, %v6230_v4  ;;  %v9561_v15 = vpop.f32.mrb[65].mxu0 }
 0xd47   :  { %6514 = vmax.xlane.f32.xlu0 %v6513_v14  ;;  %v6233_v9 = vpop.f32.mrb[66].mxu0  ;;  %v6534_v63 = vsel %vm2432_vm4, %v11803_v51, -inf  ;;  %v11828_v38 = vadd.f32 %v6483_v22, %v10855_v29 }
 0xd48   :  { %v6477_v58 = vmul.f32 0.17677669, %v6233_v9  ;;  %v9562_v47 = vpop.f32.mrb[67].mxu0  ;;  %6535 = vmax.xlane.f32.xlu1 %v6534_v63  ;;  %v11813_v60 = vadd.f32 %v6476_v12, %v10852_v49 }
 0xd49   :  { %v6537_v30 = vsel %vm2432_vm4, %v11828_v38, -inf }
 0xd4a   :  { %v6465_v16 = vpop.f32.mrb[60].mxu1  ;;  %v11818_v23 = vadd.f32 %v6477_v58, %v10855_v29  ;;  %v6516_v1 = vsel %vm2432_vm4, %v11813_v60, -inf }
 0xd4b   :  { %6526 = vmax.xlane.f32.xlu0 %v6525_v24  ;;  %v6486_v43 = vmul.f32 0.17677669, %v6465_v16  ;;  %v9591_v25 = vpop.f32.mrb[61].mxu1 }
 0xd4c   :  { %6517 = vmax.xlane.f32.xlu1 %v6516_v1  ;;  %v6468_v45 = vpop.f32.mrb[62].mxu1  ;;  %v6519_v42 = vsel %vm2432_vm4, %v11818_v23, -inf }
 0xd4d   :  { %v6324_v56 = vpop.f32.mrb[68].mxu0  ;;  %v9592_v41 = vpop.f32.mrb[63].mxu1  ;;  %v11823_v39 = vadd.f32 %v6486_v43, %v10852_v49  ;;  %v6487_v53 = vmul.f32 0.17677669, %v6468_v45 }
 0xd4e   :  { %v6480_v27 = vmul.f32 0.17677669, %v6324_v56  ;;  %v9573_v31 = vpop.f32.mrb[69].mxu0 }
 0xd4f   :  { %6520 = vmax.xlane.f32.xlu0 %v6519_v42  ;;  %v6327_v5 = vpop.f32.mrb[70].mxu0  ;;  %v6546_v62 = vsel %vm2432_vm4, %v11823_v39, -inf  ;;  %v11843_v48 = vadd.f32 %v6487_v53, %v10855_v29 }
 0xd50   :  { %v6481_v3 = vmul.f32 0.17677669, %v6327_v5  ;;  %v9574_v57 = vpop.f32.mrb[71].mxu0  ;;  %6547 = vmax.xlane.f32.xlu1 %v6546_v62  ;;  %v11833_v28 = vadd.f32 %v6480_v27, %v10852_v49 }
 0xd51   :  { %v6549_v4 = vsel %vm2432_vm4, %v11843_v48, -inf }
 0xd52   :  { %v11838_v6 = vadd.f32 %v6481_v3, %v10855_v29  ;;  %v6528_v7 = vsel %vm2432_vm4, %v11833_v28, -inf }
 0xd53   :  { %6538 = vmax.xlane.f32.xlu0 %v6537_v30 }
 0xd54   :  { %6529 = vmax.xlane.f32.xlu1 %v6528_v7  ;;  %v6531_v17 = vsel %vm2432_vm4, %v11838_v6, -inf }
 0xd55   :  { %v6418_v35 = vpop.f32.mrb[72].mxu0 }
 0xd56   :  { %v9585_v33 = vpop.f32.mrb[73].mxu0  ;;  %v6484_v12 = vmul.f32 0.17677669, %v6418_v35 }
 0xd57   :  { %6532 = vmax.xlane.f32.xlu0 %v6531_v17  ;;  %v6421_v54 = vpop.f32.mrb[74].mxu0 }
 0xd58   :  { %v6485_v61 = vmul.f32 0.17677669, %v6421_v54  ;;  %v9586_v2 = vpop.f32.mrb[75].mxu0 }
 0xd5a   :  { %v11848_v52 = vadd.f32 %v6485_v61, %v10855_v29  ;;  %v11861_v29 = vadd.f32 %v6484_v12, %v10852_v49 }
 0xd5b   :  { %6550 = vmax.xlane.f32.xlu0 %v6549_v4 }
 0xd5c   :  { %v6543_v44 = vsel %vm2432_vm4, %v11848_v52, -inf  ;;  %v6540_v15 = vsel %vm2432_vm4, %v11861_v29, -inf }
 0xd5f   :  { %6544 = vmax.xlane.f32.xlu0 %v6543_v44 }
 0xd65   :  { %5556 = vrot.lane.b32.xlu1 %v11476_v11, %s10214_s29 }
 0xd75   :  { %5560 = vrot.lane.b32.xlu0 %v11476_v11, %s10207_s7 }
 0xd79   :  { %5558 = vrot.lane.b32.xlu0 %v11472_v55, %s10214_s29 }
 0xd89   :  { %6541 = vmax.xlane.f32.xlu1 %v6540_v15 }
 0xd9a   :  { %5564 = vrot.lane.b32.xlu1 %v11476_v11, %s10213_s28 }
 0xd9e   :  { %5562 = vrot.lane.b32.xlu1 %v11472_v55, %s10207_s7 }
 0xdc8   :  { %v6506_v14 = vpop.xlane.xlu0 %6505 }
 0xdc9   :  { %v6552_v9 = vsub.f32 %v11780_v13, %v6506_v14 }
 0xdca   :  { %v6509_v63 = vpop.xlane.xlu1 %6508 }
 0xdcb   :  { %v6568_v58 = vmul.f32 1.442695, %v6552_v9  ;;  %v6553_v47 = vsub.f32 %v11785_v46, %v6509_v63 }
 0xdcd   :  { %10001 = vpow2.f32 %v6568_v58  ;;  %v6570_v49 = vmul.f32 1.442695, %v6553_v47 }
 0xdce   :  { %v6524_v22 = vpop.xlane.xlu1 %6523 }
 0xdcf   :  { %10003 = vpow2.f32 %v6570_v49  ;;  %v6558_v24 = vsub.f32 %v11790_v50, %v6524_v22 }
 0xdd0   :  { %v6512_v16 = vpop.xlane.xlu0 %6511 }
 0xdd1   :  { %v6580_v43 = vmul.f32 1.442695, %v6558_v24  ;;  %v6554_v25 = vsub.f32 %v11795_v8, %v6512_v16 }
 0xdd3   :  { %10005 = vpow2.f32 %v6580_v43  ;;  %v6572_v1 = vmul.f32 1.442695, %v6554_v25 }
 0xdd4   :  { %v6515_v45 = vpop.xlane.xlu0 %6514 }
 0xdd5   :  { %10007 = vpow2.f32 %v6572_v1  ;;  %v6536_v56 = vpop.xlane.xlu1 %6535  ;;  %v6555_v41 = vsub.f32 %v11800_v10, %v6515_v45 }
 0xdd6   :  { %v6562_v46 = vsub.f32 %v11803_v51, %v6536_v56 }
 0xdd7   :  { %v11873_v13 = vpop.eup %10001  ;;  %v6574_v3 = vmul.f32 1.442695, %v6555_v41 }
 0xdd8   :  { %v6527_v27 = vpop.xlane.xlu0 %6526  ;;  %v6600_v31 = vsel %vm2432_vm4, %v11873_v13, 0.0  ;;  %v6588_v10 = vmul.f32 1.442695, %v6562_v46 }
 0xdd9   :  { %v11879_v50 = vpop.eup %10003  ;;  %v6559_v42 = vsub.f32 %v11808_v59, %v6527_v27  ;;  %6601 = vadd.xlane.f32.xlu1 %v6600_v31  ;;  %v6518_v8 = vpop.xlane.xlu1 %6517 }
 0xdda   :  { %v6556_v5 = vsub.f32 %v11813_v60, %v6518_v8  ;;  %v6603_v62 = vsel %vm2432_vm4, %v11879_v50, 0.0 }
 0xddb   :  { %v6582_v57 = vmul.f32 1.442695, %v6559_v42  ;;  %6604 = vadd.xlane.f32.xlu0 %v6603_v62 }
 0xddc   :  { %v6576_v51 = vmul.f32 1.442695, %v6556_v5  ;;  %v6521_v53 = vpop.xlane.xlu0 %6520 }
 0xddd   :  { %v11885_v30 = vpop.eup %10005  ;;  %10009 = vpow2.f32 %v6582_v57  ;;  %v6557_v7 = vsub.f32 %v11818_v23, %v6521_v53  ;;  %v11888_v35 = vpop.xlane.xlu1 %6547  ;;  %v5572_v57 = vshrl.u32 %v11476_v11, 16 }
 0xdde   :  { %10011 = vpow2.f32 %v6576_v51  ;;  %v6618_v59 = vsel %vm2432_vm4, %v11885_v30, 0.0 }
 0xddf   :  { %v11892_v60 = vpop.eup %10007  ;;  %10013 = vpow2.f32 %v6574_v3  ;;  %v6578_v33 = vmul.f32 1.442695, %v6557_v7  ;;  %6619 = vadd.xlane.f32.xlu0 %v6618_v59  ;;  %v6566_v7 = vsub.f32 %v11823_v39, %v11888_v35 }
 0xde0   :  { %10015 = vpow2.f32 %v6588_v10  ;;  %v6539_v17 = vpop.xlane.xlu0 %6538  ;;  %v6606_v23 = vsel %vm2432_vm4, %v11892_v60, 0.0 }
 0xde1   :  { %v6563_v54 = vsub.f32 %v11828_v38, %v6539_v17  ;;  %v6530_v61 = vpop.xlane.xlu1 %6529  ;;  %10017 = vpow2.f32 %v6578_v33 }
 0xde2   :  { %v6560_v2 = vsub.f32 %v11833_v28, %v6530_v61 }
 0xde3   :  { %v6590_v4 = vmul.f32 1.442695, %v6563_v54  ;;  %6607 = vadd.xlane.f32.xlu0 %v6606_v23 }
 0xde4   :  { %v6584_v44 = vmul.f32 1.442695, %v6560_v2  ;;  %v6533_v12 = vpop.xlane.xlu0 %6532 }
 0xde5   :  { %10019 = vpow2.f32 %v6590_v4  ;;  %v6561_v8 = vsub.f32 %v11838_v6, %v6533_v12  ;;  %v5557_v62 = vpop.permute.xlu1 %5556  ;;  %v6596_v4 = vmul.f32 1.442695, %v6566_v7 }
 0xde6   :  { %10021 = vpow2.f32 %v6584_v44  ;;  %v5573_v3 = vshrl.u32 %v5557_v62, 16  ;;  %v5570_v10 = vpack.i.b16 %v5557_v62, %v11476_v11 }
 0xde7   :  { %v11898_v15 = vpop.eup %10009  ;;  %v6586_v5 = vmul.f32 1.442695, %v6561_v8 }
 0xde8   :  { %v11900_v14 = vpop.eup %10011  ;;  %v6551_v9 = vpop.xlane.xlu0 %6550  ;;  %v6621_v38 = vsel %vm2432_vm4, %v11898_v15, 0.0  ;;  %v5574_v59 = vpack.i.b16 %v5573_v3, %v5572_v57  ;;  %v5600_v54 = vcombine.high %v5570_v10, %v10515_v18  ;;  %v5607_v11 = vrot.slane %v5570_v10, %v10519_v21 }
 0xde9   :  { %v11904_v63 = vpop.eup %10013  ;;  %6622 = vadd.xlane.f32.xlu1 %v6621_v38  ;;  %v6612_v28 = vsel %vm2432_vm4, %v11900_v14, 0.0  ;;  %v6567_v47 = vsub.f32 %v11843_v48, %v6551_v9 }
 0xdea   :  { %v11908_v58 = vpop.eup %10015  ;;  %6613 = vadd.xlane.f32.xlu0 %v6612_v28  ;;  %v6609_v22 = vsel %vm2432_vm4, %v11904_v63, 0.0  ;;  %v5666_v44 = vcombine.high %v5574_v59, %v10515_v18  ;;  %v5614_v35 = vrot.slane %v5600_v54, %v10519_v21 }
 0xdeb   :  { %v11913_v24 = vpop.eup %10017  ;;  %v6630_v43 = vsel %vm2432_vm4, %v11908_v58, 0.0  ;;  %v6598_v1 = vmul.f32 1.442695, %v6567_v47 }
 0xdec   :  { %v6545_v49 = vpop.xlane.xlu0 %6544  ;;  %v6615_v48 = vsel %vm2432_vm4, %v11913_v24, 0.0 }
 0xded   :  { %v6565_v16 = vsub.f32 %v11848_v52, %v6545_v49  ;;  %6610 = vadd.xlane.f32.xlu1 %v6609_v22  ;;  %v5673_v22 = vrot.slane %v5574_v59, %v10519_v21 }
 0xdee   :  { %6631 = vadd.xlane.f32.xlu0 %v6630_v43 }
 0xdef   :  { %v11918_v25 = vpop.eup %10019  ;;  %v6594_v45 = vmul.f32 1.442695, %v6565_v16  ;;  %v5680_v16 = vrot.slane %v5666_v44, %v10519_v21 }
 0xdf0   :  { %v6633_v56 = vsel %vm2432_vm4, %v11918_v25, 0.0  ;;  %v11924_v41 = vpop.eup %10021  ;;  %v5561_v33 = vpop.permute.xlu0 %5560 }
 0xdf1   :  { %10023 = vpow2.f32 %v6594_v45  ;;  %6616 = vadd.xlane.f32.xlu1 %v6615_v48  ;;  %v6624_v52 = vsel %vm2432_vm4, %v11924_v41, 0.0  ;;  %v5580_v61 = vshrl.u32 %v5561_v33, 16 }
 0xdf2   :  { %6634 = vadd.xlane.f32.xlu0 %v6633_v56  ;;  %10025 = vpow2.f32 %v6598_v1 }
 0xdf3   :  { %10027 = vpow2.f32 %v6586_v5 }
 0xdf6   :  { %6625 = vadd.xlane.f32.xlu0 %v6624_v52 }
 0xdfb   :  { %v11928_v46 = vpop.eup %10023 }
 0xdfc   :  { %v6639_v27 = vsel %vm2432_vm4, %v11928_v46, 0.0  ;;  %v11932_v31 = vpop.eup %10025 }
 0xdfd   :  { %6640 = vadd.xlane.f32.xlu0 %v6639_v27  ;;  %v6645_v42 = vsel %vm2432_vm4, %v11932_v31, 0.0  ;;  %v11950_v9 = vpop.eup %10027 }
 0xdfe   :  { %v6627_v8 = vsel %vm2432_vm4, %v11950_v9, 0.0 }
 0xe01   :  { %6646 = vadd.xlane.f32.xlu0 %v6645_v42 }
 0xe02   :  { %5566 = vrot.lane.b32.xlu1 %v11472_v55, %s10213_s28 }
 0xe16   :  { %v6542_v51 = vpop.xlane.xlu1 %6541 }
 0xe17   :  { %v6564_v53 = vsub.f32 %v11861_v29, %v6542_v51 }
 0xe19   :  { %v6592_v17 = vmul.f32 1.442695, %v6564_v53 }
 0xe1a   :  { %v5565_v6 = vpop.permute.xlu1 %5564 }
 0xe1b   :  { %v5578_v2 = vpack.i.b16 %v5565_v6, %v5561_v33  ;;  %v5581_v23 = vshrl.u32 %v5565_v6, 16  ;;  %10029 = vpow2.f32 %v6592_v17 }
 0xe1c   :  { %10031 = vpow2.f32 %v6596_v4 }
 0xe1d   :  { %v5582_v12 = vpack.i.b16 %v5581_v23, %v5580_v61  ;;  %v5615_v29 = vcombine.high %v5578_v2, %v10515_v18  ;;  %v5622_v39 = vrot.slane %v5578_v2, %v10519_v21 }
 0xe1f   :  { %v5629_v38 = vrot.slane %v5615_v29, %v10519_v21  ;;  %v5630_v28 = vcombine.low %v5607_v11, %v5622_v39  ;;  %v5631_v47 = vcombine.high %v5607_v11, %v5622_v39  ;;  %v5681_v49 = vcombine.high %v5582_v12, %v10515_v18 }
 0xe20   :  { %v5688_v43 = vrot.slane %v5582_v12, %v10519_v21 }
 0xe21   :  { %v5638_v1 = vrot.slane %v5630_v28, %v10528_v40  ;;  %v5645_v45 = vrot.slane %v5631_v47, %v10528_v40  ;;  %v5646_v48 = vcombine.low %v5614_v35, %v5629_v38  ;;  %v5647_v56 = vcombine.high %v5614_v35, %v5629_v38 }
 0xe22   :  { %v5695_v52 = vrot.slane %v5681_v49, %v10519_v21  ;;  %v5696_v27 = vcombine.low %v5673_v22, %v5688_v43  ;;  %v5697_v42 = vcombine.high %v5673_v22, %v5688_v43 }
 0xe23   :  { %v5654_v5 = vrot.slane %v5646_v48, %v10528_v40  ;;  %v5661_v62 = vrot.slane %v5647_v56, %v10528_v40  ;;  %v5864_v3 = vcombine.low %v5638_v1, %v5645_v45  ;;  %v9104_v57 = vcombine.high %v5638_v1, %v5645_v45 }
 0xe24   :  { %v5704_v10 = vrot.slane %v5696_v27, %v10528_v40  ;;  %v5711_v51 = vrot.slane %v5697_v42, %v10528_v40  ;;  %v5712_v53 = vcombine.low %v5680_v16, %v5695_v52  ;;  %v5713_v7 = vcombine.high %v5680_v16, %v5695_v52 }
 0xe25   :  { %v5871_v59 = vrot.slane %v5864_v3, %v10519_v21  ;;  %v5879_v33 = vrot.slane %v9104_v57, %v10519_v21  ;;  %v5880_v17 = vcombine.low %v5654_v5, %v5661_v62  ;;  %v9105_v54 = vcombine.high %v5654_v5, %v5661_v62  ;;  %v11968_v6 = vpop.eup %10029 }
 0xe26   :  { %v5720_v61 = vrot.slane %v5712_v53, %v10528_v40  ;;  %v5727_v2 = vrot.slane %v5713_v7, %v10528_v40  ;;  %v5914_v23 = vcombine.low %v5704_v10, %v5711_v51  ;;  %v9106_v4 = vcombine.high %v5704_v10, %v5711_v51  ;;  %6628 = vadd.xlane.f32.xlu1 %v6627_v8  ;;  %v11978_v49 = vpop.eup %10031 }
 0xe27   :  { %v5887_v44 = vrot.slane %v5880_v17, %v10519_v21  ;;  %v5895_v11 = vrot.slane %v9105_v54, %v10519_v21  ;;  %v5896_v12 = vcombine.low %v5871_v59, %v5879_v33  ;;  %v6636_v28 = vsel %vm2432_vm4, %v11968_v6, 0.0  ;;  %v5563_v17 = vpop.permute.xlu1 %5562  ;;  %v5559_v54 = vpop.permute.xlu0 %5558 }
 0xe28   :  { %v5921_v29 = vrot.slane %v5914_v23, %v10519_v21  ;;  %v5929_v39 = vrot.slane %v9106_v4, %v10519_v21  ;;  %v5930_v35 = vcombine.low %v5720_v61, %v5727_v2  ;;  %v9107_v38 = vcombine.high %v5720_v61, %v5727_v2 }
 0xe29   :  { %v5904_v47 = vcombine.low %v5887_v44, %v5895_v11  ;;  %v5903_v1 = vrot.slane %v5896_v12, %v10528_v40  ;;  %v6642_v56 = vsel %vm2432_vm4, %v11978_v49, 0.0 }
 0xe2a   :  { %6637 = vadd.xlane.f32.xlu1 %v6636_v28  ;;  %v5937_v22 = vrot.slane %v5930_v35, %v10519_v21  ;;  %v5945_v16 = vrot.slane %v9107_v38, %v10519_v21  ;;  %v5946_v43 = vcombine.low %v5921_v29, %v5929_v39  ;;  %v5589_v28 = vshrl.u32 %v5559_v54, 16 }
 0xe2b   :  { %v5911_v45 = vrot.slane %v5904_v47, %v10528_v40 }
 0xe2c   :  { %v5954_v48 = vcombine.low %v5937_v22, %v5945_v16  ;;  %v5953_v42 = vrot.slane %v5946_v43, %v10528_v40 }
 0xe2d   :  { %v5912_v52 = vcombine.low %v5903_v1, %v5911_v45  ;;  %v5913_v27 = vcombine.high %v5903_v1, %v5911_v45 }
 0xe2e   :  { %6643 = vadd.xlane.f32.xlu1 %v6642_v56  ;;  %v5961_v8 = vrot.slane %v5954_v48, %v10528_v40 }
 0xe2f   :  { %v6068_v3 = vshrl.u32 %v5912_v52, 16  ;;  %v6076_v57 = vshrl.u32 %v5913_v27, 16 }
 0xe30   :  { %v5962_v5 = vcombine.low %v5953_v42, %v5961_v8  ;;  %v5963_v62 = vcombine.high %v5953_v42, %v5961_v8 }
 0xe32   :  { %v6066_v10 = vpack.i.b16 %v5962_v5, %v5912_v52  ;;  %v6069_v51 = vshrl.u32 %v5962_v5, 16  ;;  %v6074_v53 = vpack.i.b16 %v5963_v62, %v5913_v27  ;;  %v6077_v7 = vshrl.u32 %v5963_v62, 16 }
 0xe33   :  { %v5596_v27 = vshrl.u32 %v5563_v17, 16 }
 0xe34   :  { %9594 = vmatpush3.bf16.msra.mxu0 %v6066_v10  ;;  %v6070_v59 = vpack.i.b16 %v6069_v51, %v6068_v3  ;;  %v11988_v33 = vpack.i.b16 %v6077_v7, %v6076_v57 }
 0xe35   :  { %9605 = vmatprep.subr.bf16.mxu0 %v10212_v20 }
 0xe36   :  { %9600 = vmatpush3.bf16.msra.mxu1 %v6070_v59 }
 0xe37   :  { %9611 = vmatprep.subr.bf16.mxu1 %v10212_v20 }
 0xe66   :  { %v6602_v61 = vpop.xlane.xlu1 %6601 }
 0xe67   :  { %10033 = vrcp.f32 %v6602_v61 }
 0xe68   :  { %v6605_v2 = vpop.xlane.xlu0 %6604 }
 0xe69   :  { %10035 = vrcp.f32 %v6605_v2 }
 0xe6c   :  { %v6620_v23 = vpop.xlane.xlu0 %6619 }
 0xe6d   :  { %10037 = vrcp.f32 %v6620_v23 }
 0xe70   :  { %v6608_v29 = vpop.xlane.xlu0 %6607 }
 0xe71   :  { %v10034_v4 = vpop.eup %10033  ;;  %10039 = vrcp.f32 %v6608_v29 }
 0xe72   :  { %v6649_v11 = vmul.f32 %v10034_v4, %v11873_v13  ;;  %v5588_v13 = vshrl.u32 %v11472_v55, 16 }
 0xe73   :  { %v10036_v44 = vpop.eup %10035 }
 0xe74   :  { %v6651_v12 = vmul.f32 %v10036_v44, %v11879_v50  ;;  %v5586_v50 = vpack.i.b16 %v5559_v54, %v11472_v55  ;;  %v5590_v22 = vpack.i.b16 %v5589_v28, %v5588_v13 }
 0xe76   :  { %v6623_v39 = vpop.xlane.xlu1 %6622  ;;  %v6680_v35 = vpack.c.bf16 %v6651_v12, %v6649_v11  ;;  %v5732_v1 = vcombine.high %v5586_v50, %v10515_v18  ;;  %v5798_v45 = vcombine.high %v5590_v22, %v10515_v18  ;;  %v5739_v62 = vrot.slane %v5586_v50, %v10519_v21 }
 0xe77   :  { %v6614_v38 = vpop.xlane.xlu0 %6613  ;;  %10041 = vrcp.f32 %v6623_v39  ;;  %v10038_v48 = vpop.eup %10037  ;;  %v5805_v3 = vrot.slane %v5590_v22, %v10519_v21 }
 0xe78   :  { %9596 = vmatmul.mubr.msk.bf16.vlgmr.msra.gmra.mrb[76].mxu0 %vm2432_vm4, %v6680_v35  ;;  %v5746_v55 = vrot.slane %v5732_v1, %v10519_v21  ;;  %v5812_v51 = vrot.slane %v5798_v45, %v10519_v21  ;;  %v6661_v54 = vmul.f32 %v10038_v48, %v11885_v30 }
 0xe79   :  { %9606 = vmatpush3.bf16.msra.mxu0 %v6074_v53  ;;  %9607 = vmatprep.mubr.msk.bf16.mxu0 %vm10215_vm0, %v10212_v20 }
 0xe7a   :  { %v6611_v47 = vpop.xlane.xlu1 %6610  ;;  %9617 = vmatprep.subr.bf16.mxu0 %v10212_v20 }
 0xe7b   :  { %10043 = vrcp.f32 %v6611_v47  ;;  %v6632_v16 = vpop.xlane.xlu0 %6631  ;;  %v10040_v52 = vpop.eup %10039 }
 0xe7c   :  { %10045 = vrcp.f32 %v6614_v38 }
 0xe7e   :  { %v6617_v43 = vpop.xlane.xlu1 %6616 }
 0xe7f   :  { %10047 = vrcp.f32 %v6617_v43  ;;  %v6635_v57 = vpop.xlane.xlu0 %6634 }
 0xe80   :  { %10049 = vrcp.f32 %v6632_v16 }
 0xe81   :  { %v10042_v5 = vpop.eup %10041  ;;  %10051 = vrcp.f32 %v6635_v57 }
 0xe82   :  { %v5567_v56 = vpop.permute.xlu1 %5566  ;;  %v6663_v11 = vmul.f32 %v10042_v5, %v11898_v15 }
 0xe83   :  { %v5594_v42 = vpack.i.b16 %v5567_v56, %v5563_v17  ;;  %v5597_v8 = vshrl.u32 %v5567_v56, 16  ;;  %v6653_v17 = vmul.f32 %v10040_v52, %v11892_v60 }
 0xe85   :  { %v10044_v10 = vpop.eup %10043  ;;  %v5598_v53 = vpack.i.b16 %v5597_v8, %v5596_v27  ;;  %v5747_v7 = vcombine.high %v5594_v42, %v10515_v18  ;;  %v5754_v59 = vrot.slane %v5594_v42, %v10519_v21 }
 0xe86   :  { %v6655_v61 = vmul.f32 %v10044_v10, %v11904_v63  ;;  %v10046_v2 = vpop.eup %10045 }
 0xe87   :  { %v5761_v23 = vrot.slane %v5747_v7, %v10519_v21  ;;  %v5762_v4 = vcombine.low %v5739_v62, %v5754_v59  ;;  %v5763_v44 = vcombine.high %v5739_v62, %v5754_v59  ;;  %v5813_v12 = vcombine.high %v5598_v53, %v10515_v18 }
 0xe88   :  { %v5820_v29 = vrot.slane %v5598_v53, %v10519_v21  ;;  %v6681_v39 = vpack.c.bf16 %v6655_v61, %v6653_v17  ;;  %v6657_v28 = vmul.f32 %v10046_v2, %v11900_v14 }
 0xe89   :  { %v10048_v35 = vpop.eup %10047  ;;  %v5770_v30 = vrot.slane %v5762_v4, %v10528_v40  ;;  %v5777_v60 = vrot.slane %v5763_v44, %v10528_v40  ;;  %v5778_v63 = vcombine.low %v5746_v55, %v5761_v23  ;;  %v5779_v38 = vcombine.high %v5746_v55, %v5761_v23 }
 0xe8a   :  { %v5827_v47 = vrot.slane %v5813_v12, %v10519_v21  ;;  %v5828_v13 = vcombine.low %v5805_v3, %v5820_v29  ;;  %v5829_v50 = vcombine.high %v5805_v3, %v5820_v29  ;;  %9602 = vmatmul.mubr.msk.bf16.vlgmr.msra.gmra.mrb[64].mxu1 %vm2432_vm4, %v6681_v39  ;;  %v6659_v18 = vmul.f32 %v10048_v35, %v11913_v24  ;;  %v10050_v57 = vpop.eup %10049 }
 0xe8b   :  { %v5786_v15 = vrot.slane %v5778_v63, %v10528_v40  ;;  %v5793_v22 = vrot.slane %v5779_v38, %v10528_v40  ;;  %v5964_v16 = vcombine.low %v5770_v30, %v5777_v60  ;;  %9612 = vmatpush3.bf16.msra.mxu1 %v11988_v33  ;;  %9613 = vmatprep.mubr.msk.bf16.mxu1 %vm10215_vm0, %v10212_v20  ;;  %v10052_v59 = vpop.eup %10051 }
 0xe8c   :  { %v5836_v43 = vrot.slane %v5828_v13, %v10528_v40  ;;  %v5843_v1 = vrot.slane %v5829_v50, %v10528_v40  ;;  %v5844_v14 = vcombine.low %v5812_v51, %v5827_v47  ;;  %v5845_v45 = vcombine.high %v5812_v51, %v5827_v47  ;;  %9623 = vmatprep.subr.bf16.mxu1 %v10212_v20 }
 0xe8d   :  { %v5971_v48 = vrot.slane %v5964_v16, %v10519_v21  ;;  %v9108_v56 = vcombine.high %v5770_v30, %v5777_v60  ;;  %v5980_v24 = vcombine.low %v5786_v15, %v5793_v22  ;;  %v9109_v52 = vcombine.high %v5786_v15, %v5793_v22 }
 0xe8e   :  { %v5852_v27 = vrot.slane %v5844_v14, %v10528_v40  ;;  %v5859_v33 = vrot.slane %v5845_v45, %v10528_v40  ;;  %v6014_v42 = vcombine.low %v5836_v43, %v5843_v1  ;;  %v9110_v8 = vcombine.high %v5836_v43, %v5843_v1 }
 0xe8f   :  { %v5979_v5 = vrot.slane %v9108_v56, %v10519_v21  ;;  %v5987_v62 = vrot.slane %v5980_v24, %v10519_v21  ;;  %v5995_v55 = vrot.slane %v9109_v52, %v10519_v21  ;;  %v6683_v3 = vpack.c.bf16 %v6663_v11, %v6661_v54 }
 0xe90   :  { %v6021_v10 = vrot.slane %v6014_v42, %v10519_v21  ;;  %v6029_v51 = vrot.slane %v9110_v8, %v10519_v21  ;;  %v6030_v53 = vcombine.low %v5852_v27, %v5859_v33  ;;  %v9111_v7 = vcombine.high %v5852_v27, %v5859_v33 }
 0xe91   :  { %v6682_v17 = vpack.c.bf16 %v6659_v18, %v6657_v28  ;;  %v5996_v61 = vcombine.low %v5971_v48, %v5979_v5  ;;  %v6004_v2 = vcombine.low %v5987_v62, %v5995_v55  ;;  %v6671_v13 = vmul.f32 %v10052_v59, %v11918_v25  ;;  %v6626_v25 = vpop.xlane.xlu0 %6625 }
 0xe92   :  { %9614 = vmatmul.mubr.msk.bf16.vlgmr.msra.gmra.mrb[68].mxu1 %vm2432_vm4, %v6683_v3  ;;  %v6037_v23 = vrot.slane %v6030_v53, %v10519_v21  ;;  %v6045_v4 = vrot.slane %v9111_v7, %v10519_v21  ;;  %v6046_v44 = vcombine.low %v6021_v10, %v6029_v51  ;;  %v6669_v15 = vmul.f32 %v10050_v57, %v11908_v58 }
 0xe93   :  { %9608 = vmatmul.mubr.msk.bf16.vlgmr.msra.gmra.mrb[80].mxu0 %vm2432_vm4, %v6682_v17  ;;  %v6011_v54 = vrot.slane %v6004_v2, %v10528_v40  ;;  %9625 = vmatprep.mubr.msk.bf16.mxu1 %vm10215_vm0, %v10212_v20  ;;  %v6003_v11 = vrot.slane %v5996_v61, %v10528_v40  ;;  %10053 = vrcp.f32 %v6626_v25 }
 0xe94   :  { %v6054_v12 = vcombine.low %v6037_v23, %v6045_v4  ;;  %9619 = vmatprep.mubr.msk.bf16.mxu0 %vm10215_vm0, %v10212_v20  ;;  %v6053_v39 = vrot.slane %v6046_v44, %v10528_v40  ;;  %v6685_v16 = vpack.c.bf16 %v6671_v13, %v6669_v15 }
 0xe95   :  { %v6012_v29 = vcombine.low %v6003_v11, %v6011_v54  ;;  %v6013_v47 = vcombine.high %v6003_v11, %v6011_v54  ;;  %v6641_v1 = vpop.xlane.xlu0 %6640 }
 0xe96   :  { %v6061_v35 = vrot.slane %v6054_v12, %v10528_v40 }
 0xe97   :  { %v6084_v38 = vshrl.u32 %v6012_v29, 16  ;;  %v6092_v22 = vshrl.u32 %v6013_v47, 16 }
 0xe98   :  { %v6062_v30 = vcombine.low %v6053_v39, %v6061_v35  ;;  %v6063_v60 = vcombine.high %v6053_v39, %v6061_v35 }
 0xe99   :  { %v6647_v58 = vpop.xlane.xlu0 %6646 }
 0xe9a   :  { %v6082_v63 = vpack.i.b16 %v6062_v30, %v6012_v29  ;;  %v6085_v28 = vshrl.u32 %v6062_v30, 16  ;;  %v6093_v18 = vshrl.u32 %v6063_v60, 16  ;;  %v6090_v8 = vpack.i.b16 %v6063_v60, %v6013_v47 }
 0xe9c   :  { %9618 = vmatpush3.bf16.msra.mxu0 %v6082_v63  ;;  %v6086_v50 = vpack.i.b16 %v6085_v28, %v6084_v38  ;;  %v6094_v43 = vpack.i.b16 %v6093_v18, %v6092_v22 }
 0xe9d   :  { %9629 = vmatprep.subr.bf16.mxu0 %v10212_v20  ;;  %v10054_v56 = vpop.eup %10053 }
 0xe9e   :  { %9624 = vmatpush3.bf16.msra.mxu1 %v6086_v50  ;;  %v6665_v52 = vmul.f32 %v10054_v56, %v11924_v41 }
 0xe9f   :  { %9635 = vmatprep.subr.bf16.mxu1 %v10212_v20 }
 0xea1   :  { %9626 = vmatmul.mubr.msk.bf16.vlgmr.msra.gmra.mrb[72].mxu1 %vm2432_vm4, %v6685_v16 }
 0xea2   :  { %9636 = vmatpush3.bf16.msra.mxu1 %v6094_v43  ;;  %9637 = vmatprep.mubr.msk.bf16.mxu1 %vm10215_vm0, %v10212_v20 }
 0xeb3   :  { %v6629_v14 = vpop.xlane.xlu1 %6628 }
 0xeb4   :  { %10055 = vrcp.f32 %v6629_v14 }
 0xeb7   :  { %v6638_v45 = vpop.xlane.xlu1 %6637 }
 0xeb8   :  { %10057 = vrcp.f32 %v6638_v45 }
 0xeb9   :  { %10059 = vrcp.f32 %v6641_v1 }
 0xeba   :  { %10061 = vrcp.f32 %v6647_v58 }
 0xebb   :  { %v6644_v48 = vpop.xlane.xlu1 %6643 }
 0xebc   :  { %10063 = vrcp.f32 %v6644_v48 }
 0xebe   :  { %v10056_v24 = vpop.eup %10055 }
 0xebf   :  { %v6667_v27 = vmul.f32 %v10056_v24, %v11950_v9 }
 0xec1   :  { %v6684_v33 = vpack.c.bf16 %v6667_v27, %v6665_v52 }
 0xec2   :  { %v10058_v42 = vpop.eup %10057 }
 0xec3   :  { %v10060_v5 = vpop.eup %10059  ;;  %9620 = vmatmul.mubr.msk.bf16.vlgmr.msra.gmra.mrb[84].mxu0 %vm2432_vm4, %v6684_v33  ;;  %v6673_v55 = vmul.f32 %v10058_v42, %v11968_v6 }
 0xec4   :  { %v10062_v62 = vpop.eup %10061  ;;  %9630 = vmatpush3.bf16.msra.mxu0 %v6090_v8  ;;  %9631 = vmatprep.mubr.msk.bf16.mxu0 %vm10215_vm0, %v10212_v20  ;;  %v6675_v57 = vmul.f32 %v10060_v5, %v11928_v46 }
 0xec5   :  { %v6679_v41 = vmul.f32 %v10062_v62, %v11932_v31 }
 0xec6   :  { %v10064_v3 = vpop.eup %10063  ;;  %v6686_v10 = vpack.c.bf16 %v6675_v57, %v6673_v55 }
 0xec7   :  { %v6677_v9 = vmul.f32 %v10064_v3, %v11978_v49 }
 0xec9   :  { %v6687_v51 = vpack.c.bf16 %v6679_v41, %v6677_v9 }
 0xecb   :  { %9632 = vmatmul.mubr.msk.bf16.vlgmr.msra.gmra.mrb[88].mxu0 %vm2432_vm4, %v6686_v10  ;;  %9638 = vmatmul.mubr.msk.bf16.vlgmr.msra.gmra.mrb[76].mxu1 %vm2432_vm4, %v6687_v51 }
 0xecc   :  { %7984 = vmatprep.mubr.bf16.mxu1 %v10211_v0 }
 0xf4b   :  { %v6725_v53 = vpop.f32.mrb[76].mxu0 }
 0xf4c   :  { %v9597_v7 = vpop.f32.mrb[77].mxu0 }
 0xf4d   :  { %v6728_v59 = vpop.f32.mrb[78].mxu0 }
 0xf4e   :  { %v9598_v17 = vpop.f32.mrb[79].mxu0 }
 0xf5d   :  { %v6769_v6 = vpop.f32.mrb[64].mxu1 }
 0xf5e   :  { %v9603_v61 = vpop.f32.mrb[65].mxu1 }
 0xf5f   :  { %v6772_v2 = vpop.f32.mrb[66].mxu1 }
 0xf60   :  { %v9604_v46 = vpop.f32.mrb[67].mxu1 }
 0xf65   :  { %v6857_v23 = vpop.f32.mrb[68].mxu1 }
 0xf66   :  { %v6813_v31 = vpop.f32.mrb[80].mxu0  ;;  %v7056_v4 = vcombine.low %v6769_v6, %v6857_v23  ;;  %v7057_v49 = vcombine.high %v6769_v6, %v6857_v23  ;;  %v9615_v44 = vpop.f32.mrb[69].mxu1 }
 0xf67   :  { %v7040_v54 = vcombine.low %v6725_v53, %v6813_v31  ;;  %v7041_v11 = vcombine.high %v6725_v53, %v6813_v31  ;;  %v9609_v12 = vpop.f32.mrb[81].mxu0  ;;  %v6860_v29 = vpop.f32.mrb[70].mxu1 }
 0xf68   :  { %v6816_v39 = vpop.f32.mrb[82].mxu0  ;;  %v7064_v35 = vrot.slane %v7056_v4, %v10519_v21  ;;  %v7071_v30 = vrot.slane %v7057_v49, %v10519_v21  ;;  %v7124_v60 = vcombine.low %v6772_v2, %v6860_v29  ;;  %v7125_v63 = vcombine.high %v6772_v2, %v6860_v29  ;;  %v9616_v38 = vpop.f32.mrb[71].mxu1 }
 0xf69   :  { %v7048_v28 = vrot.slane %v7040_v54, %v10519_v21  ;;  %v7108_v47 = vcombine.low %v6728_v59, %v6816_v39  ;;  %v7109_v13 = vcombine.high %v6728_v59, %v6816_v39  ;;  %v9610_v50 = vpop.f32.mrb[83].mxu0  ;;  %v7055_v18 = vrot.slane %v7041_v11, %v10519_v21 }
 0xf6a   :  { %v7132_v15 = vrot.slane %v7124_v60, %v10519_v21  ;;  %v7139_v22 = vrot.slane %v7125_v63, %v10519_v21 }
 0xf6b   :  { %v7116_v16 = vrot.slane %v7108_v47, %v10519_v21  ;;  %v7072_v43 = vcombine.low %v7048_v28, %v7064_v35  ;;  %v7073_v25 = vcombine.high %v7048_v28, %v7064_v35  ;;  %v7123_v1 = vrot.slane %v7109_v13, %v10519_v21 }
 0xf6c   :  { %v7088_v14 = vcombine.low %v7055_v18, %v7071_v30  ;;  %v7089_v58 = vcombine.high %v7055_v18, %v7071_v30 }
 0xf6d   :  { %v7080_v45 = vrot.slane %v7072_v43, %v10528_v40  ;;  %v7087_v48 = vrot.slane %v7073_v25, %v10528_v40  ;;  %v7140_v56 = vcombine.low %v7116_v16, %v7132_v15  ;;  %v7141_v24 = vcombine.high %v7116_v16, %v7132_v15  ;;  %v9849_v15 = vld [vmem:[#allocation2 + $0x40] sm:$0xff]  }
 0xf6e   :  { %v7096_v52 = vrot.slane %v7088_v14, %v10528_v40  ;;  %v7103_v27 = vrot.slane %v7089_v58, %v10528_v40  ;;  %v7156_v33 = vcombine.low %v7123_v1, %v7139_v22  ;;  %v7157_v42 = vcombine.high %v7123_v1, %v7139_v22  ;;  %v9850_v22 = vld [vmem:[#allocation2 + $0x48] sm:$0xff]   ;;  %9641 = vmatprep.subr.bf16.mxu0 %v9849_v15 }
 0xf6f   :  { %v7312_v8 = vcombine.low %v7080_v45, %v7087_v48  ;;  %v9128_v5 = vcombine.high %v7080_v45, %v7087_v48  ;;  %v7148_v62 = vrot.slane %v7140_v56, %v10528_v40  ;;  %v7155_v55 = vrot.slane %v7141_v24, %v10528_v40  ;;  %9642 = vmatpush3.bf16.msra.mxu0 %v9849_v15 }
 0xf70   :  { %v7328_v3 = vcombine.low %v7096_v52, %v7103_v27  ;;  %v9129_v57 = vcombine.high %v7096_v52, %v7103_v27  ;;  %v7164_v41 = vrot.slane %v7156_v33, %v10528_v40  ;;  %v7171_v9 = vrot.slane %v7157_v42, %v10528_v40  ;;  %9643 = vmatprep.subr.bf16.mxu0 %v9850_v22  ;;  %v9851_v52 = vld [vmem:[#allocation2 + $0x50] sm:$0xff]  }
 0xf71   :  { %v7319_v10 = vrot.slane %v7312_v8, %v10519_v21  ;;  %v7327_v51 = vrot.slane %v9128_v5, %v10519_v21  ;;  %v7380_v53 = vcombine.low %v7148_v62, %v7155_v55  ;;  %v9130_v7 = vcombine.high %v7148_v62, %v7155_v55  ;;  %v9852_v8 = vld [vmem:[#allocation2 + $0x58] sm:$0xff]   ;;  %v9853_v5 = vld [vmem:[#allocation2 + $0x60] sm:$0xff]   ;;  %v9854_v62 = vld [vmem:[#allocation2 + $0x68] sm:$0xff]  }
 0xf72   :  { %v7335_v59 = vrot.slane %v7328_v3, %v10519_v21  ;;  %v7343_v17 = vrot.slane %v9129_v57, %v10519_v21  ;;  %v7396_v6 = vcombine.low %v7164_v41, %v7171_v9  ;;  %v9131_v61 = vcombine.high %v7164_v41, %v7171_v9 }
 0xf73   :  { %v7387_v2 = vrot.slane %v7380_v53, %v10519_v21  ;;  %v7395_v46 = vrot.slane %v9130_v7, %v10519_v21  ;;  %v7344_v23 = vcombine.low %v7319_v10, %v7327_v51  ;;  %v7345_v31 = vcombine.high %v7319_v10, %v7327_v51  ;;  %9644 = vmatpush3.bf16.msra.mxu0 %v9850_v22 }
 0xf74   :  { %v7403_v4 = vrot.slane %v7396_v6, %v10519_v21  ;;  %v7411_v49 = vrot.slane %v9131_v61, %v10519_v21  ;;  %v12092_v44 = vpop.f32.mrb[72].mxu1  ;;  %v7360_v54 = vcombine.low %v7335_v59, %v7343_v17  ;;  %v7361_v11 = vcombine.high %v7335_v59, %v7343_v17  ;;  %9645 = vmatprep.subr.bf16.mxu0 %v9851_v52 }
 0xf75   :  { %v9627_v12 = vpop.f32.mrb[73].mxu1  ;;  %v12095_v29 = vrot.slane %v7344_v23, %v10528_v40  ;;  %v7412_v39 = vcombine.low %v7387_v2, %v7395_v46  ;;  %v7359_v35 = vrot.slane %v7345_v31, %v10528_v40  ;;  %v7413_v30 = vcombine.high %v7387_v2, %v7395_v46 }
 0xf76   :  { %v12098_v60 = vpop.f32.mrb[74].mxu1  ;;  %v12101_v63 = vrot.slane %v7360_v54, %v10528_v40  ;;  %v7428_v38 = vcombine.low %v7403_v4, %v7411_v49  ;;  %v7375_v28 = vrot.slane %v7361_v11, %v10528_v40  ;;  %v7429_v47 = vcombine.high %v7403_v4, %v7411_v49 }
 0xf77   :  { %v9628_v13 = vpop.f32.mrb[75].mxu1  ;;  %v12105_v50 = vrot.slane %v7412_v39, %v10528_v40  ;;  %v7427_v18 = vrot.slane %v7413_v30, %v10528_v40  ;;  %9646 = vmatpush3.bf16.msra.mxu0 %v9851_v52 }
 0xf78   :  { %v7377_v16 = vcombine.high %v12095_v29, %v12101_v63  ;;  %v12111_v43 = vrot.slane %v7428_v38, %v10528_v40  ;;  %v7378_v25 = vcombine.low %v7359_v35, %v7375_v28  ;;  %v7443_v1 = vrot.slane %v7429_v47, %v10528_v40  ;;  %9647 = vmatprep.subr.bf16.mxu0 %v9852_v8 }
 0xf79   :  { %v7379_v14 = vcombine.high %v7359_v35, %v7375_v28  ;;  %v7376_v58 = vcombine.low %v12095_v29, %v12101_v63 }
 0xf7a   :  { %v7445_v45 = vcombine.high %v12105_v50, %v12111_v43  ;;  %v7446_v48 = vcombine.low %v7427_v18, %v7443_v1  ;;  %v7447_v56 = vcombine.high %v7427_v18, %v7443_v1  ;;  %v7444_v24 = vcombine.low %v12105_v50, %v12111_v43 }
 0xf7b   :  { %9648 = vmatpush3.bf16.msra.mxu0 %v9852_v8 }
 0xf7c   :  { %v9707_v27 = vpack.i.bf16 %v7445_v45, %v7377_v16  ;;  %v9712_v33 = vpack.i.bf16 %v7446_v48, %v7378_v25  ;;  %v12120_v42 = vpack.i.bf16 %v7447_v56, %v7379_v14  ;;  %9649 = vmatprep.subr.bf16.mxu0 %v9853_v5 }
 0xf7e   :  { %9708 = vrot.lane.b32.xlu1 %v9707_v27, %s10213_s28 }
 0xf7f   :  { %9650 = vmatpush3.bf16.msra.mxu0 %v9853_v5 }
 0xf80   :  { %9651 = vmatprep.subr.bf16.mxu0 %v9854_v62 }
 0xf82   :  { %9713 = vrot.lane.b32.xlu1 %v9712_v33, %s10207_s7 }
 0xf83   :  { %9652 = vmatpush3.bf16.msra.mxu0 %v9854_v62 }
 0xf96   :  { %v6901_v55 = vpop.f32.mrb[84].mxu0 }
 0xf97   :  { %v9621_v3 = vpop.f32.mrb[85].mxu0 }
 0xf98   :  { %v6904_v57 = vpop.f32.mrb[86].mxu0 }
 0xf99   :  { %v9622_v41 = vpop.f32.mrb[87].mxu0 }
 0xf9e   :  { %v6989_v9 = vpop.f32.mrb[88].mxu0  ;;  %v7033_v10 = vpop.f32.mrb[76].mxu1 }
 0xf9f   :  { %v7176_v51 = vcombine.low %v6901_v55, %v6989_v9  ;;  %v7177_v53 = vcombine.high %v6901_v55, %v6989_v9  ;;  %v7192_v7 = vcombine.low %v12092_v44, %v7033_v10  ;;  %v7193_v59 = vcombine.high %v12092_v44, %v7033_v10  ;;  %v9633_v17 = vpop.f32.mrb[89].mxu0  ;;  %v9639_v6 = vpop.f32.mrb[77].mxu1 }
 0xfa0   :  { %v6992_v61 = vpop.f32.mrb[90].mxu0  ;;  %v7036_v2 = vpop.f32.mrb[78].mxu1 }
 0xfa1   :  { %v7184_v46 = vrot.slane %v7176_v51, %v10519_v21  ;;  %v7191_v23 = vrot.slane %v7177_v53, %v10519_v21  ;;  %v7200_v31 = vrot.slane %v7192_v7, %v10519_v21  ;;  %v7207_v4 = vrot.slane %v7193_v59, %v10519_v21  ;;  %v9634_v49 = vpop.f32.mrb[91].mxu0  ;;  %v9640_v54 = vpop.f32.mrb[79].mxu1 }
 0xfa2   :  { %v7244_v11 = vcombine.low %v6904_v57, %v6992_v61  ;;  %v7245_v12 = vcombine.high %v6904_v57, %v6992_v61  ;;  %v7260_v39 = vcombine.low %v12098_v60, %v7036_v2  ;;  %v7261_v44 = vcombine.high %v12098_v60, %v7036_v2  ;;  %v9855_v2 = vld [vmem:[#allocation2 + $0x70] sm:$0xff]  }
 0xfa3   :  { %v7208_v35 = vcombine.low %v7184_v46, %v7200_v31  ;;  %v7209_v30 = vcombine.high %v7184_v46, %v7200_v31  ;;  %v7224_v38 = vcombine.low %v7191_v23, %v7207_v4  ;;  %v7225_v28 = vcombine.high %v7191_v23, %v7207_v4  ;;  %9653 = vmatprep.subr.bf16.mxu0 %v9855_v2 }
 0xfa4   :  { %v7252_v47 = vrot.slane %v7244_v11, %v10519_v21  ;;  %v7259_v13 = vrot.slane %v7245_v12, %v10519_v21  ;;  %v7268_v18 = vrot.slane %v7260_v39, %v10519_v21  ;;  %v7275_v15 = vrot.slane %v7261_v44, %v10519_v21  ;;  %9654 = vmatpush3.bf16.msra.mxu0 %v9855_v2 }
 0xfa5   :  { %v7216_v22 = vrot.slane %v7208_v35, %v10528_v40  ;;  %v7223_v16 = vrot.slane %v7209_v30, %v10528_v40  ;;  %v7232_v25 = vrot.slane %v7224_v38, %v10528_v40  ;;  %v7239_v60 = vrot.slane %v7225_v28, %v10528_v40 }
 0xfa6   :  { %v7276_v1 = vcombine.low %v7252_v47, %v7268_v18  ;;  %v7277_v14 = vcombine.high %v7252_v47, %v7268_v18  ;;  %v7292_v45 = vcombine.low %v7259_v13, %v7275_v15  ;;  %v7293_v48 = vcombine.high %v7259_v13, %v7275_v15 }
 0xfa7   :  { %v7448_v56 = vcombine.low %v7216_v22, %v7223_v16  ;;  %v9132_v52 = vcombine.high %v7216_v22, %v7223_v16  ;;  %v7464_v27 = vcombine.low %v7232_v25, %v7239_v60  ;;  %v9133_v33 = vcombine.high %v7232_v25, %v7239_v60  ;;  %v9856_v25 = vld [vmem:[#allocation2 + $0x78] sm:$0xff]  }
 0xfa8   :  { %v7284_v8 = vrot.slane %v7276_v1, %v10528_v40  ;;  %v7291_v5 = vrot.slane %v7277_v14, %v10528_v40  ;;  %v7300_v62 = vrot.slane %v7292_v45, %v10528_v40  ;;  %v7307_v55 = vrot.slane %v7293_v48, %v10528_v40  ;;  %9655 = vmatprep.subr.bf16.mxu0 %v9856_v25 }
 0xfa9   :  { %v7455_v3 = vrot.slane %v7448_v56, %v10519_v21  ;;  %v7463_v57 = vrot.slane %v9132_v52, %v10519_v21  ;;  %v7471_v41 = vrot.slane %v7464_v27, %v10519_v21  ;;  %v7479_v9 = vrot.slane %v9133_v33, %v10519_v21  ;;  %9656 = vmatpush3.bf16.msra.mxu0 %v9856_v25  ;;  %v9859_v25 = vld [vmem:[#allocation5 + $0x84] ss:$8 sps:$4 sm:$0xff]  }
 0xfaa   :  { %v7516_v10 = vcombine.low %v7284_v8, %v7291_v5  ;;  %v9134_v51 = vcombine.high %v7284_v8, %v7291_v5  ;;  %v7532_v53 = vcombine.low %v7300_v62, %v7307_v55  ;;  %v9135_v7 = vcombine.high %v7300_v62, %v7307_v55  ;;  %7952 = vmatprep.subr.bf16.mxu1 %v9859_v25 }
 0xfab   :  { %v7481_v59 = vcombine.high %v7455_v3, %v7463_v57  ;;  %v7497_v17 = vcombine.high %v7471_v41, %v7479_v9  ;;  %v7480_v6 = vcombine.low %v7455_v3, %v7463_v57  ;;  %v7496_v61 = vcombine.low %v7471_v41, %v7479_v9 }
 0xfac   :  { %v7523_v46 = vrot.slane %v7516_v10, %v10519_v21  ;;  %v7531_v23 = vrot.slane %v9134_v51, %v10519_v21  ;;  %v7539_v31 = vrot.slane %v7532_v53, %v10519_v21  ;;  %v7547_v4 = vrot.slane %v9135_v7, %v10519_v21 }
 0xfad   :  { %v7495_v49 = vrot.slane %v7481_v59, %v10528_v40  ;;  %v7511_v54 = vrot.slane %v7497_v17, %v10528_v40  ;;  %v7488_v11 = vrot.slane %v7480_v6, %v10528_v40  ;;  %v7504_v12 = vrot.slane %v7496_v61, %v10528_v40 }
 0xfae   :  { %v7549_v39 = vcombine.high %v7523_v46, %v7531_v23  ;;  %v7565_v44 = vcombine.high %v7539_v31, %v7547_v4  ;;  %v7548_v35 = vcombine.low %v7523_v46, %v7531_v23  ;;  %v7564_v30 = vcombine.low %v7539_v31, %v7547_v4 }
 0xfaf   :  { %v7514_v38 = vcombine.low %v7495_v49, %v7511_v54  ;;  %v7513_v28 = vcombine.high %v7488_v11, %v7504_v12  ;;  %v7515_v47 = vcombine.high %v7495_v49, %v7511_v54  ;;  %v7512_v13 = vcombine.low %v7488_v11, %v7504_v12  ;;  %v9137_v11 = vld [vmem:[%s12313_s4 + $0x1] ss:$0 sm:$0xff] }
 0xfb0   :  { %v7563_v18 = vrot.slane %v7549_v39, %v10528_v40  ;;  %v7579_v15 = vrot.slane %v7565_v44, %v10528_v40  ;;  %v7556_v22 = vrot.slane %v7548_v35, %v10528_v40  ;;  %v7572_v16 = vrot.slane %v7564_v30, %v10528_v40 }
 0xfb2   :  { %v7582_v60 = vcombine.low %v7563_v18, %v7579_v15  ;;  %v7581_v1 = vcombine.high %v7556_v22, %v7572_v16  ;;  %v7583_v14 = vcombine.high %v7563_v18, %v7579_v15  ;;  %v7580_v45 = vcombine.low %v7556_v22, %v7572_v16  ;;  %v9857_v16 = vld [vmem:[#allocation5 + $0x80] ss:$8 sps:$4 sm:$0xff]  }
 0xfb3   :  { %7953 = vmatpush1.bf16.msra.mxu1 %v9857_v16 }
 0xfb4   :  { %v9727_v48 = vpack.i.bf16 %v7582_v60, %v7514_v38  ;;  %v9717_v56 = vpack.i.bf16 %v7581_v1, %v7513_v28  ;;  %v9732_v52 = vpack.i.bf16 %v7583_v14, %v7515_v47  ;;  %v9862_v60 = vld [vmem:[#allocation5 + $0x94] ss:$8 sps:$4 sm:$0xff]   ;;  %v9860_v1 = vld [vmem:[#allocation5 + $0x90] ss:$8 sps:$4 sm:$0xff]  }
 0xfb5   :  { %7954 = vmatprep.subr.bf16.mxu1 %v9862_v60 }
 0xfb6   :  { %9728 = vrot.lane.b32.xlu1 %v9727_v48, %s10207_s7  ;;  %9718 = vrot.lane.b32.xlu0 %v9717_v56, %s10213_s28 }
 0xfb7   :  { %7955 = vmatpush1.bf16.msra.mxu1 %v9860_v1 }
 0xfba   :  { %9733 = vrot.lane.b32.xlu1 %v9732_v52, %s10214_s29  ;;  %9723 = vrot.lane.b32.xlu0 %v12120_v42, %s10214_s29 }
 0xff0   :  { %v9709_v27 = vpop.permute.xlu1 %9708 }
 0xff1   :  { %v9711_v8 = vunpack.i.h.bf16 %v9709_v27  ;;  %v9710_v5 = vunpack.i.l.bf16 %v9709_v27 }
 0xff3   :  { %v7632_v42 = vsel %vm2023_vm1, %v7376_v58, %v9710_v5  ;;  %v7633_v59 = vsel %vm2023_vm1, %v7444_v24, %v9711_v8 }
 0xff4   :  { %v9714_v33 = vpop.permute.xlu1 %9713 }
 0xff5   :  { %v9716_v41 = vunpack.i.h.bf16 %v9714_v33  ;;  %v9715_v9 = vunpack.i.l.bf16 %v9714_v33 }
 0xff7   :  { %v7636_v31 = vsel %vm3565_vm5, %v7632_v42, %v9715_v9  ;;  %v7637_v4 = vsel %vm3565_vm5, %v7633_v59, %v9716_v41  ;;  %v9863_v41 = vld [vmem:[#allocation5 + $0xa0] ss:$8 sps:$4 sm:$0xff]   ;;  %v9868_v9 = vld [vmem:[#allocation5 + $0xb4] ss:$8 sps:$4 sm:$0xff]   ;;  %v9872_v42 = vld [vmem:[#allocation5 + $0xd0] ss:$8 sps:$4 sm:$0xff]  }
 0xff8   :  { %v9877_v59 = vld [vmem:[#allocation5 + $0xe4] ss:$8 sps:$4 sm:$0xff]  }
0x1028   :  { %v9729_v62 = vpop.permute.xlu1 %9728  ;;  %v9719_v55 = vpop.permute.xlu0 %9718 }
0x1029   :  { %v9721_v3 = vunpack.i.h.bf16 %v9719_v55  ;;  %v9720_v57 = vunpack.i.l.bf16 %v9719_v55  ;;  %v9731_v10 = vunpack.i.h.bf16 %v9729_v62  ;;  %v9730_v51 = vunpack.i.l.bf16 %v9729_v62 }
0x102b   :  { %v7634_v53 = vsel %vm2023_vm1, %v7512_v13, %v9720_v57  ;;  %v7635_v7 = vsel %vm2023_vm1, %v7580_v45, %v9721_v3  ;;  %v9865_v57 = vld [vmem:[#allocation5 + $0xa4] ss:$8 sps:$4 sm:$0xff]  }
0x102c   :  { %v9734_v17 = vpop.permute.xlu1 %9733  ;;  %v9724_v6 = vpop.permute.xlu0 %9723  ;;  %v7638_v49 = vsel %vm3565_vm5, %v7634_v53, %v9730_v51  ;;  %v7639_v29 = vsel %vm3565_vm5, %v7635_v7, %v9731_v10  ;;  %7956 = vmatprep.subr.bf16.mxu1 %v9865_v57  ;;  %v9866_v10 = vld [vmem:[#allocation5 + $0xb0] ss:$8 sps:$4 sm:$0xff]   ;;  %v9871_v51 = vld [vmem:[#allocation5 + $0xc4] ss:$8 sps:$4 sm:$0xff]   ;;  %v9869_v53 = vld [vmem:[#allocation5 + $0xc0] ss:$8 sps:$4 sm:$0xff]  }
0x102d   :  { %v9736_v61 = vunpack.i.h.bf16 %v9734_v17  ;;  %v9735_v2 = vunpack.i.l.bf16 %v9734_v17  ;;  %v9726_v46 = vunpack.i.h.bf16 %v9724_v6  ;;  %v9725_v23 = vunpack.i.l.bf16 %v9724_v6  ;;  %7957 = vmatpush1.bf16.msra.mxu1 %v9863_v41  ;;  %v9874_v7 = vld [vmem:[#allocation5 + $0xd4] ss:$8 sps:$4 sm:$0xff]   ;;  %v9875_v17 = vld [vmem:[#allocation5 + $0xe0] ss:$8 sps:$4 sm:$0xff]  }
0x102e   :  { %7958 = vmatprep.subr.bf16.mxu1 %v9868_v9  ;;  %v9880_v6 = vld [vmem:[#allocation5 + $0xf4] ss:$8 sps:$4 sm:$0xff]   ;;  %v9150_v9 = vld [vmem:[%s12317_s8 + $0x2] sm:$0x3] }
0x102f   :  { %v7642_v63 = vsel %vm3570_vm6, %v7638_v49, %v9735_v2  ;;  %v7643_v50 = vsel %vm3570_vm6, %v7639_v29, %v9736_v61  ;;  %v7640_v43 = vsel %vm3570_vm6, %v7636_v31, %v9725_v23  ;;  %v7641_v58 = vsel %vm3570_vm6, %v7637_v4, %v9726_v46  ;;  %v9878_v61 = vld [vmem:[#allocation5 + $0xf0] ss:$8 sps:$4 sm:$0xff]   ;;  %v9881_v2 = vld [vmem:[#allocation7 + $0xc0] sm:$0xff]   ;;  %v9883_v23 = vld [vmem:[#allocation7 + $0xc8] sm:$0xff]  }
0x1030   :  { %v7645_v24 = vpack.c.bf16 %v7643_v50, %v7642_v63  ;;  %v7644_v54 = vpack.c.bf16 %v7641_v58, %v7640_v43  ;;  %v9882_v46 = vld [vmem:[#allocation7 + $0x80] sm:$0xff]   ;;  %9361 = vmatprep.subr.bf16.mxu0 %v9881_v2  ;;  %v9884_v31 = vld [vmem:[#allocation7 + $0x88] sm:$0xff]   ;;  %v9885_v4 = vld [vmem:[#allocation7 + $0xd0] sm:$0xff]  }
0x1031   :  { %7959 = vmatpush1.bf16.msra.mxu1 %v9866_v10  ;;  %v9886_v49 = vld [vmem:[#allocation7 + $0x90] sm:$0xff]   ;;  %v9887_v29 = vld [vmem:[#allocation7 + $0xd8] sm:$0xff]   ;;  %v9889_v50 = vld [vmem:[#allocation7 + $0xe0] sm:$0xff]   ;;  %v7865_v10 = vrot.slane %v9150_v9, %v10458_v34 }
0x1032   :  { %9657 = vmatprep.mubr.bf16.mxu0 %v7644_v54  ;;  %7960 = vmatprep.subr.bf16.mxu1 %v9871_v51  ;;  %v9888_v63 = vld [vmem:[#allocation7 + $0x98] sm:$0xff]   ;;  %v9890_v43 = vld [vmem:[#allocation7 + $0xa0] sm:$0xff]   ;;  %v9891_v58 = vld [vmem:[#allocation7 + $0xe8] sm:$0xff]   ;;  %v7869_v51 = vrot.slane %v9150_v9, %v10464_v36 }
0x1033   :  { %9658 = vmatmul.mubr.bf16.vlgmr.msra.gmra.mrb[92].mxu0 %v7645_v24  ;;  %v9894_v57 = vld [vmem:[#allocation7 + $0xb0] sm:$0xff]   ;;  %v9896_v41 = vld [vmem:[#allocation7 + $0xb8] sm:$0xff]  }
0x1034   :  { %9362 = vmatpush3.bf16.msra.mxu0 %v9882_v46 }
0x1035   :  { %7961 = vmatpush1.bf16.msra.mxu1 %v9869_v53  ;;  %9363 = vmatprep.subr.bf16.mxu0 %v9883_v23 }
0x1036   :  { %7962 = vmatprep.subr.bf16.mxu1 %v9874_v7 }
0x1038   :  { %9364 = vmatpush3.bf16.msra.mxu0 %v9884_v31 }
0x1039   :  { %7963 = vmatpush1.bf16.msra.mxu1 %v9872_v42  ;;  %9365 = vmatprep.subr.bf16.mxu0 %v9885_v4 }
0x103a   :  { %7964 = vmatprep.subr.bf16.mxu1 %v9877_v59 }
0x103c   :  { %9366 = vmatpush3.bf16.msra.mxu0 %v9886_v49 }
0x103d   :  { %7965 = vmatpush1.bf16.msra.mxu1 %v9875_v17  ;;  %9367 = vmatprep.subr.bf16.mxu0 %v9887_v29 }
0x103e   :  { %7966 = vmatprep.subr.bf16.mxu1 %v9880_v6 }
0x1040   :  { %9368 = vmatpush3.bf16.msra.mxu0 %v9888_v63 }
0x1041   :  { %7967 = vmatpush1.bf16.msra.mxu1 %v9878_v61  ;;  %9369 = vmatprep.subr.bf16.mxu0 %v9889_v50 }
0x1044   :  { %9370 = vmatpush3.bf16.msra.mxu0 %v9890_v43 }
0x1045   :  { %9371 = vmatprep.subr.bf16.mxu0 %v9891_v58 }
0x1106   :  { %v9659_v12 = vpop.f32.mrb[92].mxu0 }
0x1107   :  { %v7753_v39 = vpop.f32.mrb[93].mxu0  ;;  %v7762_v38 = vadd.f32 %v9659_v12, %v9137_v11 }
0x1108   :  { %v7754_v44 = vadd.f32 %v9137_v11, %v7753_v39  ;;  %v9660_v35 = vpop.f32.mrb[94].mxu0 }
0x1109   :  { %v7756_v30 = vpop.f32.mrb[95].mxu0  ;;  %v7770_v18 = vadd.f32 %v7762_v38, %v11446_v19  ;;  %v7765_v15 = vadd.f32 %v9660_v35, %v9137_v11 }
0x110a   :  { %v7768_v28 = vadd.f32 %v7754_v44, %v11437_v26  ;;  %v7757_v47 = vadd.f32 %v9137_v11, %v7756_v30 }
0x110b   :  { %v7771_v22 = vadd.f32 %v7765_v15, %v11448_v32  ;;  %v9148_v15 = vld [vmem:[%s12314_s5 + $0x1] ss:$0 sm:$0xff] }
0x110c   :  { %v7769_v13 = vadd.f32 %v7757_v47, %v11439_v37  ;;  %7776 = vadd.xlane.f32.xlu0 %v7768_v28 }
0x110e   :  { %7778 = vadd.xlane.f32.xlu1 %v7769_v13 }
0x1110   :  { %7780 = vadd.xlane.f32.xlu0 %v7770_v18 }
0x1114   :  { %7782 = vadd.xlane.f32.xlu0 %v7771_v22 }
0x1199   :  { %v7777_v26 = vpop.xlane.xlu0 %7776 }
0x119a   :  { %v7784_v14 = vmul.f32 0.0078125, %v7777_v26  ;;  %v9149_v26 = vld [vmem:[%s12315_s6 + $0x1] ss:$0 sm:$0xff] }
0x119b   :  { %v7779_v37 = vpop.xlane.xlu1 %7778 }
0x119c   :  { %v12190_v45 = vsub.f32 %v7768_v28, %v7784_v14  ;;  %v7785_v19 = vmul.f32 0.0078125, %v7779_v37 }
0x119d   :  { %v7781_v48 = vpop.xlane.xlu0 %7780 }
0x119e   :  { %v12192_v56 = vsub.f32 %v7769_v13, %v7785_v19  ;;  %v7786_v52 = vmul.f32 0.0078125, %v7781_v48  ;;  %v7792_v32 = vmul.f32 %v12190_v45, %v12190_v45 }
0x11a0   :  { %v12196_v27 = vsub.f32 %v7770_v18, %v7786_v52  ;;  %7796 = vadd.xlane.f32.xlu1 %v7792_v32  ;;  %v7793_v33 = vmul.f32 %v12192_v56, %v12192_v56 }
0x11a1   :  { %v7783_v8 = vpop.xlane.xlu0 %7782 }
0x11a2   :  { %v7787_v5 = vmul.f32 0.0078125, %v7783_v8  ;;  %7798 = vadd.xlane.f32.xlu0 %v7793_v33  ;;  %v7794_v62 = vmul.f32 %v12196_v27, %v12196_v27 }
0x11a4   :  { %v12202_v55 = vsub.f32 %v7771_v22, %v7787_v5  ;;  %7800 = vadd.xlane.f32.xlu1 %v7794_v62 }
0x11a6   :  { %v7795_v3 = vmul.f32 %v12202_v55, %v12202_v55 }
0x11a8   :  { %7802 = vadd.xlane.f32.xlu0 %v7795_v3  ;;  %v9893_v3 = vld [vmem:[#allocation7 + $0xf0] sm:$0xff]  }
0x122d   :  { %v7797_v24 = vpop.xlane.xlu1 %7796 }
0x122e   :  { %v7804_v54 = vmul.f32 0.0078125, %v7797_v24 }
0x122f   :  { %v7799_v11 = vpop.xlane.xlu0 %7798 }
0x1230   :  { %v7808_v12 = vadd.f32 1e-05, %v7804_v54  ;;  %v7805_v39 = vmul.f32 0.0078125, %v7799_v11 }
0x1231   :  { %v7801_v44 = vpop.xlane.xlu1 %7800 }
0x1232   :  { %10065 = vrsqrt.f32 %v7808_v12  ;;  %v7809_v35 = vadd.f32 1e-05, %v7805_v39  ;;  %v7806_v30 = vmul.f32 0.0078125, %v7801_v44 }
0x1234   :  { %10067 = vrsqrt.f32 %v7809_v35  ;;  %v7810_v38 = vadd.f32 1e-05, %v7806_v30 }
0x1235   :  { %v7803_v28 = vpop.xlane.xlu0 %7802 }
0x1236   :  { %10069 = vrsqrt.f32 %v7810_v38  ;;  %v7807_v47 = vmul.f32 0.0078125, %v7803_v28 }
0x1238   :  { %v7811_v13 = vadd.f32 1e-05, %v7807_v47 }
0x123a   :  { %10071 = vrsqrt.f32 %v7811_v13  ;;  %v9168_v13 = vld [vmem:[%s12319_s10 + $0x1] ss:$0 sm:$0xff] }
0x123c   :  { %v10066_v18 = vpop.eup %10065 }
0x123d   :  { %v7816_v22 = vmul.f32 %v10066_v18, %v12190_v45 }
0x123e   :  { %v10068_v16 = vpop.eup %10067 }
0x123f   :  { %v7817_v25 = vmul.f32 %v10068_v16, %v12192_v56  ;;  %v7826_v60 = vmul.f32 %v9148_v15, %v7816_v22 }
0x1240   :  { %v10070_v1 = vpop.eup %10069 }
0x1241   :  { %v7827_v14 = vmul.f32 %v9148_v15, %v7817_v25  ;;  %v12214_v37 = vadd.f32 %v9149_v26, %v7826_v60  ;;  %v7818_v48 = vmul.f32 %v10070_v1, %v12196_v27  ;;  %v9892_v27 = vld [vmem:[#allocation7 + $0xa8] sm:$0xff]  }
0x1242   :  { %9372 = vmatpush3.bf16.msra.mxu0 %v9892_v27 }
0x1243   :  { %v12216_v19 = vadd.f32 %v9149_v26, %v7827_v14  ;;  %v7828_v56 = vmul.f32 %v9148_v15, %v7818_v48  ;;  %9373 = vmatprep.subr.bf16.mxu0 %v9893_v3 }
0x1244   :  { %v10072_v52 = vpop.eup %10071 }
0x1245   :  { %v7840_v45 = vpack.c.bf16 %v12216_v19, %v12214_v37  ;;  %v7819_v32 = vmul.f32 %v10072_v52, %v12202_v55  ;;  %v12225_v5 = vadd.f32 %v9149_v26, %v7828_v56  ;;  %v9895_v55 = vld [vmem:[#allocation7 + $0xf8] sm:$0xff]  }
0x1246   :  { %9374 = vmatpush3.bf16.msra.mxu0 %v9894_v57 }
0x1247   :  { %7985 = vmatmul.mubr.bf16.vlgmr.msra.gmra.mrb[80].mxu1 %v7840_v45  ;;  %v7829_v33 = vmul.f32 %v9148_v15, %v7819_v32  ;;  %9375 = vmatprep.subr.bf16.mxu0 %v9895_v55  ;;  %v9897_v55 = vld [vmem:[#allocation8] ss:$8 sps:$4 sm:$0xff]  }
0x1248   :  { %7994 = vmatprep.mubr.bf16.mxu1 %v10211_v0 }
0x1249   :  { %v12223_v8 = vadd.f32 %v9149_v26, %v7829_v33 }
0x124a   :  { %9376 = vmatpush3.bf16.msra.mxu0 %v9896_v41  ;;  %v9902_v41 = vld [vmem:[#allocation8 + $0x14] ss:$8 sps:$4 sm:$0xff]  }
0x124b   :  { %v7841_v62 = vpack.c.bf16 %v12223_v8, %v12225_v5 }
0x124f   :  { %7995 = vmatmul.mubr.bf16.gmra.mrb[84].mxu1 %v7841_v62 }
0x1250   :  { %8417 = vmatprep.mubr.bf16.mxu1 %v10211_v0 }
0x131a   :  { %v7986_v53 = vpop.f32.mrb[80].mxu1 }
0x131b   :  { %v7987_v7 = vadd.f32 %v7986_v53, %v7865_v10  ;;  %v7988_v42 = vpop.f32.mrb[81].mxu1 }
0x131c   :  { %v7989_v59 = vadd.f32 %v7988_v42, %v7869_v51  ;;  %v7990_v17 = vpop.f32.mrb[82].mxu1 }
0x131d   :  { %v7991_v6 = vadd.f32 %v7990_v17, %v7865_v10  ;;  %v7992_v61 = vpop.f32.mrb[83].mxu1  ;;  %v8005_v46 = vmax.f32 %v7987_v7, 0.0 }
0x131e   :  { %v7993_v2 = vadd.f32 %v7992_v61, %v7869_v51  ;;  %v8006_v31 = vmax.f32 %v7989_v59, 0.0 }
0x131f   :  { %v8007_v23 = vmax.f32 %v7991_v6, 0.0 }
0x1320   :  { %v8008_v4 = vmax.f32 %v7993_v2, 0.0 }
0x1321   :  { %v8013_v49 = vpack.c.bf16 %v8007_v23, %v8005_v46 }
0x1322   :  { %v8014_v29 = vpack.c.bf16 %v8008_v4, %v8006_v31  ;;  %v7996_v63 = vpop.f32.mrb[84].mxu1  ;;  %v9905_v4 = vld [vmem:[#allocation8 + $0x24] ss:$8 sps:$4 sm:$0xff]  }
0x1323   :  { %v7997_v50 = vadd.f32 %v7996_v63, %v7865_v10  ;;  %v7998_v43 = vpop.f32.mrb[85].mxu1  ;;  %v9906_v63 = vld [vmem:[#allocation8 + $0x30] ss:$8 sps:$4 sm:$0xff]  }
0x1324   :  { %v7999_v58 = vadd.f32 %v7998_v43, %v7869_v51  ;;  %v8000_v24 = vpop.f32.mrb[86].mxu1  ;;  %8186 = vmatprep.mubr.bf16.mxu0 %v8014_v29  ;;  %v9908_v29 = vld [vmem:[#allocation8 + $0x34] ss:$8 sps:$4 sm:$0xff]   ;;  %v9909_v43 = vld [vmem:[#allocation8 + $0x40] ss:$8 sps:$4 sm:$0xff]  }
0x1325   :  { %v8001_v54 = vadd.f32 %v8000_v24, %v7865_v10  ;;  %v8002_v11 = vpop.f32.mrb[87].mxu1  ;;  %8187 = vmatmul.mubr.bf16.vlgmr.msra.gmra.mrb[96].mxu0 %v8013_v49  ;;  %v8009_v39 = vmax.f32 %v7997_v50, 0.0  ;;  %v9903_v49 = vld [vmem:[#allocation8 + $0x20] ss:$8 sps:$4 sm:$0xff]   ;;  %v9911_v50 = vld [vmem:[#allocation8 + $0x44] ss:$8 sps:$4 sm:$0xff]  }
0x1326   :  { %v8003_v12 = vadd.f32 %v8002_v11, %v7869_v51  ;;  %v8010_v35 = vmax.f32 %v7999_v58, 0.0  ;;  %v9914_v58 = vld [vmem:[#allocation8 + $0x54] ss:$8 sps:$4 sm:$0xff]   ;;  %v9912_v24 = vld [vmem:[#allocation8 + $0x50] ss:$8 sps:$4 sm:$0xff]  }
0x1327   :  { %v8011_v44 = vmax.f32 %v8001_v54, 0.0  ;;  %v9915_v54 = vld [vmem:[#allocation8 + $0x60] ss:$8 sps:$4 sm:$0xff]   ;;  %v9917_v11 = vld [vmem:[#allocation8 + $0x64] ss:$8 sps:$4 sm:$0xff]  }
0x1328   :  { %v8012_v30 = vmax.f32 %v8003_v12, 0.0  ;;  %v9920_v12 = vld [vmem:[#allocation8 + $0x74] ss:$8 sps:$4 sm:$0xff]  }
0x1329   :  { %v8015_v38 = vpack.c.bf16 %v8011_v44, %v8009_v39  ;;  %v9918_v39 = vld [vmem:[#allocation8 + $0x70] ss:$8 sps:$4 sm:$0xff]  }
0x132a   :  { %v8016_v28 = vpack.c.bf16 %v8012_v30, %v8010_v35 }
0x132c   :  { %8194 = vmatprep.mubr.bf16.mxu0 %v8016_v28 }
0x132d   :  { %8195 = vmatmul.mubr.bf16.gmra.mrb[100].mxu0 %v8015_v38 }
0x13f8   :  { %v9377_v47 = vpop.f32.mrb[96].mxu0 }
0x13f9   :  { %v9378_v18 = vpop.f32.mrb[97].mxu0 }
0x13fa   :  { %v9379_v15 = vadd.f32 %v9378_v18, %v9377_v47  ;;  %v9380_v22 = vpop.f32.mrb[98].mxu0 }
0x13fb   :  { %v9381_v16 = vpop.f32.mrb[99].mxu0 }
0x13fc   :  { %v8189_v25 = vadd.f32 %v9379_v15, %v9168_v13  ;;  %v9382_v60 = vadd.f32 %v9381_v16, %v9380_v22 }
0x13fe   :  { %v8192_v1 = vadd.f32 %v9382_v60, %v9168_v13  ;;  %v8203_v26 = vadd.f32 %v8189_v25, %v12214_v37  ;;  %v9899_v37 = vld [vmem:[#allocation8 + $0x4] ss:$8 sps:$4 sm:$0xff]  }
0x13ff   :  { %8385 = vmatprep.subr.bf16.mxu1 %v9899_v37 }
0x1400   :  { %v9383_v14 = vpop.f32.mrb[100].mxu0  ;;  %8211 = vadd.xlane.f32.xlu1 %v8203_v26  ;;  %v8204_v48 = vadd.f32 %v8192_v1, %v12216_v19  ;;  %8386 = vmatpush1.bf16.msra.mxu1 %v9897_v55  ;;  %v9900_v19 = vld [vmem:[#allocation8 + $0x10] ss:$8 sps:$4 sm:$0xff]   ;;  %v9187_v1 = vld [vmem:[%s12320_s11 + $0x1] ss:$0 sm:$0xff] }
0x1401   :  { %v9384_v52 = vpop.f32.mrb[101].mxu0  ;;  %8387 = vmatprep.subr.bf16.mxu1 %v9902_v41 }
0x1402   :  { %v9385_v45 = vadd.f32 %v9384_v52, %v9383_v14  ;;  %v9386_v32 = vpop.f32.mrb[102].mxu0  ;;  %8213 = vadd.xlane.f32.xlu0 %v8204_v48 }
0x1403   :  { %v9387_v56 = vpop.f32.mrb[103].mxu0 }
0x1404   :  { %v8197_v33 = vadd.f32 %v9385_v45, %v9168_v13  ;;  %v9388_v62 = vadd.f32 %v9387_v56, %v9386_v32  ;;  %8388 = vmatpush1.bf16.msra.mxu1 %v9900_v19  ;;  %v9188_v45 = vld [vmem:[%s12321_s12 + $0x1] ss:$0 sm:$0xff]  ;;  %s10218_s12 = smov [#allocation10]  }
0x1405   :  { %8389 = vmatprep.subr.bf16.mxu1 %v9905_v4 }
0x1406   :  { %v8200_v27 = vadd.f32 %v9388_v62, %v9168_v13  ;;  %v8205_v3 = vadd.f32 %v8197_v33, %v12225_v5 }
0x1408   :  { %8215 = vadd.xlane.f32.xlu1 %v8205_v3  ;;  %v8206_v57 = vadd.f32 %v8200_v27, %v12223_v8  ;;  %8390 = vmatpush1.bf16.msra.mxu1 %v9903_v49 }
0x1409   :  { %8391 = vmatprep.subr.bf16.mxu1 %v9908_v29 }
0x140a   :  { %8217 = vadd.xlane.f32.xlu0 %v8206_v57 }
0x140c   :  { %8392 = vmatpush1.bf16.msra.mxu1 %v9906_v63 }
0x140d   :  { %8393 = vmatprep.subr.bf16.mxu1 %v9911_v50 }
0x1410   :  { %8394 = vmatpush1.bf16.msra.mxu1 %v9909_v43 }
0x1411   :  { %8395 = vmatprep.subr.bf16.mxu1 %v9914_v58 }
0x1414   :  { %8396 = vmatpush1.bf16.msra.mxu1 %v9912_v24 }
0x1415   :  { %8397 = vmatprep.subr.bf16.mxu1 %v9917_v11 }
0x1418   :  { %8398 = vmatpush1.bf16.msra.mxu1 %v9915_v54 }
0x1419   :  { %8399 = vmatprep.subr.bf16.mxu1 %v9920_v12 }
0x141c   :  { %8400 = vmatpush1.bf16.msra.mxu1 %v9918_v39 }
0x148d   :  { %v8212_v9 = vpop.xlane.xlu1 %8211 }
0x148e   :  { %v8219_v10 = vmul.f32 0.0078125, %v8212_v9 }
0x148f   :  { %v8214_v51 = vpop.xlane.xlu0 %8213 }
0x1490   :  { %v8223_v53 = vsub.f32 %v8203_v26, %v8219_v10  ;;  %v8220_v7 = vmul.f32 0.0078125, %v8214_v51  ;;  %v8293_v51 = vld [vmem:[%s12323_s14] sm:$0x3]  ;;  %s8899_s14 = sshll.u32 %s10218_s12, 4  ;;  %s8900_s14 = int_to_ptr.vmem [resolvable:$true] %s8899_s14 }
0x1491   :  { %s10173_s13 = scalar_lea.vmem %s8900_s14, 1024  ;;  %p10178_p5 = scmp.lt.s32.totalorder %s8900_s14, %s8900_s14 }
0x1492   :  { %v8224_v42 = vsub.f32 %v8204_v48, %v8220_v7  ;;  %v8227_v59 = vmul.f32 %v8223_v53, %v8223_v53  ;;  %v8302_v7 = vrot.slane %v8293_v51, %v10464_v36  ;;  %p10174_p4 = scmp.ne.s32.totalorder %s8900_s14, %s10173_s13  ;;  %p10179_p6 = scmp.lt.s32.totalorder %s10173_s13, %s10173_s13 }
0x1494   :  { %8231 = vadd.xlane.f32.xlu1 %v8227_v59  ;;  %v8228_v5 = vmul.f32 %v8224_v42, %v8224_v42  ;;  %p10180_p7 = por %p10179_p6, %p10178_p5 }
0x1495   :  { %v8216_v17 = vpop.xlane.xlu1 %8215 }
0x1496   :  { %v8221_v8 = vmul.f32 0.0078125, %v8216_v17  ;;  %8233 = vadd.xlane.f32.xlu0 %v8228_v5  ;;  %p10181_p8 = pnand %p10180_p7, %p10174_p4 }
0x1497   :  { %v8218_v6 = vpop.xlane.xlu0 %8217 }
0x1498   :  { %v8225_v61 = vsub.f32 %v8205_v3, %v8221_v8  ;;  %v8222_v2 = vmul.f32 0.0078125, %v8218_v6 }
0x149a   :  { %v8226_v46 = vsub.f32 %v8206_v57, %v8222_v2  ;;  %v8229_v23 = vmul.f32 %v8225_v61, %v8225_v61 }
0x149c   :  { %8235 = vadd.xlane.f32.xlu1 %v8229_v23  ;;  %v8230_v31 = vmul.f32 %v8226_v46, %v8226_v46 }
0x149e   :  { %8237 = vadd.xlane.f32.xlu0 %v8230_v31 }
0x1521   :  { %v8232_v44 = vpop.xlane.xlu1 %8231 }
0x1522   :  { %v8239_v35 = vmul.f32 0.0078125, %v8232_v44 }
0x1523   :  { %v8234_v30 = vpop.xlane.xlu0 %8233 }
0x1524   :  { %v8243_v38 = vadd.f32 1e-05, %v8239_v35  ;;  %v8240_v28 = vmul.f32 0.0078125, %v8234_v30 }
0x1526   :  { %10073 = vrsqrt.f32 %v8243_v38  ;;  %v8244_v47 = vadd.f32 1e-05, %v8240_v28 }
0x1528   :  { %10075 = vrsqrt.f32 %v8244_v47 }
0x1529   :  { %v8236_v13 = vpop.xlane.xlu1 %8235 }
0x152a   :  { %v8241_v18 = vmul.f32 0.0078125, %v8236_v13 }
0x152b   :  { %v8238_v15 = vpop.xlane.xlu0 %8237 }
0x152c   :  { %v8245_v22 = vadd.f32 1e-05, %v8241_v18  ;;  %v8242_v16 = vmul.f32 0.0078125, %v8238_v15 }
0x152e   :  { %10077 = vrsqrt.f32 %v8245_v22  ;;  %v8246_v25 = vadd.f32 1e-05, %v8242_v16 }
0x1530   :  { %v10074_v60 = vpop.eup %10073  ;;  %10079 = vrsqrt.f32 %v8246_v25 }
0x1531   :  { %v8251_v26 = vmul.f32 %v10074_v60, %v8223_v53  ;;  %v8298_v53 = vrot.slane %v8293_v51, %v10458_v34 }
0x1532   :  { %v10076_v14 = vpop.eup %10075 }
0x1533   :  { %v8261_v48 = vmul.f32 %v9187_v1, %v8251_v26  ;;  %v8252_v52 = vmul.f32 %v10076_v14, %v8224_v42 }
0x1535   :  { %v8262_v32 = vmul.f32 %v9187_v1, %v8252_v52  ;;  %v8271_v56 = vadd.f32 %v9188_v45, %v8261_v48 }
0x1537   :  { %v8272_v33 = vadd.f32 %v9188_v45, %v8262_v32 }
0x1538   :  { %v10078_v62 = vpop.eup %10077 }
0x1539   :  { %v8275_v27 = vpack.c.bf16 %v8272_v33, %v8271_v56  ;;  %v8253_v3 = vmul.f32 %v10078_v62, %v8225_v61 }
0x153a   :  { %v10080_v57 = vpop.eup %10079 }
0x153b   :  { %8418 = vmatmul.mubr.bf16.vlgmr.msra.gmra.mrb[88].mxu1 %v8275_v27  ;;  %v8254_v55 = vmul.f32 %v10080_v57, %v8226_v46  ;;  %v8263_v37 = vmul.f32 %v9187_v1, %v8253_v3 }
0x153c   :  { %8427 = vmatprep.mubr.bf16.mxu1 %v10211_v0 }
0x153d   :  { %v8264_v41 = vmul.f32 %v9187_v1, %v8254_v55  ;;  %v8273_v19 = vadd.f32 %v9188_v45, %v8263_v37 }
0x153f   :  { %v8274_v9 = vadd.f32 %v9188_v45, %v8264_v41 }
0x1541   :  { %v8276_v10 = vpack.c.bf16 %v8274_v9, %v8273_v19 }
0x1543   :  { %8428 = vmatmul.mubr.bf16.gmra.mrb[92].mxu1 %v8276_v10 }
0x160e   :  { %v8419_v42 = vpop.f32.mrb[88].mxu1 }
0x160f   :  { %v8421_v59 = vpop.f32.mrb[89].mxu1  ;;  %v8420_v5 = vadd.f32 %v8419_v42, %v8298_v53 }
0x1610   :  { %v8423_v17 = vpop.f32.mrb[90].mxu1  ;;  %v8422_v8 = vadd.f32 %v8421_v59, %v8302_v7 }
0x1611   :  { %v8425_v6 = vpop.f32.mrb[91].mxu1  ;;  %v8438_v0 = vcombine.high %v8420_v5, %v10212_v20  ;;  %v8424_v61 = vadd.f32 %v8423_v17, %v8298_v53  ;;  %v8445_v31 = vrot.slane %v8420_v5, %v10519_v21 }
0x1612   :  { %v8570_v2 = vcombine.high %v8422_v8, %v10212_v20  ;;  %v8426_v46 = vadd.f32 %v8425_v6, %v8302_v7  ;;  %v8577_v4 = vrot.slane %v8422_v8, %v10519_v21 }
0x1613   :  { %v8452_v36 = vrot.slane %v8438_v0, %v10519_v21  ;;  %v8504_v29 = vcombine.high %v8424_v61, %v10212_v20  ;;  %v8511_v63 = vrot.slane %v8424_v61, %v10519_v21 }
0x1614   :  { %v8584_v58 = vrot.slane %v8570_v2, %v10519_v21  ;;  %v8636_v39 = vcombine.high %v8426_v46, %v10212_v20  ;;  %v8643_v17 = vrot.slane %v8426_v46, %v10519_v21 }
0x1615   :  { %v8518_v37 = vrot.slane %v8504_v29, %v10519_v21 }
0x1616   :  { %v8429_v23 = vpop.f32.mrb[92].mxu1  ;;  %v8650_v6 = vrot.slane %v8636_v39, %v10519_v21 }
0x1617   :  { %v8430_v34 = vadd.f32 %v8429_v23, %v8298_v53  ;;  %v8431_v49 = vpop.f32.mrb[93].mxu1 }
0x1618   :  { %v8432_v50 = vadd.f32 %v8431_v49, %v8302_v7  ;;  %v8433_v43 = vpop.f32.mrb[94].mxu1 }
0x1619   :  { %v8453_v24 = vcombine.high %v8430_v34, %v10212_v20  ;;  %v8460_v54 = vrot.slane %v8430_v34, %v10519_v21  ;;  %v8434_v11 = vadd.f32 %v8433_v43, %v8298_v53  ;;  %v8435_v12 = vpop.f32.mrb[95].mxu1 }
0x161a   :  { %v8585_v44 = vcombine.high %v8432_v50, %v10212_v20  ;;  %v8592_v35 = vrot.slane %v8432_v50, %v10519_v21  ;;  %v8436_v30 = vadd.f32 %v8435_v12, %v8302_v7 }
0x161b   :  { %v8467_v38 = vrot.slane %v8453_v24, %v10519_v21  ;;  %v8468_v28 = vcombine.low %v8445_v31, %v8460_v54  ;;  %v8469_v47 = vcombine.high %v8445_v31, %v8460_v54  ;;  %v8519_v13 = vcombine.high %v8434_v11, %v10212_v20 }
0x161c   :  { %v8599_v18 = vrot.slane %v8585_v44, %v10519_v21  ;;  %v8600_v15 = vcombine.low %v8577_v4, %v8592_v35  ;;  %v8601_v22 = vcombine.high %v8577_v4, %v8592_v35  ;;  %v8526_v16 = vrot.slane %v8434_v11, %v10519_v21 }
0x161d   :  { %v8476_v25 = vrot.slane %v8468_v28, %v10528_v40  ;;  %v8483_v60 = vrot.slane %v8469_v47, %v10528_v40  ;;  %v8484_v1 = vcombine.low %v8452_v36, %v8467_v38  ;;  %v8485_v26 = vcombine.high %v8452_v36, %v8467_v38 }
0x161e   :  { %v8608_v14 = vrot.slane %v8600_v15, %v10528_v40  ;;  %v8615_v48 = vrot.slane %v8601_v22, %v10528_v40  ;;  %v8616_v52 = vcombine.low %v8584_v58, %v8599_v18  ;;  %v8617_v45 = vcombine.high %v8584_v58, %v8599_v18 }
0x161f   :  { %v8492_v32 = vrot.slane %v8484_v1, %v10528_v40  ;;  %v8499_v56 = vrot.slane %v8485_v26, %v10528_v40  ;;  %v8533_v33 = vrot.slane %v8519_v13, %v10519_v21  ;;  %v8534_v62 = vcombine.low %v8511_v63, %v8526_v16 }
0x1620   :  { %v8624_v27 = vrot.slane %v8616_v52, %v10528_v40  ;;  %v8631_v3 = vrot.slane %v8617_v45, %v10528_v40  ;;  %v8734_v57 = vcombine.low %v8476_v25, %v8608_v14  ;;  %v9205_v55 = vcombine.high %v8476_v25, %v8608_v14 }
0x1621   :  { %v8750_v41 = vcombine.low %v8483_v60, %v8615_v48  ;;  %v9206_v19 = vcombine.high %v8483_v60, %v8615_v48  ;;  %v8535_v9 = vcombine.high %v8511_v63, %v8526_v16  ;;  %v8550_v42 = vcombine.low %v8518_v37, %v8533_v33 }
0x1622   :  { %v8766_v10 = vcombine.low %v8492_v32, %v8624_v27  ;;  %v9207_v51 = vcombine.high %v8492_v32, %v8624_v27  ;;  %v8782_v53 = vcombine.low %v8499_v56, %v8631_v3  ;;  %v9208_v7 = vcombine.high %v8499_v56, %v8631_v3  ;;  %9213 = vst.sshfl [vmem:[#allocation10] sm:$0x33 pattern:$0x76325410] %v8734_v57 }
0x1623   :  { %9214 = vst.sshfl [vmem:[#allocation10 + $0x4] sm:$0x33 pattern:$0x76325410] %v9205_v55  ;;  %v8551_v59 = vcombine.high %v8518_v37, %v8533_v33  ;;  %v8651_v5 = vcombine.high %v8436_v30, %v10212_v20  ;;  %v8658_v8 = vrot.slane %v8436_v30, %v10519_v21  ;;  %v8542_v61 = vrot.slane %v8534_v62, %v10528_v40 }
0x1624   :  { %9215 = vst.sshfl [vmem:[#allocation10 + $0x8] sm:$0x33 pattern:$0x76325410] %v8750_v41  ;;  %v8549_v2 = vrot.slane %v8535_v9, %v10528_v40  ;;  %v8558_v20 = vrot.slane %v8550_v42, %v10528_v40 }
0x1625   :  { %9216 = vst.sshfl [vmem:[#allocation10 + $0xc] sm:$0x33 pattern:$0x76325410] %v9206_v19  ;;  %v8665_v0 = vrot.slane %v8651_v5, %v10519_v21  ;;  %v8666_v23 = vcombine.low %v8643_v17, %v8658_v8  ;;  %v8667_v31 = vcombine.high %v8643_v17, %v8658_v8  ;;  %v8565_v46 = vrot.slane %v8551_v59, %v10528_v40 }
0x1626   :  { %9217 = vst.sshfl [vmem:[#allocation10 + $0x10] sm:$0x33 pattern:$0x76325410] %v8766_v10 }
0x1627   :  { %9218 = vst.sshfl [vmem:[#allocation10 + $0x14] sm:$0x33 pattern:$0x76325410] %v9207_v51  ;;  %v8682_v4 = vcombine.low %v8650_v6, %v8665_v0  ;;  %v8683_v34 = vcombine.high %v8650_v6, %v8665_v0  ;;  %v8674_v49 = vrot.slane %v8666_v23, %v10528_v40  ;;  %v8681_v36 = vrot.slane %v8667_v31, %v10528_v40 }
0x1628   :  { %9219 = vst.sshfl [vmem:[#allocation10 + $0x18] sm:$0x33 pattern:$0x76325410] %v8782_v53 }
0x1629   :  { %9220 = vst.sshfl [vmem:[#allocation10 + $0x1c] sm:$0x33 pattern:$0x76325410] %v9208_v7  ;;  %v8690_v21 = vrot.slane %v8682_v4, %v10528_v40  ;;  %v8697_v29 = vrot.slane %v8683_v34, %v10528_v40  ;;  %v8798_v63 = vcombine.low %v8542_v61, %v8674_v49  ;;  %v9209_v50 = vcombine.high %v8542_v61, %v8674_v49 }
0x162a   :  { %v8814_v43 = vcombine.low %v8549_v2, %v8681_v36  ;;  %v9210_v58 = vcombine.high %v8549_v2, %v8681_v36 }
0x162b   :  { %v8830_v24 = vcombine.low %v8558_v20, %v8690_v21  ;;  %v9211_v54 = vcombine.high %v8558_v20, %v8690_v21  ;;  %v8846_v11 = vcombine.low %v8565_v46, %v8697_v29  ;;  %v9212_v12 = vcombine.high %v8565_v46, %v8697_v29  ;;  %9221 = vst.sshfl [vmem:[#allocation10 + $0x20] sm:$0x33 pattern:$0x76325410] %v8798_v63 }
0x162c   :  { %9222 = vst.sshfl [vmem:[#allocation10 + $0x24] sm:$0x33 pattern:$0x76325410] %v9209_v50 }
0x162d   :  { %9223 = vst.sshfl [vmem:[#allocation10 + $0x28] sm:$0x33 pattern:$0x76325410] %v8814_v43 }
0x162e   :  { %9224 = vst.sshfl [vmem:[#allocation10 + $0x2c] sm:$0x33 pattern:$0x76325410] %v9210_v58 }
0x162f   :  { %9225 = vst.sshfl [vmem:[#allocation10 + $0x30] sm:$0x33 pattern:$0x76325410] %v8830_v24 }
0x1630   :  { %9226 = vst.sshfl [vmem:[#allocation10 + $0x34] sm:$0x33 pattern:$0x76325410] %v9211_v54 }
0x1631   :  { %9227 = vst.sshfl [vmem:[#allocation10 + $0x38] sm:$0x33 pattern:$0x76325410] %v8846_v11 }
0x1632   :  { %9228 = vst.sshfl [vmem:[#allocation10 + $0x3c] sm:$0x33 pattern:$0x76325410] %v9212_v12 }
0x1633   :  { %10184 = shalt.err (!%p10181_p8)
}
0x1634   :  { %s10185_s23 = scalar_lea.hbm %s12324_s15, 1024 }
0x1635   :  { %p10186_p9 = scmp.ne.s32.totalorder %s12324_s15, %s10185_s23  ;;  %p10189_p10 = scmp.lt.u32.totalorder %s10185_s23, %s12324_s15 }
0x1637   :  { %p10191_p11 = pnand %p10189_p10, %p10186_p9 }
0x1639   :  { %10194 = shalt.err (!%p10191_p11)
}
0x163a   :  { %8905 = dma.vmem_to_hbm [thread:$0]  %s8900_s14, 1024, %s12324_s15, [#allocation4], %s10207_s7, %s10207_s7, %s10208_s19  }
0x163b   :  { %10201 = dma.done.wait [#allocation4], 1024  }
0x163c   :  { %10202 = vsyncadd [#allocation4], 4294966272 }
0x163d   :  { %8909 = vsyncpa [#allocation3], 1 }
0x163e   :  { %8910 = vsyncpa [#allocation6], 1 }
0x163f   :  { %8911 = vsyncpa [#allocation9], 1 }
0x1640   :  { %8912 = vsyncpa [#allocation4], 1 }

</bundles_post_ra>
